<compile_context>
chip_gen: v5e
topology: v5e:2x2
jax: 0.10.0
libtpu: 0.0.40
codegen_flags: <defaults>
</compile_context>

<pallas_src>
from functools import partial

import jax
import jax.numpy as jnp
from jax import lax
from jax.experimental import pallas as pl
from jax.experimental.pallas import tpu as pltpu

# ---------------------------------------------------------------------------
# Model config (mirrors the PyTorch __init__ logic)
# ---------------------------------------------------------------------------
LATENT_SIZE = 13
HIDDEN = [64, 64, 64]
LATENT_IN = (2,)
NORM_LAYERS = (0, 1, 2)
DIMS = [LATENT_SIZE + 3] + HIDDEN + [1]   # [16, 64, 64, 64, 1]
NUM_LAYERS = len(DIMS)                    # 5
LN_EPS = 1e-5


def _layer_out_dim(layer):
    if layer + 1 in LATENT_IN:
        return DIMS[layer + 1] - DIMS[0]
    return DIMS[layer + 1]


# Resolved per-layer sizes:
#   lin0: 16 -> 64   + LN(64) + ReLU
#   lin1: 64 -> 48   + LN(48) + ReLU
#   lin2: 64 -> 64   + LN(64) + ReLU   (input to lin2 is cat([h(48), input(16)]))
#   lin3: 64 -> 1
#   final tanh (self.th)
D_IN = DIMS[0]
H0 = _layer_out_dim(0)   # 64
H1 = _layer_out_dim(1)   # 48
H2 = _layer_out_dim(2)   # 64
H3 = _layer_out_dim(3)   # 1
SLAB_ROWS = 64           # rows of the packed bias/LN slab (>= max feature width)


def _round_up(a, b):
    return -(-a // b) * b


def _num_tensorcores():
    """Best-effort detection of multi-TensorCore chips (v7x / v4 / v5p)."""
    try:
        kind = jax.devices()[0].device_kind.lower()
    except Exception:  # pragma: no cover
        return 1
    if any(tag in kind for tag in ("v7", "7x", "v4", "v5p")):
        return 2
    return 1


# ---------------------------------------------------------------------------
# Pallas kernel: whole MLP forward for one batch tile, feature-major layout.
#   x_ref    : (TB, D_IN)  original batch-major block (transpose folded into dot)
#   w0s_ref  : (128, 16)   rows 0:64 = W0, rows 64:128 = W2b (stacked)
#   w1_ref   : (48, 64), w2a_ref: (64, 48), w3_ref: (1, 64)
#   slab_ref : (64, 10) f32, columns = [b0,g0,be0, b1,g1,be1, b2,g2,be2, b3]
#   o_ref    : (1, TB)     lane-dense output
# ---------------------------------------------------------------------------
def shape_model_kernel(x_ref, w0s_ref, w1_ref, w2a_ref, w3_ref, slab_ref,
                       o_ref, *, dot_dtype):
    def col(j, rows):
        # static slice of the packed parameter slab -> (rows, 1) f32
        return slab_ref[0:rows, j:j + 1]

    def layer_norm(h, g, b):
        # one-pass stats (f32); feature axis is axis 0 (sublanes),
        # batch stays dense on lanes.
        mu = jnp.mean(h, axis=0, keepdims=True)
        m2 = jnp.mean(h * h, axis=0, keepdims=True)
        var = m2 - mu * mu
        return (h - mu) * lax.rsqrt(var + LN_EPS) * g + b

    def act(h, g, b):
        # LayerNorm + ReLU, then store the activation in the matmul dtype
        return jnp.maximum(layer_norm(h, g, b), 0.0).astype(dot_dtype)

    # Stacked layer-0 matmul: one K=16 pass computes
    #   rows 0:64   = W0  @ x^T   (layer-0 pre-activation)
    #   rows 64:128 = W2b @ x^T   (held and added at layer 2)
    x_dot = x_ref[...].astype(dot_dtype)                         # (TB, 16)
    h0full = lax.dot_general(
        w0s_ref[...], x_dot,
        dimension_numbers=(((1,), (1,)), ((), ())),              # trans_b
        preferred_element_type=jnp.float32)                      # (128, TB)
    x2 = h0full[H0:H0 + H2, :]                                   # W2b @ x^T

    # layer 0: Linear(16 -> 64) + LayerNorm + ReLU
    h = act(h0full[0:H0, :] + col(0, H0), col(1, H0), col(2, H0))

    # layer 1: Linear(64 -> 48) + LayerNorm + ReLU
    h = jnp.dot(w1_ref[...], h, preferred_element_type=jnp.float32) + col(3, H1)
    h = act(h, col(4, H1), col(5, H1))

    # layer 2 (latent_in): W2 @ cat([h, input]) == W2a @ h + W2b @ input
    h = (jnp.dot(w2a_ref[...], h, preferred_element_type=jnp.float32)
         + x2 + col(6, H2))
    h = act(h, col(7, H2), col(8, H2))

    # layer 3: Linear(64 -> 1), then final tanh (self.th)
    h = jnp.dot(w3_ref[...], h, preferred_element_type=jnp.float32) + col(9, H3)
    o_ref[...] = jnp.tanh(h)

    # TODO(synk): dropout / latent_dropout are eval-time no-ops for the chosen
    # config (dropout=None, latent_dropout=False) and are therefore omitted.


# ---------------------------------------------------------------------------
# Wrapper
# ---------------------------------------------------------------------------
def shape_model_forward(x, params, *, tb=8192, use_bf16=True):
    N, din = x.shape
    assert din == D_IN
    dot_dtype = jnp.bfloat16 if use_bf16 else jnp.float32

    # ---- tile selection -----------------------------------------------------
    tb = max(128, min(16384, (tb // 128) * 128))
    n128 = _round_up(N, 128)
    if _num_tensorcores() > 1:
        # keep >= 2 grid steps so both TensorCores get work (megacore sharding
        # of the "parallel" axis), but never below 128 lanes
        target = _round_up(max(n128 // 2, 128), 128)
    else:
        # single TensorCore: one full-size step is best for small batches
        target = n128
    tb_eff = max(128, min(tb, target))
    grid = (pl.cdiv(N, tb_eff),)
    n_cols = grid[0] * tb_eff          # padded output columns (sliced off below)

    # VMEM allowance with headroom (v5e scoped default is only 16 MiB; v7x has
    # 64 MiB physical, so keep the request comfortably below that).
    vmem_limit = int(min(56 * 2**20, max(24 * 2**20, 4096 * tb_eff)))

    # ---- parameter packing --------------------------------------------------
    # Stack W0 (64,16) and W2b (64,16) -> (128,16): one K=16 MXU pass.
    w0s = jnp.concatenate([params["w0"], params["w2b"]], axis=0).astype(dot_dtype)
    w1 = params["w1"].astype(dot_dtype)    # (48, 64)
    w2a = params["w2a"].astype(dot_dtype)  # (64, 48)
    w3 = params["w3"].astype(dot_dtype)    # (1, 64)

    def _col(v):
        v = v.reshape(-1, 1).astype(jnp.float32)
        return jnp.pad(v, ((0, SLAB_ROWS - v.shape[0]), (0, 0)))

    slab = jnp.concatenate(
        [_col(params[k]) for k in
         ("b0", "g0", "be0", "b1", "g1", "be1", "b2", "g2", "be2", "b3")],
        axis=1)                                            # (64, 10) f32

    def whole(a):
        # whole-array block (block dims == array dims, so no (8,128) constraint)
        return pl.BlockSpec(a.shape, lambda i: (0, 0))

    out = pl.pallas_call(
        partial(shape_model_kernel, dot_dtype=dot_dtype),
        out_shape=jax.ShapeDtypeStruct((1, n_cols), jnp.float32),
        grid_spec=pltpu.PrefetchScalarGridSpec(
            num_scalar_prefetch=0,
            grid=grid,
            in_specs=[pl.BlockSpec((tb_eff, D_IN), lambda i: (i, 0)),
                      whole(w0s), whole(w1), whole(w2a), whole(w3),
                      whole(slab)],
            out_specs=pl.BlockSpec((1, tb_eff), lambda i: (0, i)),
        ),
        compiler_params=pltpu.CompilerParams(
            dimension_semantics=("parallel",),
            vmem_limit_bytes=vmem_limit),
    )(x, w0s, w1, w2a, w3, slab)

    return out[0, :N].reshape(N, 1)


# ---------------------------------------------------------------------------
# Deterministic parameter init + pure-JAX reference (PyTorch semantics)
# ---------------------------------------------------------------------------
def init_params(key):
    ks = jax.random.split(key, 16)

    def lin(kw, kb, din, dout):
        scale = 1.0 / jnp.sqrt(jnp.float32(din))
        w = jax.random.normal(kw, (dout, din), jnp.float32) * scale   # (out, in)
        b = jax.random.normal(kb, (dout,), jnp.float32) * scale
        return w, b

    w0, b0 = lin(ks[0], ks[1], D_IN, H0)
    w1, b1 = lin(ks[2], ks[3], H0, H1)
    w2, b2 = lin(ks[4], ks[5], DIMS[2], H2)   # in-features = dims[2] = 64
    w3, b3 = lin(ks[6], ks[7], DIMS[3], H3)

    def ln(kg, kb, d):
        g = 1.0 + 0.1 * jax.random.normal(kg, (d,), jnp.float32)
        b = 0.1 * jax.random.normal(kb, (d,), jnp.float32)
        return g, b

    g0, be0 = ln(ks[8], ks[9], H0)
    g1, be1 = ln(ks[10], ks[11], H1)
    g2, be2 = ln(ks[12], ks[13], H2)

    return {
        "w0": w0, "b0": b0, "g0": g0, "be0": be0,
        "w1": w1, "b1": b1, "g1": g1, "be1": be1,
        # layer-2 input is cat([h(48), input(16)]): split W2 by input columns
        "w2a": w2[:, :H1], "w2b": w2[:, H1:], "b2": b2, "g2": g2, "be2": be2,
        "w3": w3, "b3": b3,
    }


def reference_forward(x, p, dot_dtype=jnp.float32):
    def dot(a, w):   # a: (N, in), w: (out, in) -> (N, out)
        return jnp.dot(a.astype(dot_dtype), w.T.astype(dot_dtype),
                       preferred_element_type=jnp.float32)

    def layer_norm(h, g, b):
        mu = jnp.mean(h, axis=-1, keepdims=True)
        var = jnp.mean((h - mu) ** 2, axis=-1, keepdims=True)
        return (h - mu) / jnp.sqrt(var + LN_EPS) * g + b

    h = jnp.maximum(layer_norm(dot(x, p["w0"]) + p["b0"], p["g0"], p["be0"]), 0.0)
    h = jnp.maximum(layer_norm(dot(h, p["w1"]) + p["b1"], p["g1"], p["be1"]), 0.0)
    h2in = jnp.concatenate([h, x], axis=1)
    w2 = jnp.concatenate([p["w2a"], p["w2b"]], axis=1)
    h = jnp.maximum(layer_norm(dot(h2in, w2) + p["b2"], p["g2"], p["be2"]), 0.0)
    h = dot(h, p["w3"]) + p["b3"]
    return jnp.tanh(h)


# ---------------------------------------------------------------------------
if __name__ == "__main__":
    key = jax.random.PRNGKey(0)
    k_x, k_p = jax.random.split(key)

    N = 1000   # deliberately not a multiple of the tile: exercises the tail block
    x = jax.random.normal(k_x, (N, D_IN), dtype=jnp.float32)
    params = init_params(k_p)

    # 1) f32 matmul path: structural check against the pure-f32 reference
    #    (one-pass LN variance introduces only tiny f32 differences).
    out_f32 = jax.block_until_ready(shape_model_forward(x, params, use_bf16=False))
    ref_f32 = reference_forward(x, params)
    assert out_f32.shape == (N, 1)
    assert jnp.all(jnp.isfinite(out_f32))
    assert jnp.allclose(out_f32, ref_f32, atol=1e-3, rtol=1e-3), \
        "Pallas kernel (f32) mismatch vs reference"

    # 2) bf16 matmul path (default, MXU-native): compare against a reference
    #    that applies the same bf16 rounding at the matmul inputs, plus a loose
    #    sanity check against the pure-f32 reference.
    out_bf16 = jax.block_until_ready(shape_model_forward(x, params, use_bf16=True))
    ref_bf16 = reference_forward(x, params, dot_dtype=jnp.bfloat16)
    assert jnp.allclose(out_bf16, ref_bf16, atol=1e-2, rtol=1e-2), \
        "Pallas kernel (bf16) mismatch vs bf16 reference"
    assert jnp.allclose(out_bf16, ref_f32, atol=1.5e-1, rtol=1.5e-1), \
        "Pallas kernel (bf16) diverges too far from f32 reference"

    print("KERNEL_OK")
</pallas_src>

<mosaic_0001>
module attributes {stable_mosaic.version = 11 : i64} {
  func.func @shape_model_kernel(%arg0: i32, %arg1: memref<1024x16xf32, #tpu.memory_space<vmem>>, %arg2: memref<128x16xf32, #tpu.memory_space<vmem>>, %arg3: memref<48x64xf32, #tpu.memory_space<vmem>>, %arg4: memref<64x48xf32, #tpu.memory_space<vmem>>, %arg5: memref<1x64xf32, #tpu.memory_space<vmem>>, %arg6: memref<64x10xf32, #tpu.memory_space<vmem>>, %arg7: memref<1x1024xf32, #tpu.memory_space<vmem>>) attributes {dimension_semantics = [#tpu.dimension_semantics<parallel>], iteration_bounds = array<i64: 1>, scalar_prefetch = 0 : i64, scratch_operands = 0 : i64, tpu.core_type = #tpu.core_type<tc>, window_params = [{transform_indices = @transform_0, window_bounds = array<i64: 1024, 16>}, {pipeline_mode = #tpu.pipeline_mode<synchronous>, transform_indices = @transform_1, window_bounds = array<i64: 128, 16>}, {pipeline_mode = #tpu.pipeline_mode<synchronous>, transform_indices = @transform_2, window_bounds = array<i64: 48, 64>}, {pipeline_mode = #tpu.pipeline_mode<synchronous>, transform_indices = @transform_3, window_bounds = array<i64: 64, 48>}, {pipeline_mode = #tpu.pipeline_mode<synchronous>, transform_indices = @transform_4, window_bounds = array<i64: 1, 64>}, {pipeline_mode = #tpu.pipeline_mode<synchronous>, transform_indices = @transform_5, window_bounds = array<i64: 64, 10>}, {transform_indices = @transform_6, window_bounds = array<i64: 1, 1024>}]} {
    %c0 = arith.constant 0 : index
    %c0_0 = arith.constant 0 : index
    %0 = vector.load %arg1[%c0, %c0_0] : memref<1024x16xf32, #tpu.memory_space<vmem>>, vector<1024x16xf32>
    %c0_1 = arith.constant 0 : index
    %c0_2 = arith.constant 0 : index
    %1 = vector.load %arg2[%c0_1, %c0_2] : memref<128x16xf32, #tpu.memory_space<vmem>>, vector<128x16xf32>
    %cst = arith.constant dense<0.000000e+00> : vector<128x1024xf32>
    %2 = tpu.matmul %1, %0, %cst {dimension_numbers = #tpu.dot_dimension_numbers<[1], [1], [0], [0], [0, 0, 1, 0], [], []>} : vector<128x16xf32>, vector<1024x16xf32>, vector<128x1024xf32> -> vector<128x1024xf32>
    %3 = vector.extract_strided_slice %2 {offsets = [64, 0], sizes = [64, 1024], strides = [1, 1]} : vector<128x1024xf32> to vector<64x1024xf32>
    %4 = vector.extract_strided_slice %2 {offsets = [0, 0], sizes = [64, 1024], strides = [1, 1]} : vector<128x1024xf32> to vector<64x1024xf32>
    %c0_3 = arith.constant 0 : index
    %c0_4 = arith.constant 0 : index
    %5 = vector.load %arg6[%c0_3, %c0_4] : memref<64x10xf32, #tpu.memory_space<vmem>>, vector<64x1xf32>
    %6 = vector.broadcast %5 : vector<64x1xf32> to vector<64x1024xf32>
    %7 = arith.addf %4, %6 : vector<64x1024xf32>
    %c0_5 = arith.constant 0 : index
    %c1 = arith.constant 1 : index
    %8 = vector.load %arg6[%c0_5, %c1] : memref<64x10xf32, #tpu.memory_space<vmem>>, vector<64x1xf32>
    %c0_6 = arith.constant 0 : index
    %c2 = arith.constant 2 : index
    %9 = vector.load %arg6[%c0_6, %c2] : memref<64x10xf32, #tpu.memory_space<vmem>>, vector<64x1xf32>
    %cst_7 = arith.constant dense<0.000000e+00> : vector<1024xf32>
    %10 = vector.multi_reduction <add>, %7, %cst_7 [0] : vector<64x1024xf32> to vector<1024xf32>
    %11 = vector.shape_cast %10 : vector<1024xf32> to vector<1x1024xf32>
    %cst_8 = arith.constant 6.400000e+01 : f32
    %12 = vector.broadcast %cst_8 : f32 to vector<1x1024xf32>
    %13 = arith.divf %11, %12 : vector<1x1024xf32>
    %14 = arith.mulf %7, %7 : vector<64x1024xf32>
    %cst_9 = arith.constant dense<0.000000e+00> : vector<1024xf32>
    %15 = vector.multi_reduction <add>, %14, %cst_9 [0] : vector<64x1024xf32> to vector<1024xf32>
    %16 = vector.shape_cast %15 : vector<1024xf32> to vector<1x1024xf32>
    %cst_10 = arith.constant 6.400000e+01 : f32
    %17 = vector.broadcast %cst_10 : f32 to vector<1x1024xf32>
    %18 = arith.divf %16, %17 : vector<1x1024xf32>
    %19 = arith.mulf %13, %13 : vector<1x1024xf32>
    %20 = arith.subf %18, %19 : vector<1x1024xf32>
    %21 = vector.broadcast %13 : vector<1x1024xf32> to vector<64x1024xf32>
    %22 = arith.subf %7, %21 : vector<64x1024xf32>
    %cst_11 = arith.constant 9.99999974E-6 : f32
    %23 = vector.broadcast %cst_11 : f32 to vector<1x1024xf32>
    %24 = arith.addf %20, %23 : vector<1x1024xf32>
    %25 = math.rsqrt %24 : vector<1x1024xf32>
    %26 = vector.broadcast %25 : vector<1x1024xf32> to vector<64x1024xf32>
    %27 = arith.mulf %22, %26 : vector<64x1024xf32>
    %28 = vector.broadcast %8 : vector<64x1xf32> to vector<64x1024xf32>
    %29 = arith.mulf %27, %28 : vector<64x1024xf32>
    %30 = vector.broadcast %9 : vector<64x1xf32> to vector<64x1024xf32>
    %31 = arith.addf %29, %30 : vector<64x1024xf32>
    %cst_12 = arith.constant 0.000000e+00 : f32
    %32 = vector.broadcast %cst_12 : f32 to vector<64x1024xf32>
    %33 = arith.maximumf %31, %32 : vector<64x1024xf32>
    %c0_13 = arith.constant 0 : index
    %c0_14 = arith.constant 0 : index
    %34 = vector.load %arg3[%c0_13, %c0_14] : memref<48x64xf32, #tpu.memory_space<vmem>>, vector<48x64xf32>
    %cst_15 = arith.constant dense<0.000000e+00> : vector<48x1024xf32>
    %35 = tpu.matmul %34, %33, %cst_15 {dimension_numbers = #tpu.dot_dimension_numbers<[1], [0], [0], [1], [0, 0, 1, 1], [], []>} : vector<48x64xf32>, vector<64x1024xf32>, vector<48x1024xf32> -> vector<48x1024xf32>
    %c0_16 = arith.constant 0 : index
    %c3 = arith.constant 3 : index
    %36 = vector.load %arg6[%c0_16, %c3] : memref<64x10xf32, #tpu.memory_space<vmem>>, vector<48x1xf32>
    %37 = vector.broadcast %36 : vector<48x1xf32> to vector<48x1024xf32>
    %38 = arith.addf %35, %37 : vector<48x1024xf32>
    %c0_17 = arith.constant 0 : index
    %c4 = arith.constant 4 : index
    %39 = vector.load %arg6[%c0_17, %c4] : memref<64x10xf32, #tpu.memory_space<vmem>>, vector<48x1xf32>
    %c0_18 = arith.constant 0 : index
    %c5 = arith.constant 5 : index
    %40 = vector.load %arg6[%c0_18, %c5] : memref<64x10xf32, #tpu.memory_space<vmem>>, vector<48x1xf32>
    %cst_19 = arith.constant dense<0.000000e+00> : vector<1024xf32>
    %41 = vector.multi_reduction <add>, %38, %cst_19 [0] : vector<48x1024xf32> to vector<1024xf32>
    %42 = vector.shape_cast %41 : vector<1024xf32> to vector<1x1024xf32>
    %cst_20 = arith.constant 4.800000e+01 : f32
    %43 = vector.broadcast %cst_20 : f32 to vector<1x1024xf32>
    %44 = arith.divf %42, %43 : vector<1x1024xf32>
    %45 = arith.mulf %38, %38 : vector<48x1024xf32>
    %cst_21 = arith.constant dense<0.000000e+00> : vector<1024xf32>
    %46 = vector.multi_reduction <add>, %45, %cst_21 [0] : vector<48x1024xf32> to vector<1024xf32>
    %47 = vector.shape_cast %46 : vector<1024xf32> to vector<1x1024xf32>
    %cst_22 = arith.constant 4.800000e+01 : f32
    %48 = vector.broadcast %cst_22 : f32 to vector<1x1024xf32>
    %49 = arith.divf %47, %48 : vector<1x1024xf32>
    %50 = arith.mulf %44, %44 : vector<1x1024xf32>
    %51 = arith.subf %49, %50 : vector<1x1024xf32>
    %52 = vector.broadcast %44 : vector<1x1024xf32> to vector<48x1024xf32>
    %53 = arith.subf %38, %52 : vector<48x1024xf32>
    %cst_23 = arith.constant 9.99999974E-6 : f32
    %54 = vector.broadcast %cst_23 : f32 to vector<1x1024xf32>
    %55 = arith.addf %51, %54 : vector<1x1024xf32>
    %56 = math.rsqrt %55 : vector<1x1024xf32>
    %57 = vector.broadcast %56 : vector<1x1024xf32> to vector<48x1024xf32>
    %58 = arith.mulf %53, %57 : vector<48x1024xf32>
    %59 = vector.broadcast %39 : vector<48x1xf32> to vector<48x1024xf32>
    %60 = arith.mulf %58, %59 : vector<48x1024xf32>
    %61 = vector.broadcast %40 : vector<48x1xf32> to vector<48x1024xf32>
    %62 = arith.addf %60, %61 : vector<48x1024xf32>
    %cst_24 = arith.constant 0.000000e+00 : f32
    %63 = vector.broadcast %cst_24 : f32 to vector<48x1024xf32>
    %64 = arith.maximumf %62, %63 : vector<48x1024xf32>
    %c0_25 = arith.constant 0 : index
    %c0_26 = arith.constant 0 : index
    %65 = vector.load %arg4[%c0_25, %c0_26] : memref<64x48xf32, #tpu.memory_space<vmem>>, vector<64x48xf32>
    %cst_27 = arith.constant dense<0.000000e+00> : vector<64x1024xf32>
    %66 = tpu.matmul %65, %64, %cst_27 {dimension_numbers = #tpu.dot_dimension_numbers<[1], [0], [0], [1], [0, 0, 1, 1], [], []>} : vector<64x48xf32>, vector<48x1024xf32>, vector<64x1024xf32> -> vector<64x1024xf32>
    %67 = arith.addf %66, %3 : vector<64x1024xf32>
    %c0_28 = arith.constant 0 : index
    %c6 = arith.constant 6 : index
    %68 = vector.load %arg6[%c0_28, %c6] : memref<64x10xf32, #tpu.memory_space<vmem>>, vector<64x1xf32>
    %69 = vector.broadcast %68 : vector<64x1xf32> to vector<64x1024xf32>
    %70 = arith.addf %67, %69 : vector<64x1024xf32>
    %c0_29 = arith.constant 0 : index
    %c7 = arith.constant 7 : index
    %71 = vector.load %arg6[%c0_29, %c7] : memref<64x10xf32, #tpu.memory_space<vmem>>, vector<64x1xf32>
    %c0_30 = arith.constant 0 : index
    %c8 = arith.constant 8 : index
    %72 = vector.load %arg6[%c0_30, %c8] : memref<64x10xf32, #tpu.memory_space<vmem>>, vector<64x1xf32>
    %cst_31 = arith.constant dense<0.000000e+00> : vector<1024xf32>
    %73 = vector.multi_reduction <add>, %70, %cst_31 [0] : vector<64x1024xf32> to vector<1024xf32>
    %74 = vector.shape_cast %73 : vector<1024xf32> to vector<1x1024xf32>
    %cst_32 = arith.constant 6.400000e+01 : f32
    %75 = vector.broadcast %cst_32 : f32 to vector<1x1024xf32>
    %76 = arith.divf %74, %75 : vector<1x1024xf32>
    %77 = arith.mulf %70, %70 : vector<64x1024xf32>
    %cst_33 = arith.constant dense<0.000000e+00> : vector<1024xf32>
    %78 = vector.multi_reduction <add>, %77, %cst_33 [0] : vector<64x1024xf32> to vector<1024xf32>
    %79 = vector.shape_cast %78 : vector<1024xf32> to vector<1x1024xf32>
    %cst_34 = arith.constant 6.400000e+01 : f32
    %80 = vector.broadcast %cst_34 : f32 to vector<1x1024xf32>
    %81 = arith.divf %79, %80 : vector<1x1024xf32>
    %82 = arith.mulf %76, %76 : vector<1x1024xf32>
    %83 = arith.subf %81, %82 : vector<1x1024xf32>
    %84 = vector.broadcast %76 : vector<1x1024xf32> to vector<64x1024xf32>
    %85 = arith.subf %70, %84 : vector<64x1024xf32>
    %cst_35 = arith.constant 9.99999974E-6 : f32
    %86 = vector.broadcast %cst_35 : f32 to vector<1x1024xf32>
    %87 = arith.addf %83, %86 : vector<1x1024xf32>
    %88 = math.rsqrt %87 : vector<1x1024xf32>
    %89 = vector.broadcast %88 : vector<1x1024xf32> to vector<64x1024xf32>
    %90 = arith.mulf %85, %89 : vector<64x1024xf32>
    %91 = vector.broadcast %71 : vector<64x1xf32> to vector<64x1024xf32>
    %92 = arith.mulf %90, %91 : vector<64x1024xf32>
    %93 = vector.broadcast %72 : vector<64x1xf32> to vector<64x1024xf32>
    %94 = arith.addf %92, %93 : vector<64x1024xf32>
    %cst_36 = arith.constant 0.000000e+00 : f32
    %95 = vector.broadcast %cst_36 : f32 to vector<64x1024xf32>
    %96 = arith.maximumf %94, %95 : vector<64x1024xf32>
    %c0_37 = arith.constant 0 : index
    %c0_38 = arith.constant 0 : index
    %97 = vector.load %arg5[%c0_37, %c0_38] : memref<1x64xf32, #tpu.memory_space<vmem>>, vector<1x64xf32>
    %cst_39 = arith.constant dense<0.000000e+00> : vector<1x1024xf32>
    %98 = tpu.matmul %97, %96, %cst_39 {dimension_numbers = #tpu.dot_dimension_numbers<[1], [0], [0], [1], [0, 0, 1, 1], [], []>} : vector<1x64xf32>, vector<64x1024xf32>, vector<1x1024xf32> -> vector<1x1024xf32>
    %c0_40 = arith.constant 0 : index
    %c9 = arith.constant 9 : index
    %99 = vector.load %arg6[%c0_40, %c9] : memref<64x10xf32, #tpu.memory_space<vmem>>, vector<1x1xf32>
    %100 = vector.broadcast %99 : vector<1x1xf32> to vector<1x1024xf32>
    %101 = arith.addf %98, %100 : vector<1x1024xf32>
    %102 = math.tanh %101 : vector<1x1024xf32>
    %c0_41 = arith.constant 0 : index
    %c0_42 = arith.constant 0 : index
    %103 = vector.load %arg7[%c0_41, %c0_42] : memref<1x1024xf32, #tpu.memory_space<vmem>>, vector<1x1024xf32>
    tpu.vector_store %arg7[%c0_41, %c0_42], %102 {strides = array<i32>} : memref<1x1024xf32, #tpu.memory_space<vmem>>, vector<1x1024xf32>,
    return
  }
  func.func @transform_0(%arg0: i32) -> (i32, i32) {
    %c0_i32 = arith.constant 0 : i32
    %c0_i32_0 = arith.constant 0 : i32
    return %arg0, %c0_i32 : i32, i32
  }
  func.func @transform_1(%arg0: i32) -> (i32, i32) {
    %c0_i32 = arith.constant 0 : i32
    %c0_i32_0 = arith.constant 0 : i32
    %c0_i32_1 = arith.constant 0 : i32
    return %c0_i32, %c0_i32_0 : i32, i32
  }
  func.func @transform_2(%arg0: i32) -> (i32, i32) {
    %c0_i32 = arith.constant 0 : i32
    %c0_i32_0 = arith.constant 0 : i32
    %c0_i32_1 = arith.constant 0 : i32
    return %c0_i32, %c0_i32_0 : i32, i32
  }
  func.func @transform_3(%arg0: i32) -> (i32, i32) {
    %c0_i32 = arith.constant 0 : i32
    %c0_i32_0 = arith.constant 0 : i32
    %c0_i32_1 = arith.constant 0 : i32
    return %c0_i32, %c0_i32_0 : i32, i32
  }
  func.func @transform_4(%arg0: i32) -> (i32, i32) {
    %c0_i32 = arith.constant 0 : i32
    %c0_i32_0 = arith.constant 0 : i32
    %c0_i32_1 = arith.constant 0 : i32
    return %c0_i32, %c0_i32_0 : i32, i32
  }
  func.func @transform_5(%arg0: i32) -> (i32, i32) {
    %c0_i32 = arith.constant 0 : i32
    %c0_i32_0 = arith.constant 0 : i32
    %c0_i32_1 = arith.constant 0 : i32
    return %c0_i32, %c0_i32_0 : i32, i32
  }
  func.func @transform_6(%arg0: i32) -> (i32, i32) {
    %c0_i32 = arith.constant 0 : i32
    %c0_i32_0 = arith.constant 0 : i32
    return %c0_i32, %arg0 : i32, i32
  }
}

</mosaic_0001>

<bundles_post_ra>
// kernel: tpu_custom_call.1
= control target key start
LH: loop header
LB: loop body
LE: loop exit
PB: predicated region body
PF: predicated region fallthrough
CT: control target
= control target key end

     0   :  { %vm168_vm0 = vcmask 130048   ;;  %s9449_s0 = inlined_call_operand.vmem [shape: f32[1000,16], index: 0, kind: input, shape index: {}]   ;;  %s9450_s1 = inlined_call_operand.vmem [shape: f32[128,16], index: 1, kind: input, shape index: {}]   ;;  %s9451_s2 = inlined_call_operand.vmem [shape: f32[48,64], index: 2, kind: input, shape index: {}]   ;;  %s9452_s3 = inlined_call_operand.vmem [shape: f32[64,48], index: 3, kind: input, shape index: {}]   ;;  %s9453_s4 = inlined_call_operand.vmem [shape: f32[1,64], index: 4, kind: input, shape index: {}]   ;;  %s9454_s5 = inlined_call_operand.vmem [shape: f32[64,10], index: 5, kind: input, shape index: {}]   ;;  %s9455_s6 = inlined_call_operand.hbm [shape: f32[1,1024], index: 6, kind: output, shape index: {}]  }
   0x1   :  { %v39_v0 = vld [vmem:[%s9449_s0 + $0x78] sm:$0xff]  ;;  %v38_v4 = vld [vmem:[%s9449_s0 + $0x70] sm:$0xff]  ;;  %v37_v8 = vld [vmem:[%s9449_s0 + $0x68] sm:$0xff] }
   0x2   :  { %v55_v1 = vld [vmem:[%s9449_s0 + $0xf8] sm:$0xff]  ;;  %4454 = vmatpush.xpose.msk.msra.mxu0 %vm168_vm0, %v39_v0  ;;  %v54_v5 = vld [vmem:[%s9449_s0 + $0xf0] sm:$0xff]  ;;  %v53_v9 = vld [vmem:[%s9449_s0 + $0xe8] sm:$0xff] }
   0x3   :  { %v71_v2 = vld [vmem:[%s9449_s0 + $0x178] sm:$0xff]  ;;  %4486 = vmatpush.xpose.msk.msra.mxu1 %vm168_vm0, %v55_v1  ;;  %v70_v6 = vld [vmem:[%s9449_s0 + $0x170] sm:$0xff]  ;;  %v69_v10 = vld [vmem:[%s9449_s0 + $0x168] sm:$0xff] }
   0x4   :  { %v87_v3 = vld [vmem:[%s9449_s0 + $0x1f8] sm:$0xff]  ;;  %4518 = vmatpush.xpose.msk.msra.mxu2 %vm168_vm0, %v71_v2  ;;  %v86_v7 = vld [vmem:[%s9449_s0 + $0x1f0] sm:$0xff]  ;;  %v85_v11 = vld [vmem:[%s9449_s0 + $0x1e8] sm:$0xff] }
   0x5   :  { %4550 = vmatpush.xpose.msk.msra.mxu3 %vm168_vm0, %v87_v3  ;;  %v36_v12 = vld [vmem:[%s9449_s0 + $0x60] sm:$0xff]  ;;  %v35_v16 = vld [vmem:[%s9449_s0 + $0x58] sm:$0xff] }
   0x6   :  { %4455 = vmatpush.xpose.msk.msra.mxu0 %vm168_vm0, %v38_v4  ;;  %v52_v13 = vld [vmem:[%s9449_s0 + $0xe0] sm:$0xff]  ;;  %v51_v17 = vld [vmem:[%s9449_s0 + $0xd8] sm:$0xff] }
   0x7   :  { %4487 = vmatpush.xpose.msk.msra.mxu1 %vm168_vm0, %v54_v5  ;;  %v68_v14 = vld [vmem:[%s9449_s0 + $0x160] sm:$0xff]  ;;  %v67_v18 = vld [vmem:[%s9449_s0 + $0x158] sm:$0xff] }
   0x8   :  { %4519 = vmatpush.xpose.msk.msra.mxu2 %vm168_vm0, %v70_v6  ;;  %v84_v15 = vld [vmem:[%s9449_s0 + $0x1e0] sm:$0xff]  ;;  %v83_v19 = vld [vmem:[%s9449_s0 + $0x1d8] sm:$0xff] }
   0x9   :  { %4551 = vmatpush.xpose.msk.msra.mxu3 %vm168_vm0, %v86_v7 }
   0xa   :  { %4456 = vmatpush.xpose.msk.msra.mxu0 %vm168_vm0, %v37_v8 }
   0xb   :  { %4488 = vmatpush.xpose.msk.msra.mxu1 %vm168_vm0, %v53_v9 }
   0xc   :  { %4520 = vmatpush.xpose.msk.msra.mxu2 %vm168_vm0, %v69_v10 }
   0xd   :  { %4552 = vmatpush.xpose.msk.msra.mxu3 %vm168_vm0, %v85_v11 }
   0xe   :  { %4457 = vmatpush.xpose.msk.msra.mxu0 %vm168_vm0, %v36_v12 }
   0xf   :  { %4489 = vmatpush.xpose.msk.msra.mxu1 %vm168_vm0, %v52_v13 }
  0x10   :  { %4521 = vmatpush.xpose.msk.msra.mxu2 %vm168_vm0, %v68_v14 }
  0x11   :  { %4553 = vmatpush.xpose.msk.msra.mxu3 %vm168_vm0, %v84_v15 }
  0x12   :  { %11 = vsyncpa [#allocation3], 0  ;;  %4458 = vmatpush.xpose.msk.msra.mxu0 %vm168_vm0, %v35_v16  ;;  %v34_v20 = vld [vmem:[%s9449_s0 + $0x50] sm:$0xff]  ;;  %v33_v24 = vld [vmem:[%s9449_s0 + $0x48] sm:$0xff]  ;;  %v4995_v48 = vmov 0   ;;  %vm2058_vm14 = vcmask 523264  }
  0x13   :  { %4490 = vmatpush.xpose.msk.msra.mxu1 %vm168_vm0, %v51_v17  ;;  %v50_v21 = vld [vmem:[%s9449_s0 + $0xd0] sm:$0xff]  ;;  %v49_v25 = vld [vmem:[%s9449_s0 + $0xc8] sm:$0xff]  ;;  %v32_v28 = vld [vmem:[%s9449_s0 + $0x40] sm:$0xff]  ;;  %4843 = vset.pattern.permute.xlu0 %v4995_v48  ;;  %s4445_s16 = sshll.u32 %s9455_s6, 4  ;;  %s4446_s16 = int_to_ptr.hbm [resolvable:$true] %s4445_s16 }
  0x14   :  { %4522 = vmatpush.xpose.msk.msra.mxu2 %vm168_vm0, %v67_v18  ;;  %v66_v22 = vld [vmem:[%s9449_s0 + $0x150] sm:$0xff]  ;;  %v65_v26 = vld [vmem:[%s9449_s0 + $0x148] sm:$0xff]  ;;  %v48_v29 = vld [vmem:[%s9449_s0 + $0xc0] sm:$0xff]  ;;  %4844 = vset.pattern.permute.xlu1 %v4995_v48 }
  0x15   :  { %4554 = vmatpush.xpose.msk.msra.mxu3 %vm168_vm0, %v83_v19  ;;  %v82_v23 = vld [vmem:[%s9449_s0 + $0x1d0] sm:$0xff]  ;;  %v81_v27 = vld [vmem:[%s9449_s0 + $0x1c8] sm:$0xff]  ;;  %v64_v30 = vld [vmem:[%s9449_s0 + $0x140] sm:$0xff]  ;;  %4845 = vset.pattern.permute.xlu2 %v4995_v48 }
  0x16   :  { %4459 = vmatpush.xpose.msk.msra.mxu0 %vm168_vm0, %v34_v20  ;;  %v80_v31 = vld [vmem:[%s9449_s0 + $0x1c0] sm:$0xff]  ;;  %v31_v32 = vld [vmem:[%s9449_s0 + $0x38] sm:$0xff]  ;;  %v30_v36 = vld [vmem:[%s9449_s0 + $0x30] sm:$0xff] }
  0x17   :  { %4491 = vmatpush.xpose.msk.msra.mxu1 %vm168_vm0, %v50_v21  ;;  %v47_v33 = vld [vmem:[%s9449_s0 + $0xb8] sm:$0xff]  ;;  %v46_v37 = vld [vmem:[%s9449_s0 + $0xb0] sm:$0xff]  ;;  %v29_v40 = vld [vmem:[%s9449_s0 + $0x28] sm:$0xff] }
  0x18   :  { %4523 = vmatpush.xpose.msk.msra.mxu2 %vm168_vm0, %v66_v22  ;;  %v63_v34 = vld [vmem:[%s9449_s0 + $0x138] sm:$0xff]  ;;  %v62_v38 = vld [vmem:[%s9449_s0 + $0x130] sm:$0xff]  ;;  %v45_v41 = vld [vmem:[%s9449_s0 + $0xa8] sm:$0xff] }
  0x19   :  { %4555 = vmatpush.xpose.msk.msra.mxu3 %vm168_vm0, %v82_v23  ;;  %v79_v35 = vld [vmem:[%s9449_s0 + $0x1b8] sm:$0xff]  ;;  %v78_v39 = vld [vmem:[%s9449_s0 + $0x1b0] sm:$0xff]  ;;  %v61_v42 = vld [vmem:[%s9449_s0 + $0x128] sm:$0xff]  ;;  %v4996_v23 = vmov 2  }
  0x1a   :  { %4460 = vmatpush.xpose.msk.msra.mxu0 %vm168_vm0, %v33_v24  ;;  %v77_v43 = vld [vmem:[%s9449_s0 + $0x1a8] sm:$0xff]  ;;  %v28_v44 = vld [vmem:[%s9449_s0 + $0x20] sm:$0xff]  ;;  %v27_v49 = vld [vmem:[%s9449_s0 + $0x18] sm:$0xff] }
  0x1b   :  { %4492 = vmatpush.xpose.msk.msra.mxu1 %vm168_vm0, %v49_v25  ;;  %v44_v45 = vld [vmem:[%s9449_s0 + $0xa0] sm:$0xff]  ;;  %v43_v50 = vld [vmem:[%s9449_s0 + $0x98] sm:$0xff]  ;;  %v26_v54 = vld [vmem:[%s9449_s0 + $0x10] sm:$0xff] }
  0x1c   :  { %4524 = vmatpush.xpose.msk.msra.mxu2 %vm168_vm0, %v65_v26  ;;  %v60_v46 = vld [vmem:[%s9449_s0 + $0x120] sm:$0xff]  ;;  %v59_v51 = vld [vmem:[%s9449_s0 + $0x118] sm:$0xff]  ;;  %v42_v55 = vld [vmem:[%s9449_s0 + $0x90] sm:$0xff] }
  0x1d   :  { %4556 = vmatpush.xpose.msk.msra.mxu3 %vm168_vm0, %v81_v27  ;;  %v76_v47 = vld [vmem:[%s9449_s0 + $0x1a0] sm:$0xff]  ;;  %v75_v52 = vld [vmem:[%s9449_s0 + $0x198] sm:$0xff]  ;;  %v58_v56 = vld [vmem:[%s9449_s0 + $0x110] sm:$0xff] }
  0x1e   :  { %4461 = vmatpush.xpose.msk.msra.mxu0 %vm168_vm0, %v32_v28  ;;  %v5252_v53 = vld [vmem:[%s9454_s5] sm:$0xff]  ;;  %v74_v57 = vld [vmem:[%s9449_s0 + $0x190] sm:$0xff]  ;;  %v25_v58 = vld [vmem:[%s9449_s0 + $0x8] sm:$0xff] }
  0x1f   :  { %4493 = vmatpush.xpose.msk.msra.mxu1 %vm168_vm0, %v48_v29  ;;  %1131 = vperm.xlu0 %4843, %v5252_v53   ;;  %v41_v59 = vld [vmem:[%s9449_s0 + $0x88] sm:$0xff]  ;;  %v5295_v63 = vld [vmem:[%s9454_s5 + $0x10] sm:$0xff]  ;;  %v24_v0 = vld [vmem:[%s9449_s0] sm:$0xff] }
  0x20   :  { %4525 = vmatpush.xpose.msk.msra.mxu2 %vm168_vm0, %v64_v30  ;;  %v57_v60 = vld [vmem:[%s9449_s0 + $0x108] sm:$0xff]  ;;  %v40_v1 = vld [vmem:[%s9449_s0 + $0x80] sm:$0xff]  ;;  %1141 = vperm.xlu1 %4844, %v5295_v63   ;;  %v5333_v5 = vld [vmem:[%s9454_s5 + $0x18] sm:$0xff] }
  0x21   :  { %4557 = vmatpush.xpose.msk.msra.mxu3 %vm168_vm0, %v80_v31  ;;  %v73_v61 = vld [vmem:[%s9449_s0 + $0x188] sm:$0xff]  ;;  %v56_v2 = vld [vmem:[%s9449_s0 + $0x100] sm:$0xff]  ;;  %v5352_v7 = vld [vmem:[%s9450_s1 + $0x10] sm:$0xff] }
  0x22   :  { %4462 = vmatpush.xpose.msk.msra.mxu0 %vm168_vm0, %v31_v32  ;;  %v5290_v62 = vld [vmem:[%s9454_s5 + $0x8] sm:$0xff]  ;;  %v72_v3 = vld [vmem:[%s9449_s0 + $0x180] sm:$0xff]  ;;  %v135_v8 = vld [vmem:[%s9449_s0 + $0x378] sm:$0xff] }
  0x23   :  { %4494 = vmatpush.xpose.msk.msra.mxu1 %vm168_vm0, %v47_v33  ;;  %v5318_v4 = vld [vmem:[%s9450_s1] sm:$0xff]  ;;  %v5339_v6 = vld [vmem:[%s9450_s1 + $0x8] sm:$0xff]  ;;  %v151_v9 = vld [vmem:[%s9449_s0 + $0x3f8] sm:$0xff] }
  0x24   :  { %4526 = vmatpush.xpose.msk.msra.mxu2 %vm168_vm0, %v63_v34  ;;  %v5373_v10 = vld [vmem:[%s9450_s1 + $0x18] sm:$0xff]  ;;  %v5386_v11 = vld [vmem:[%s9454_s5 + $0x30] sm:$0xff]  ;;  %v5406_v15 = vld [vmem:[%s9450_s1 + $0x20] sm:$0xff] }
  0x25   :  { %4558 = vmatpush.xpose.msk.msra.mxu3 %vm168_vm0, %v79_v35  ;;  %v5391_v12 = vld [vmem:[%s9454_s5 + $0x38] sm:$0xff]  ;;  %v134_v13 = vld [vmem:[%s9449_s0 + $0x370] sm:$0xff]  ;;  %v5425_v18 = vld [vmem:[%s9454_s5 + $0x20] sm:$0xff] }
  0x26   :  { %4463 = vmatpush.xpose.msk.msra.mxu0 %vm168_vm0, %v30_v36  ;;  %v150_v14 = vld [vmem:[%s9449_s0 + $0x3f0] sm:$0xff]  ;;  %v103_v16 = vld [vmem:[%s9449_s0 + $0x278] sm:$0xff]  ;;  %v133_v19 = vld [vmem:[%s9449_s0 + $0x368] sm:$0xff]  ;;  %1151 = vperm.xlu2 %4845, %v5425_v18  }
  0x27   :  { %4495 = vmatpush.xpose.msk.msra.mxu1 %vm168_vm0, %v46_v37  ;;  %1136 = vperm.xlu0 %4843, %v5290_v62   ;;  %v119_v17 = vld [vmem:[%s9449_s0 + $0x2f8] sm:$0xff]  ;;  %v102_v20 = vld [vmem:[%s9449_s0 + $0x270] sm:$0xff]  ;;  %v149_v22 = vld [vmem:[%s9449_s0 + $0x3e8] sm:$0xff] }
  0x28   :  { %4527 = vmatpush.xpose.msk.msra.mxu2 %vm168_vm0, %v62_v38  ;;  %1146 = vperm.xlu1 %4844, %v5333_v5   ;;  %v118_v21 = vld [vmem:[%s9449_s0 + $0x2f0] sm:$0xff]  ;;  %v5448_v24 = vld [vmem:[%s9450_s1 + $0x28] sm:$0xff]  ;;  %v132_v28 = vld [vmem:[%s9449_s0 + $0x360] sm:$0xff] }
  0x29   :  { %4559 = vmatpush.xpose.msk.msra.mxu3 %vm168_vm0, %v78_v39  ;;  %v101_v25 = vld [vmem:[%s9449_s0 + $0x268] sm:$0xff]  ;;  %v100_v29 = vld [vmem:[%s9449_s0 + $0x260] sm:$0xff]  ;;  %v5492_v32 = vld [vmem:[%s9450_s1 + $0x30] sm:$0xff]  ;;  %v4997_v39 = vmov 1  }
  0x2a   :  { %4464 = vmatpush.xpose.msk.msra.mxu0 %vm168_vm0, %v29_v40  ;;  %v117_v26 = vld [vmem:[%s9449_s0 + $0x2e8] sm:$0xff]  ;;  %v116_v30 = vld [vmem:[%s9449_s0 + $0x2e0] sm:$0xff]  ;;  %v99_v33 = vld [vmem:[%s9449_s0 + $0x258] sm:$0xff] }
  0x2b   :  { %4496 = vmatpush.xpose.msk.msra.mxu1 %vm168_vm0, %v45_v41  ;;  %v5470_v27 = vld [vmem:[%s9454_s5 + $0x28] sm:$0xff]  ;;  %v148_v31 = vld [vmem:[%s9449_s0 + $0x3e0] sm:$0xff]  ;;  %v115_v34 = vld [vmem:[%s9449_s0 + $0x2d8] sm:$0xff] }
  0x2c   :  { %4528 = vmatpush.xpose.msk.msra.mxu2 %vm168_vm0, %v61_v42  ;;  %v131_v35 = vld [vmem:[%s9449_s0 + $0x358] sm:$0xff]  ;;  %v98_v37 = vld [vmem:[%s9449_s0 + $0x250] sm:$0xff]  ;;  %v112_v48 = vld [vmem:[%s9449_s0 + $0x2c0] sm:$0xff] }
  0x2d   :  { %4560 = vmatpush.xpose.msk.msra.mxu3 %vm168_vm0, %v77_v43  ;;  %v147_v36 = vld [vmem:[%s9449_s0 + $0x3d8] sm:$0xff]  ;;  %v114_v38 = vld [vmem:[%s9449_s0 + $0x2d0] sm:$0xff]  ;;  %v97_v43 = vld [vmem:[%s9449_s0 + $0x248] sm:$0xff] }
  0x2e   :  { %4465 = vmatpush.xpose.msk.msra.mxu0 %vm168_vm0, %v28_v44  ;;  %1156 = vperm.xlu2 %4845, %v5470_v27   ;;  %v130_v40 = vld [vmem:[%s9449_s0 + $0x350] sm:$0xff]  ;;  %v5538_v42 = vld [vmem:[%s9450_s1 + $0x38] sm:$0xff]  ;;  %v113_v44 = vld [vmem:[%s9449_s0 + $0x2c8] sm:$0xff] }
  0x2f   :  { %4497 = vmatpush.xpose.msk.msra.mxu1 %vm168_vm0, %v44_v45  ;;  %1161 = vperm.xlu0 %4843, %v5386_v11   ;;  %v146_v41 = vld [vmem:[%s9449_s0 + $0x3d0] sm:$0xff]  ;;  %v129_v45 = vld [vmem:[%s9449_s0 + $0x348] sm:$0xff] }
  0x30   :  { %4529 = vmatpush.xpose.msk.msra.mxu2 %vm168_vm0, %v60_v46  ;;  %1166 = vperm.xlu1 %4844, %v5391_v12   ;;  %v145_v46 = vld [vmem:[%s9449_s0 + $0x3c8] sm:$0xff] }
  0x31   :  { %4561 = vmatpush.xpose.msk.msra.mxu3 %vm168_vm0, %v76_v47  ;;  %v96_v47 = vld [vmem:[%s9449_s0 + $0x240] sm:$0xff] }
  0x32   :  { %4466 = vmatpush.xpose.msk.msra.mxu0 %vm168_vm0, %v27_v49  ;;  %v128_v49 = vld [vmem:[%s9449_s0 + $0x340] sm:$0xff] }
  0x33   :  { %4498 = vmatpush.xpose.msk.msra.mxu1 %vm168_vm0, %v43_v50  ;;  %v5584_v50 = vld [vmem:[%s9450_s1 + $0x40] sm:$0xff] }
  0x34   :  { %4530 = vmatpush.xpose.msk.msra.mxu2 %vm168_vm0, %v59_v51  ;;  %v144_v51 = vld [vmem:[%s9449_s0 + $0x3c0] sm:$0xff] }
  0x35   :  { %4562 = vmatpush.xpose.msk.msra.mxu3 %vm168_vm0, %v75_v52  ;;  %v95_v52 = vld [vmem:[%s9449_s0 + $0x238] sm:$0xff] }
  0x36   :  { %4467 = vmatpush.xpose.msk.msra.mxu0 %vm168_vm0, %v26_v54  ;;  %4846 = vset.pattern.permute.xlu2 %v4997_v39  ;;  %v111_v54 = vld [vmem:[%s9449_s0 + $0x2b8] sm:$0xff] }
  0x37   :  { %4499 = vmatpush.xpose.msk.msra.mxu1 %vm168_vm0, %v42_v55  ;;  %4847 = vset.pattern.permute.xlu0 %v4997_v39  ;;  %v127_v55 = vld [vmem:[%s9449_s0 + $0x338] sm:$0xff] }
  0x38   :  { %4531 = vmatpush.xpose.msk.msra.mxu2 %vm168_vm0, %v58_v56  ;;  %4848 = vset.pattern.permute.xlu1 %v4996_v23  ;;  %v143_v56 = vld [vmem:[%s9449_s0 + $0x3b8] sm:$0xff] }
  0x39   :  { %4563 = vmatpush.xpose.msk.msra.mxu3 %vm168_vm0, %v74_v57  ;;  %1885 = vperm.xlu1 %4848, %v5391_v12   ;;  %v94_v57 = vld [vmem:[%s9449_s0 + $0x230] sm:$0xff] }
  0x3a   :  { %4468 = vmatpush.xpose.msk.msra.mxu0 %vm168_vm0, %v25_v58  ;;  %1789 = vperm.xlu2 %4846, %v5391_v12   ;;  %v110_v58 = vld [vmem:[%s9449_s0 + $0x2b0] sm:$0xff]  ;;  %v140_v12 = vld [vmem:[%s9449_s0 + $0x3a0] sm:$0xff] }
  0x3b   :  { %4500 = vmatpush.xpose.msk.msra.mxu1 %vm168_vm0, %v41_v59  ;;  %1785 = vperm.xlu0 %4847, %v5386_v11   ;;  %v5628_v59 = vld [vmem:[%s9450_s1 + $0x48] sm:$0xff] }
  0x3c   :  { %4532 = vmatpush.xpose.msk.msra.mxu2 %vm168_vm0, %v57_v60  ;;  %v126_v60 = vld [vmem:[%s9449_s0 + $0x330] sm:$0xff] }
  0x3d   :  { %4564 = vmatpush.xpose.msk.msra.mxu3 %vm168_vm0, %v73_v61  ;;  %v142_v61 = vld [vmem:[%s9449_s0 + $0x3b0] sm:$0xff] }
  0x3e   :  { %4469 = vmatpush.xpose.msk.msra.mxu0 %vm168_vm0, %v24_v0  ;;  %v93_v0 = vld [vmem:[%s9449_s0 + $0x228] sm:$0xff] }
  0x3f   :  { %4501 = vmatpush.xpose.msk.msra.mxu1 %vm168_vm0, %v40_v1  ;;  %v109_v1 = vld [vmem:[%s9449_s0 + $0x2a8] sm:$0xff] }
  0x40   :  { %4533 = vmatpush.xpose.msk.msra.mxu2 %vm168_vm0, %v56_v2  ;;  %v125_v2 = vld [vmem:[%s9449_s0 + $0x328] sm:$0xff] }
  0x41   :  { %4565 = vmatpush.xpose.msk.msra.mxu3 %vm168_vm0, %v72_v3  ;;  %4470 = vmatmul.msk.f32.vlgmr.msra.gmra.mxu0 %vm168_vm0, %v5318_v4  ;;  %v141_v3 = vld [vmem:[%s9449_s0 + $0x3a8] sm:$0xff] }
  0x42   :  { %4502 = vmatmul.msk.f32.vlgmr.msra.gmra.mxu1 %vm168_vm0, %v5318_v4  ;;  %4582 = vmatpush.xpose.msk.msrb.mxu0 %vm168_vm0, %v103_v16  ;;  %v123_v16 = vld [vmem:[%s9449_s0 + $0x318] sm:$0xff] }
  0x43   :  { %4534 = vmatmul.msk.f32.vlgmr.msra.gmra.mxu2 %vm168_vm0, %v5318_v4  ;;  %4614 = vmatpush.xpose.msk.msrb.mxu1 %vm168_vm0, %v119_v17  ;;  %v139_v17 = vld [vmem:[%s9449_s0 + $0x398] sm:$0xff] }
  0x44   :  { %4566 = vmatmul.msk.f32.vlgmr.msra.gmra.mxu3 %vm168_vm0, %v5318_v4  ;;  %4646 = vmatpush.xpose.msk.msrb.mxu2 %vm168_vm0, %v135_v8  ;;  %v92_v8 = vld [vmem:[%s9449_s0 + $0x220] sm:$0xff] }
  0x45   :  { %4678 = vmatpush.xpose.msk.msrb.mxu3 %vm168_vm0, %v151_v9  ;;  %1881 = vperm.xlu1 %4848, %v5386_v11   ;;  %v5673_v9 = vld [vmem:[%s9450_s1 + $0x50] sm:$0xff]  ;;  %v124_v11 = vld [vmem:[%s9449_s0 + $0x320] sm:$0xff] }
  0x46   :  { %4583 = vmatpush.xpose.msk.msrb.mxu0 %vm168_vm0, %v102_v20  ;;  %1781 = vperm.xlu2 %4846, %v5470_v27   ;;  %v122_v20 = vld [vmem:[%s9449_s0 + $0x310] sm:$0xff] }
  0x47   :  { %4615 = vmatpush.xpose.msk.msrb.mxu1 %vm168_vm0, %v118_v21  ;;  %4849 = vset.pattern.permute.xlu0 %v4996_v23  ;;  %v138_v21 = vld [vmem:[%s9449_s0 + $0x390] sm:$0xff] }
  0x48   :  { %4647 = vmatpush.xpose.msk.msrb.mxu2 %vm168_vm0, %v134_v13  ;;  %1877 = vperm.xlu0 %4849, %v5470_v27   ;;  %v91_v13 = vld [vmem:[%s9449_s0 + $0x218] sm:$0xff]  ;;  %v5764_v27 = vld [vmem:[%s9450_s1 + $0x60] sm:$0xff] }
  0x49   :  { %4471 = vmatmul.msk.f32.gmra.mxu0 %vm168_vm0, %v5339_v6  ;;  %4679 = vmatpush.xpose.msk.msrb.mxu3 %vm168_vm0, %v150_v14  ;;  %v107_v14 = vld [vmem:[%s9449_s0 + $0x298] sm:$0xff]  ;;  %9592 = vst [vmem:[#allocation5_spill] sm:$0xff] %v5764_v27 }
  0x4a   :  { %4503 = vmatmul.msk.f32.gmra.mxu1 %vm168_vm0, %v5339_v6  ;;  %4584 = vmatpush.xpose.msk.msrb.mxu0 %vm168_vm0, %v101_v25  ;;  %v121_v25 = vld [vmem:[%s9449_s0 + $0x308] sm:$0xff] }
  0x4b   :  { %4535 = vmatmul.msk.f32.gmra.mxu2 %vm168_vm0, %v5339_v6  ;;  %4616 = vmatpush.xpose.msk.msrb.mxu1 %vm168_vm0, %v117_v26  ;;  %v137_v26 = vld [vmem:[%s9449_s0 + $0x388] sm:$0xff] }
  0x4c   :  { %4567 = vmatmul.msk.f32.gmra.mxu3 %vm168_vm0, %v5339_v6  ;;  %4648 = vmatpush.xpose.msk.msrb.mxu2 %vm168_vm0, %v133_v19  ;;  %v106_v19 = vld [vmem:[%s9449_s0 + $0x290] sm:$0xff] }
  0x4d   :  { %4680 = vmatpush.xpose.msk.msrb.mxu3 %vm168_vm0, %v149_v22  ;;  %4850 = vset.pattern.permute.xlu1 %v4997_v39  ;;  %v105_v22 = vld [vmem:[%s9449_s0 + $0x288] sm:$0xff] }
  0x4e   :  { %4585 = vmatpush.xpose.msk.msrb.mxu0 %vm168_vm0, %v100_v29  ;;  %1773 = vperm.xlu1 %4850, %v5333_v5   ;;  %v104_v29 = vld [vmem:[%s9449_s0 + $0x280] sm:$0xff] }
  0x4f   :  { %4617 = vmatpush.xpose.msk.msrb.mxu1 %vm168_vm0, %v116_v30  ;;  %1777 = vperm.xlu2 %4846, %v5425_v18   ;;  %v120_v30 = vld [vmem:[%s9449_s0 + $0x300] sm:$0xff] }
  0x50   :  { %4649 = vmatpush.xpose.msk.msrb.mxu2 %vm168_vm0, %v132_v28  ;;  %4852 = vset.pattern.permute.xlu0 %v4997_v39  ;;  %v88_v28 = vld [vmem:[%s9449_s0 + $0x200] sm:$0xff] }
  0x51   :  { %4472 = vmatmul.msk.f32.gmra.mxu0 %vm168_vm0, %v5352_v7  ;;  %4681 = vmatpush.xpose.msk.msrb.mxu3 %vm168_vm0, %v148_v31  ;;  %v136_v31 = vld [vmem:[%s9449_s0 + $0x380] sm:$0xff] }
  0x52   :  { %4504 = vmatmul.msk.f32.gmra.mxu1 %vm168_vm0, %v5352_v7  ;;  %4586 = vmatpush.xpose.msk.msrb.mxu0 %vm168_vm0, %v99_v33  ;;  %v5798_v33 = vld [vmem:[%s9450_s1 + $0x68] sm:$0xff] }
  0x53   :  { %4536 = vmatmul.msk.f32.gmra.mxu2 %vm168_vm0, %v5352_v7  ;;  %4618 = vmatpush.xpose.msk.msrb.mxu1 %vm168_vm0, %v115_v34  ;;  %9593 = vst [vmem:[#allocation6_spill] sm:$0xff] %v5798_v33  ;;  %v5812_v34 = vld [vmem:[%s9450_s1 + $0x70] sm:$0xff] }
  0x54   :  { %4568 = vmatmul.msk.f32.gmra.mxu3 %vm168_vm0, %v5352_v7  ;;  %4650 = vmatpush.xpose.msk.msrb.mxu2 %vm168_vm0, %v131_v35  ;;  %9594 = vst [vmem:[#allocation7_spill] sm:$0xff] %v5812_v34  ;;  %v167_v35 = vld [vmem:[%s9450_s1 + $0x78] sm:$0xff] }
  0x55   :  { %4682 = vmatpush.xpose.msk.msrb.mxu3 %vm168_vm0, %v147_v36  ;;  %1765 = vperm.xlu0 %4852, %v5290_v62  }
  0x56   :  { %4587 = vmatpush.xpose.msk.msrb.mxu0 %vm168_vm0, %v98_v37  ;;  %1769 = vperm.xlu1 %4850, %v5295_v63  }
  0x57   :  { %4619 = vmatpush.xpose.msk.msrb.mxu1 %vm168_vm0, %v114_v38  ;;  %4851 = vset.pattern.permute.xlu2 %v4996_v23 }
  0x58   :  { %4651 = vmatpush.xpose.msk.msrb.mxu2 %vm168_vm0, %v130_v40  ;;  %1873 = vperm.xlu2 %4851, %v5425_v18   ;;  %v5719_v18 = vld [vmem:[%s9450_s1 + $0x58] sm:$0xff] }
  0x59   :  { %4473 = vmatmul.msk.f32.gmra.mxu0 %vm168_vm0, %v5373_v10  ;;  %4683 = vmatpush.xpose.msk.msrb.mxu3 %vm168_vm0, %v146_v41 }
  0x5a   :  { %4505 = vmatmul.msk.f32.gmra.mxu1 %vm168_vm0, %v5373_v10  ;;  %4588 = vmatpush.xpose.msk.msrb.mxu0 %vm168_vm0, %v97_v43 }
  0x5b   :  { %4537 = vmatmul.msk.f32.gmra.mxu2 %vm168_vm0, %v5373_v10  ;;  %4620 = vmatpush.xpose.msk.msrb.mxu1 %vm168_vm0, %v113_v44 }
  0x5c   :  { %4569 = vmatmul.msk.f32.gmra.mxu3 %vm168_vm0, %v5373_v10  ;;  %4652 = vmatpush.xpose.msk.msrb.mxu2 %vm168_vm0, %v129_v45 }
  0x5d   :  { %4684 = vmatpush.xpose.msk.msrb.mxu3 %vm168_vm0, %v145_v46 }
  0x5e   :  { %4589 = vmatpush.xpose.msk.msrb.mxu0 %vm168_vm0, %v96_v47  ;;  %4853 = vset.pattern.permute.xlu1 %v4996_v23 }
  0x5f   :  { %4621 = vmatpush.xpose.msk.msrb.mxu1 %vm168_vm0, %v112_v48  ;;  %1865 = vperm.xlu1 %4853, %v5295_v63   ;;  %v108_v63 = vld [vmem:[%s9449_s0 + $0x2a0] sm:$0xff] }
  0x60   :  { %4653 = vmatpush.xpose.msk.msrb.mxu2 %vm168_vm0, %v128_v49  ;;  %1869 = vperm.xlu2 %4851, %v5333_v5   ;;  %v89_v5 = vld [vmem:[%s9449_s0 + $0x208] sm:$0xff] }
  0x61   :  { %4474 = vmatmul.msk.f32.gmra.mxu0 %vm168_vm0, %v5406_v15  ;;  %4685 = vmatpush.xpose.msk.msrb.mxu3 %vm168_vm0, %v144_v51 }
  0x62   :  { %4506 = vmatmul.msk.f32.gmra.mxu1 %vm168_vm0, %v5406_v15  ;;  %4590 = vmatpush.xpose.msk.msrb.mxu0 %vm168_vm0, %v95_v52 }
  0x63   :  { %4538 = vmatmul.msk.f32.gmra.mxu2 %vm168_vm0, %v5406_v15  ;;  %4622 = vmatpush.xpose.msk.msrb.mxu1 %vm168_vm0, %v111_v54 }
  0x64   :  { %4570 = vmatmul.msk.f32.gmra.mxu3 %vm168_vm0, %v5406_v15  ;;  %4654 = vmatpush.xpose.msk.msrb.mxu2 %vm168_vm0, %v127_v55 }
  0x65   :  { %4686 = vmatpush.xpose.msk.msrb.mxu3 %vm168_vm0, %v143_v56 }
  0x66   :  { %4591 = vmatpush.xpose.msk.msrb.mxu0 %vm168_vm0, %v94_v57  ;;  %v4998_v57 = vmov 64.0  }
  0x67   :  { %4623 = vmatpush.xpose.msk.msrb.mxu1 %vm168_vm0, %v110_v58  ;;  %1861 = vperm.xlu1 %4853, %v5290_v62   ;;  %v90_v62 = vld [vmem:[%s9449_s0 + $0x210] sm:$0xff]  ;;  %4881 = vrcp.f32 %v4998_v57 }
  0x68   :  { %4655 = vmatpush.xpose.msk.msrb.mxu2 %vm168_vm0, %v126_v60  ;;  %4854 = vset.pattern.permute.xlu2 %v4997_v39 }
  0x69   :  { %4475 = vmatmul.msk.f32.gmra.mxu0 %vm168_vm0, %v5448_v24  ;;  %4687 = vmatpush.xpose.msk.msrb.mxu3 %vm168_vm0, %v142_v61 }
  0x6a   :  { %4507 = vmatmul.msk.f32.gmra.mxu1 %vm168_vm0, %v5448_v24  ;;  %4592 = vmatpush.xpose.msk.msrb.mxu0 %vm168_vm0, %v93_v0 }
  0x6b   :  { %4539 = vmatmul.msk.f32.gmra.mxu2 %vm168_vm0, %v5448_v24  ;;  %4624 = vmatpush.xpose.msk.msrb.mxu1 %vm168_vm0, %v109_v1 }
  0x6c   :  { %4571 = vmatmul.msk.f32.gmra.mxu3 %vm168_vm0, %v5448_v24  ;;  %4656 = vmatpush.xpose.msk.msrb.mxu2 %vm168_vm0, %v125_v2 }
  0x6d   :  { %4688 = vmatpush.xpose.msk.msrb.mxu3 %vm168_vm0, %v141_v3  ;;  %1761 = vperm.xlu2 %4854, %v5252_v53  }
  0x6e   :  { %4593 = vmatpush.xpose.msk.msrb.mxu0 %vm168_vm0, %v92_v8 }
  0x6f   :  { %4625 = vmatpush.xpose.msk.msrb.mxu1 %vm168_vm0, %v108_v63 }
  0x70   :  { %4657 = vmatpush.xpose.msk.msrb.mxu2 %vm168_vm0, %v124_v11 }
  0x71   :  { %4476 = vmatmul.msk.f32.gmra.mxu0 %vm168_vm0, %v5492_v32  ;;  %4689 = vmatpush.xpose.msk.msrb.mxu3 %vm168_vm0, %v140_v12 }
  0x72   :  { %4508 = vmatmul.msk.f32.gmra.mxu1 %vm168_vm0, %v5492_v32  ;;  %4594 = vmatpush.xpose.msk.msrb.mxu0 %vm168_vm0, %v91_v13 }
  0x73   :  { %4540 = vmatmul.msk.f32.gmra.mxu2 %vm168_vm0, %v5492_v32  ;;  %4626 = vmatpush.xpose.msk.msrb.mxu1 %vm168_vm0, %v107_v14 }
  0x74   :  { %4572 = vmatmul.msk.f32.gmra.mxu3 %vm168_vm0, %v5492_v32  ;;  %4658 = vmatpush.xpose.msk.msrb.mxu2 %vm168_vm0, %v123_v16 }
  0x75   :  { %4690 = vmatpush.xpose.msk.msrb.mxu3 %vm168_vm0, %v139_v17  ;;  %4855 = vset.pattern.permute.xlu2 %v4996_v23 }
  0x76   :  { %4595 = vmatpush.xpose.msk.msrb.mxu0 %vm168_vm0, %v90_v62  ;;  %1857 = vperm.xlu2 %4855, %v5252_v53   ;;  %v5921_v62 = vpop.eup %4881 }
  0x77   :  { %4627 = vmatpush.xpose.msk.msrb.mxu1 %vm168_vm0, %v106_v19  ;;  %vm1342_vm1 = vweird.f32 %v5921_v62 }
  0x78   :  { %4659 = vmatpush.xpose.msk.msrb.mxu2 %vm168_vm0, %v122_v20 }
  0x79   :  { %4477 = vmatmul.msk.f32.gmra.mxu0 %vm168_vm0, %v5538_v42  ;;  %4691 = vmatpush.xpose.msk.msrb.mxu3 %vm168_vm0, %v138_v21 }
  0x7a   :  { %4509 = vmatmul.msk.f32.gmra.mxu1 %vm168_vm0, %v5538_v42  ;;  %4596 = vmatpush.xpose.msk.msrb.mxu0 %vm168_vm0, %v89_v5 }
  0x7b   :  { %4541 = vmatmul.msk.f32.gmra.mxu2 %vm168_vm0, %v5538_v42  ;;  %4628 = vmatpush.xpose.msk.msrb.mxu1 %vm168_vm0, %v105_v22 }
  0x7c   :  { %4573 = vmatmul.msk.f32.gmra.mxu3 %vm168_vm0, %v5538_v42  ;;  %4660 = vmatpush.xpose.msk.msrb.mxu2 %vm168_vm0, %v121_v25 }
  0x7d   :  { %4692 = vmatpush.xpose.msk.msrb.mxu3 %vm168_vm0, %v137_v26 }
  0x7e   :  { %4597 = vmatpush.xpose.msk.msrb.mxu0 %vm168_vm0, %v88_v28 }
  0x7f   :  { %4629 = vmatpush.xpose.msk.msrb.mxu1 %vm168_vm0, %v104_v29 }
  0x80   :  { %4661 = vmatpush.xpose.msk.msrb.mxu2 %vm168_vm0, %v120_v30  ;;  %v5894_v3 = vpop.permute.xlu2 %1151 }
  0x81   :  { %4478 = vmatmul.msk.f32.gmra.mxu0 %vm168_vm0, %v5584_v50  ;;  %4693 = vmatpush.xpose.msk.msrb.mxu3 %vm168_vm0, %v136_v31  ;;  %9600 = vst [vmem:[#allocation13_spill] sm:$0xff] %v5894_v3 }
  0x82   :  { %4510 = vmatmul.msk.f32.gmra.mxu1 %vm168_vm0, %v5584_v50 }
  0x83   :  { %4542 = vmatmul.msk.f32.gmra.mxu2 %vm168_vm0, %v5584_v50 }
  0x84   :  { %4574 = vmatmul.msk.f32.gmra.mxu3 %vm168_vm0, %v5584_v50 }
  0x89   :  { %4479 = vmatmul.msk.f32.gmra.mxu0 %vm168_vm0, %v5628_v59 }
  0x8a   :  { %4511 = vmatmul.msk.f32.gmra.mxu1 %vm168_vm0, %v5628_v59 }
  0x8b   :  { %4543 = vmatmul.msk.f32.gmra.mxu2 %vm168_vm0, %v5628_v59 }
  0x8c   :  { %4575 = vmatmul.msk.f32.gmra.mxu3 %vm168_vm0, %v5628_v59 }
  0x91   :  { %4480 = vmatmul.msk.f32.gmra.mxu0 %vm168_vm0, %v5673_v9  ;;  %v5847_v44 = vpop.permute.xlu0 %1131 }
  0x92   :  { %4512 = vmatmul.msk.f32.gmra.mxu1 %vm168_vm0, %v5673_v9  ;;  %9595 = vst [vmem:[#allocation8_spill] sm:$0xff] %v5847_v44  ;;  %v5857_v48 = vpop.permute.xlu1 %1141 }
  0x93   :  { %4544 = vmatmul.msk.f32.gmra.mxu2 %vm168_vm0, %v5673_v9  ;;  %9596 = vst [vmem:[#allocation9_spill] sm:$0xff] %v5857_v48 }
  0x94   :  { %4576 = vmatmul.msk.f32.gmra.mxu3 %vm168_vm0, %v5673_v9 }
  0x99   :  { %4481 = vmatmul.msk.f32.gmra.mxu0 %vm168_vm0, %v5719_v18  ;;  %v5863_v49 = vpop.permute.xlu0 %1136 }
  0x9a   :  { %4513 = vmatmul.msk.f32.gmra.mxu1 %vm168_vm0, %v5719_v18  ;;  %9597 = vst [vmem:[#allocation10_spill] sm:$0xff] %v5863_v49  ;;  %v5906_v13 = vpop.permute.xlu1 %1146 }
  0x9b   :  { %4545 = vmatmul.msk.f32.gmra.mxu2 %vm168_vm0, %v5719_v18  ;;  %9602 = vst [vmem:[#allocation15_spill] sm:$0xff] %v5906_v13 }
  0x9c   :  { %4577 = vmatmul.msk.f32.gmra.mxu3 %vm168_vm0, %v5719_v18 }
  0xa1   :  { %4482 = vmatmul.msk.f32.gmra.mxu0 %vm168_vm0, %v5764_v27 }
  0xa2   :  { %4514 = vmatmul.msk.f32.gmra.mxu1 %vm168_vm0, %v5764_v27 }
  0xa3   :  { %4546 = vmatmul.msk.f32.gmra.mxu2 %vm168_vm0, %v5764_v27 }
  0xa4   :  { %4578 = vmatmul.msk.f32.gmra.mxu3 %vm168_vm0, %v5764_v27 }
  0xa9   :  { %4483 = vmatmul.msk.f32.gmra.mxu0 %vm168_vm0, %v5798_v33 }
  0xaa   :  { %4515 = vmatmul.msk.f32.gmra.mxu1 %vm168_vm0, %v5798_v33 }
  0xab   :  { %4547 = vmatmul.msk.f32.gmra.mxu2 %vm168_vm0, %v5798_v33 }
  0xac   :  { %4579 = vmatmul.msk.f32.gmra.mxu3 %vm168_vm0, %v5798_v33 }
  0xb1   :  { %4484 = vmatmul.msk.f32.gmra.mxu0 %vm168_vm0, %v5812_v34 }
  0xb2   :  { %4516 = vmatmul.msk.f32.gmra.mxu1 %vm168_vm0, %v5812_v34 }
  0xb3   :  { %4548 = vmatmul.msk.f32.gmra.mxu2 %vm168_vm0, %v5812_v34 }
  0xb4   :  { %4580 = vmatmul.msk.f32.gmra.mxu3 %vm168_vm0, %v5812_v34 }
  0xb9   :  { %4485 = vmatmul.msk.f32.gmra.mxu0 %vm168_vm0, %v167_v35 }
  0xba   :  { %4517 = vmatmul.msk.f32.gmra.mxu1 %vm168_vm0, %v167_v35 }
  0xbb   :  { %4549 = vmatmul.msk.f32.gmra.mxu2 %vm168_vm0, %v167_v35 }
  0xbc   :  { %4581 = vmatmul.msk.f32.gmra.mxu3 %vm168_vm0, %v167_v35 }
  0xbe   :  { %v618_v53 = vpop.f32.mrf.mxu0 }
  0xbf   :  { %v683_v23 = vpop.f32.mrf.mxu1 }
  0xc0   :  { %v5876_v52 = vadd.f32 %v5847_v44, %v683_v23 }
  0xc1   :  { %4598 = vmatmul.msk.f32.vlgmr.msrb.gmra.mxu0 %vm168_vm0, %v5318_v4 }
  0xc2   :  { %4630 = vmatmul.msk.f32.vlgmr.msrb.gmra.mxu1 %vm168_vm0, %v5318_v4  ;;  %v1353_v8 = vmul.f32 %v5876_v52, %v5876_v52 }
  0xc3   :  { %4662 = vmatmul.msk.f32.vlgmr.msrb.gmra.mxu2 %vm168_vm0, %v5318_v4 }
  0xc4   :  { %4694 = vmatmul.msk.f32.vlgmr.msrb.gmra.mxu3 %vm168_vm0, %v5318_v4 }
  0xc6   :  { %v748_v36 = vpop.f32.mrf.mxu2  ;;  %v621_v38 = vpop.f32.mrf.mxu0 }
  0xc7   :  { %v813_v37 = vpop.f32.mrf.mxu3  ;;  %v686_v39 = vpop.f32.mrf.mxu1  ;;  %v5873_v51 = vadd.f32 %v5863_v49, %v621_v38  ;;  %v5882_v58 = vadd.f32 %v5847_v44, %v748_v36 }
  0xc8   :  { %v5879_v54 = vadd.f32 %v5863_v49, %v686_v39  ;;  %v5892_v2 = vadd.f32 %v5847_v44, %v813_v37 }
  0xc9   :  { %4599 = vmatmul.msk.f32.gmra.mxu0 %vm168_vm0, %v5339_v6  ;;  %9598 = vst [vmem:[#allocation11_spill] sm:$0xff] %v5882_v58  ;;  %v1360_v1 = vmul.f32 %v5873_v51, %v5873_v51  ;;  %v1354_v16 = vmul.f32 %v5882_v58, %v5882_v58 }
  0xca   :  { %4631 = vmatmul.msk.f32.gmra.mxu1 %vm168_vm0, %v5339_v6  ;;  %9599 = vst [vmem:[#allocation12_spill] sm:$0xff] %v5892_v2  ;;  %v1361_v63 = vmul.f32 %v5879_v54, %v5879_v54  ;;  %v1246_v5 = vadd.f32 %v5879_v54, %v5876_v52  ;;  %v1355_v22 = vmul.f32 %v5892_v2, %v5892_v2 }
  0xcb   :  { %4663 = vmatmul.msk.f32.gmra.mxu2 %vm168_vm0, %v5339_v6 }
  0xcc   :  { %4695 = vmatmul.msk.f32.gmra.mxu3 %vm168_vm0, %v5339_v6  ;;  %v1429_v28 = vadd.f32 %v1361_v63, %v1353_v8 }
  0xce   :  { %v751_v40 = vpop.f32.mrf.mxu2  ;;  %v624_v43 = vpop.f32.mrf.mxu0 }
  0xcf   :  { %v816_v41 = vpop.f32.mrf.mxu3  ;;  %v689_v4 = vpop.f32.mrf.mxu1  ;;  %v5885_v61 = vadd.f32 %v5857_v48, %v624_v43  ;;  %v5901_v11 = vadd.f32 %v5863_v49, %v751_v40  ;;  %v1338_v40 = vmul.f32 64.0, %v5921_v62 }
  0xd0   :  { %v5904_v12 = vadd.f32 %v5863_v49, %v816_v41  ;;  %v5909_v14 = vadd.f32 %v5857_v48, %v689_v4 }
  0xd1   :  { %4600 = vmatmul.msk.f32.gmra.mxu0 %vm168_vm0, %v5352_v7  ;;  %v1368_v20 = vmul.f32 %v5885_v61, %v5885_v61  ;;  %v1259_v29 = vadd.f32 %v5901_v11, %v5882_v58  ;;  %v1362_v30 = vmul.f32 %v5901_v11, %v5901_v11 }
  0xd2   :  { %4632 = vmatmul.msk.f32.gmra.mxu1 %vm168_vm0, %v5352_v7  ;;  %9601 = vst [vmem:[#allocation14_spill] sm:$0xff] %v5904_v12  ;;  %v1363_v31 = vmul.f32 %v5904_v12, %v5904_v12  ;;  %v1272_v23 = vadd.f32 %v5904_v12, %v5892_v2 }
  0xd3   :  { %4664 = vmatmul.msk.f32.gmra.mxu2 %vm168_vm0, %v5352_v7 }
  0xd4   :  { %4696 = vmatmul.msk.f32.gmra.mxu3 %vm168_vm0, %v5352_v7  ;;  %v5870_v7 = vadd.f32 %v5847_v44, %v618_v53 }
  0xd6   :  { %v754_v45 = vpop.f32.mrf.mxu2  ;;  %v627_v46 = vpop.f32.mrf.mxu0  ;;  %v1352_v0 = vmul.f32 %v5870_v7, %v5870_v7  ;;  %v1233_v17 = vadd.f32 %v5873_v51, %v5870_v7 }
  0xd7   :  { %v819_v6 = vpop.f32.mrf.mxu3  ;;  %v692_v47 = vpop.f32.mrf.mxu1  ;;  %v5924_v19 = vadd.f32 %v5857_v48, %v754_v45  ;;  %v5938_v26 = vadd.f32 %v5906_v13, %v627_v46  ;;  %v1247_v45 = vadd.f32 %v1246_v5, %v5909_v14 }
  0xd8   :  { %v1416_v21 = vadd.f32 %v1360_v1, %v1352_v0  ;;  %v5935_v25 = vadd.f32 %v5857_v48, %v819_v6  ;;  %v1234_v36 = vadd.f32 %v1233_v17, %v5885_v61  ;;  %v5952_v37 = vadd.f32 %v5906_v13, %v692_v47 }
  0xd9   :  { %4601 = vmatmul.msk.f32.gmra.mxu0 %vm168_vm0, %v5373_v10  ;;  %v1370_v41 = vmul.f32 %v5924_v19, %v5924_v19  ;;  %v1376_v57 = vmul.f32 %v5938_v26, %v5938_v26  ;;  %v1442_v0 = vadd.f32 %v1362_v30, %v1354_v16  ;;  %v1455_v1 = vadd.f32 %v1363_v31, %v1355_v22  ;;  %v5996_v31 = vpop.permute.xlu0 %1161 }
  0xda   :  { %4633 = vmatmul.msk.f32.gmra.mxu1 %vm168_vm0, %v5373_v10  ;;  %v1417_v4 = vadd.f32 %v1416_v21, %v1368_v20  ;;  %v1371_v6 = vmul.f32 %v5935_v25, %v5935_v25  ;;  %v1273_v63 = vadd.f32 %v1272_v23, %v5935_v25  ;;  %v1339_v16 = vsub.f32 1.0, %v1338_v40  ;;  %9604 = vst [vmem:[#allocation17_spill] sm:$0xff] %v5996_v31 }
  0xdb   :  { %4665 = vmatmul.msk.f32.gmra.mxu2 %vm168_vm0, %v5373_v10  ;;  %v1443_v20 = vadd.f32 %v1442_v0, %v1370_v41  ;;  %v1235_v5 = vadd.f32 %v1234_v36, %v5938_v26 }
  0xdc   :  { %4697 = vmatmul.msk.f32.gmra.mxu3 %vm168_vm0, %v5373_v10  ;;  %v1456_v22 = vadd.f32 %v1455_v1, %v1371_v6  ;;  %v1418_v30 = vadd.f32 %v1417_v4, %v1376_v57  ;;  %v1340_v0 = vmul.f32 %v5921_v62, %v1339_v16 }
  0xde   :  { %v757_v55 = vpop.f32.mrf.mxu2  ;;  %v630_v10 = vpop.f32.mrf.mxu0 }
  0xdf   :  { %v822_v56 = vpop.f32.mrf.mxu3  ;;  %v695_v60 = vpop.f32.mrf.mxu1  ;;  %v5958_v43 = vadd.f32 %v5906_v13, %v757_v55  ;;  %v5967_v47 = vadd.f32 %v5894_v3, %v630_v10  ;;  %v1260_v55 = vadd.f32 %v1259_v29, %v5924_v19 }
  0xe0   :  { %v5964_v46 = vadd.f32 %v5906_v13, %v822_v56  ;;  %v5976_v17 = vadd.f32 %v5894_v3, %v695_v60  ;;  %v1377_v56 = vmul.f32 %v5952_v37, %v5952_v37  ;;  %v5980_v10 = vpop.permute.xlu2 %1156  ;;  %v1248_v60 = vadd.f32 %v1247_v45, %v5952_v37 }
  0xe1   :  { %4602 = vmatmul.msk.f32.gmra.mxu0 %vm168_vm0, %v5406_v15  ;;  %9603 = vst [vmem:[#allocation16_spill] sm:$0xff] %v5980_v10  ;;  %v1378_v21 = vmul.f32 %v5958_v43, %v5958_v43  ;;  %v1384_v29 = vmul.f32 %v5967_v47, %v5967_v47  ;;  %v1261_v45 = vadd.f32 %v1260_v55, %v5958_v43 }
  0xe2   :  { %4634 = vmatmul.msk.f32.gmra.mxu1 %vm168_vm0, %v5406_v15  ;;  %v1385_v4 = vmul.f32 %v5976_v17, %v5976_v17  ;;  %v1274_v1 = vadd.f32 %v1273_v63, %v5964_v46 }
  0xe3   :  { %4666 = vmatmul.msk.f32.gmra.mxu2 %vm168_vm0, %v5406_v15  ;;  %v1419_v13 = vadd.f32 %v1418_v30, %v1384_v29 }
  0xe4   :  { %4698 = vmatmul.msk.f32.gmra.mxu3 %vm168_vm0, %v5406_v15  ;;  %v1369_v15 = vmul.f32 %v5909_v14, %v5909_v14 }
  0xe6   :  { %v760_v35 = vpop.f32.mrf.mxu2  ;;  %v633_v38 = vpop.f32.mrf.mxu0  ;;  %v1430_v8 = vadd.f32 %v1429_v28, %v1369_v15  ;;  %v1379_v28 = vmul.f32 %v5964_v46, %v5964_v46 }
  0xe7   :  { %v825_v53 = vpop.f32.mrf.mxu3  ;;  %v698_v39 = vpop.f32.mrf.mxu1  ;;  %v5999_v15 = vadd.f32 %v5894_v3, %v760_v35  ;;  %v6005_v36 = vadd.f32 %v5980_v10, %v633_v38  ;;  %v1236_v38 = vadd.f32 %v1235_v5, %v5967_v47  ;;  %v1341_v5 = vadd.f32 %v5921_v62, %v1340_v0 }
  0xe8   :  { %v6002_v23 = vadd.f32 %v5894_v3, %v825_v53  ;;  %v1431_v6 = vadd.f32 %v1430_v8, %v1377_v56  ;;  %v1444_v53 = vadd.f32 %v1443_v20, %v1378_v21  ;;  %v1457_v3 = vadd.f32 %v1456_v22, %v1379_v28 }
  0xe9   :  { %4603 = vmatmul.msk.f32.gmra.mxu0 %vm168_vm0, %v5448_v24  ;;  %v1386_v8 = vmul.f32 %v5999_v15, %v5999_v15  ;;  %v1392_v63 = vmul.f32 %v6005_v36, %v6005_v36  ;;  %v1237_v28 = vadd.f32 %v1236_v38, %v6005_v36  ;;  %v6067_v44 = vsel %vm1342_vm1, %v5921_v62, %v1341_v5 }
  0xea   :  { %4635 = vmatmul.msk.f32.gmra.mxu1 %vm168_vm0, %v5448_v24  ;;  %v1387_v56 = vmul.f32 %v6002_v23, %v6002_v23  ;;  %v1432_v20 = vadd.f32 %v1431_v6, %v1385_v4  ;;  %v1275_v22 = vadd.f32 %v1274_v1, %v6002_v23  ;;  %v6055_v4 = vpop.permute.xlu1 %1166  ;;  %9605 = vst [vmem:[#allocation18_spill] sm:$0xff] %v6067_v44 }
  0xeb   :  { %4667 = vmatmul.msk.f32.gmra.mxu2 %vm168_vm0, %v5448_v24  ;;  %v1445_v6 = vadd.f32 %v1444_v53, %v1386_v8 }
  0xec   :  { %4699 = vmatmul.msk.f32.gmra.mxu3 %vm168_vm0, %v5448_v24  ;;  %v6008_v24 = vadd.f32 %v5980_v10, %v698_v39  ;;  %v1249_v39 = vadd.f32 %v1248_v60, %v5976_v17  ;;  %v1262_v60 = vadd.f32 %v1261_v45, %v5999_v15 }
  0xee   :  { %v763_v40 = vpop.f32.mrf.mxu2  ;;  %v636_v57 = vpop.f32.mrf.mxu0  ;;  %v1393_v16 = vmul.f32 %v6008_v24, %v6008_v24  ;;  %v1250_v29 = vadd.f32 %v1249_v39, %v6008_v24 }
  0xef   :  { %v828_v41 = vpop.f32.mrf.mxu3  ;;  %v701_v35 = vpop.f32.mrf.mxu1  ;;  %v6018_v48 = vadd.f32 %v5996_v31, %v636_v57  ;;  %v6034_v21 = vadd.f32 %v5980_v10, %v763_v40  ;;  %v1458_v57 = vadd.f32 %v1457_v3, %v1387_v56 }
  0xf0   :  { %v6021_v55 = vadd.f32 %v5996_v31, %v701_v35  ;;  %v6049_v30 = vadd.f32 %v5980_v10, %v828_v41  ;;  %v1420_v35 = vadd.f32 %v1419_v13, %v1392_v63  ;;  %v1433_v0 = vadd.f32 %v1432_v20, %v1393_v16 }
  0xf1   :  { %4604 = vmatmul.msk.f32.gmra.mxu0 %vm168_vm0, %v5492_v32  ;;  %v1400_v40 = vmul.f32 %v6018_v48, %v6018_v48  ;;  %v1263_v38 = vadd.f32 %v1262_v60, %v6034_v21  ;;  %v1238_v3 = vadd.f32 %v1237_v28, %v6018_v48  ;;  %v1394_v63 = vmul.f32 %v6034_v21, %v6034_v21 }
  0xf2   :  { %4636 = vmatmul.msk.f32.gmra.mxu1 %vm168_vm0, %v5492_v32  ;;  %v1401_v45 = vmul.f32 %v6021_v55, %v6021_v55  ;;  %v1251_v13 = vadd.f32 %v1250_v29, %v6021_v55  ;;  %v1395_v16 = vmul.f32 %v6049_v30, %v6049_v30  ;;  %v1276_v29 = vadd.f32 %v1275_v22, %v6049_v30 }
  0xf3   :  { %4668 = vmatmul.msk.f32.gmra.mxu2 %vm168_vm0, %v5492_v32  ;;  %v1421_v20 = vadd.f32 %v1420_v35, %v1400_v40  ;;  %v1446_v22 = vadd.f32 %v1445_v6, %v1394_v63 }
  0xf4   :  { %4700 = vmatmul.msk.f32.gmra.mxu3 %vm168_vm0, %v5492_v32  ;;  %v1434_v62 = vadd.f32 %v1433_v0, %v1401_v45 }
  0xf6   :  { %v766_v32 = vpop.f32.mrf.mxu2  ;;  %v639_v10 = vpop.f32.mrf.mxu0 }
  0xf7   :  { %v831_v1 = vpop.f32.mrf.mxu3  ;;  %v6059_v39 = vadd.f32 %v5996_v31, %v766_v32  ;;  %v704_v53 = vpop.f32.mrf.mxu1  ;;  %v6072_v8 = vadd.f32 %v6055_v4, %v639_v10 }
  0xf8   :  { %v6062_v41 = vadd.f32 %v5996_v31, %v831_v1  ;;  %v6075_v56 = vadd.f32 %v6055_v4, %v704_v53  ;;  %v6090_v32 = vpop.permute.xlu2 %1789 }
  0xf9   :  { %v1239_v5 = vadd.f32 %v1238_v3, %v6072_v8  ;;  %v1408_v60 = vmul.f32 %v6072_v8, %v6072_v8  ;;  %4605 = vmatmul.msk.f32.gmra.mxu0 %vm168_vm0, %v5538_v42  ;;  %9606 = vst [vmem:[#allocation19_spill] sm:$0xff] %v6090_v32  ;;  %v1402_v40 = vmul.f32 %v6059_v39, %v6059_v39 }
  0xfa   :  { %v1252_v28 = vadd.f32 %v1251_v13, %v6075_v56  ;;  %v1409_v10 = vmul.f32 %v6075_v56, %v6075_v56  ;;  %v1403_v45 = vmul.f32 %v6062_v41, %v6062_v41  ;;  %4637 = vmatmul.msk.f32.gmra.mxu1 %vm168_vm0, %v5538_v42  ;;  %v1459_v3 = vadd.f32 %v1458_v57, %v1395_v16 }
  0xfb   :  { %4669 = vmatmul.msk.f32.gmra.mxu2 %vm168_vm0, %v5538_v42  ;;  %v1240_v35 = vrot.slane %v1239_v5, 4  ;;  %v1422_v0 = vadd.f32 %v1421_v20, %v1408_v60  ;;  %v1264_v13 = vadd.f32 %v1263_v38, %v6059_v39  ;;  %v1277_v31 = vadd.f32 %v1276_v29, %v6062_v41 }
  0xfc   :  { %v1253_v1 = vrot.slane %v1252_v28, 4  ;;  %v1435_v53 = vadd.f32 %v1434_v62, %v1409_v10  ;;  %4701 = vmatmul.msk.f32.gmra.mxu3 %vm168_vm0, %v5538_v42  ;;  %v1447_v32 = vadd.f32 %v1446_v22, %v1402_v40  ;;  %v1460_v27 = vadd.f32 %v1459_v3, %v1403_v45 }
  0xfd   :  { %v1241_v49 = vadd.f32 %v1240_v35, %v1239_v5  ;;  %v1423_v34 = vrot.slane %v1422_v0, 4  ;;  %v6114_v5 = vpop.permute.xlu1 %1885 }
  0xfe   :  { %v1254_v2 = vadd.f32 %v1253_v1, %v1252_v28  ;;  %v1436_v33 = vrot.slane %v1435_v53, 4  ;;  %v769_v58 = vpop.f32.mrf.mxu2  ;;  %v6110_v42 = vpop.f32.mrf.mxu0  ;;  %9609 = vst [vmem:[#allocation22_spill] sm:$0xff] %v6114_v5 }
  0xff   :  { %v834_v12 = vpop.f32.mrf.mxu3  ;;  %v6105_v20 = vadd.f32 %v6055_v4, %v769_v58  ;;  %9607 = vst [vmem:[#allocation20_spill] sm:$0xff] %v6110_v42  ;;  %v6112_v6 = vpop.f32.mrf.mxu1  ;;  %v1242_v57 = vrot.slane %v1241_v49, 2  ;;  %v1424_v38 = vadd.f32 %v1423_v34, %v1422_v0 }
 0x100   :  { %v6108_v62 = vadd.f32 %v6055_v4, %v834_v12  ;;  %9608 = vst [vmem:[#allocation21_spill] sm:$0xff] %v6112_v6  ;;  %v1255_v63 = vrot.slane %v1254_v2, 2  ;;  %v1437_v16 = vadd.f32 %v1436_v33, %v1435_v53 }
 0x101   :  { %v1265_v60 = vadd.f32 %v1264_v13, %v6105_v20  ;;  %v1410_v28 = vmul.f32 %v6105_v20, %v6105_v20  ;;  %v1243_v10 = vadd.f32 %v1242_v57, %v1241_v49  ;;  %v1425_v29 = vrot.slane %v1424_v38, 2  ;;  %4606 = vmatmul.msk.f32.gmra.mxu0 %vm168_vm0, %v5584_v50 }
 0x102   :  { %v1278_v58 = vadd.f32 %v1277_v31, %v6108_v62  ;;  %v1411_v12 = vmul.f32 %v6108_v62, %v6108_v62  ;;  %v1256_v40 = vadd.f32 %v1255_v63, %v1254_v2  ;;  %v1438_v45 = vrot.slane %v1437_v16, 2  ;;  %4638 = vmatmul.msk.f32.gmra.mxu1 %vm168_vm0, %v5584_v50  ;;  %v6130_v2 = vpop.permute.xlu2 %1781 }
 0x103   :  { %v1266_v33 = vrot.slane %v1265_v60, 4  ;;  %v1448_v34 = vadd.f32 %v1447_v32, %v1410_v28  ;;  %4670 = vmatmul.msk.f32.gmra.mxu2 %vm168_vm0, %v5584_v50  ;;  %v1244_v31 = vrot.slane %v1243_v10, 1  ;;  %v1426_v1 = vadd.f32 %v1425_v29, %v1424_v38  ;;  %9610 = vst [vmem:[#allocation23_spill] sm:$0xff] %v6130_v2 }
 0x104   :  { %v1279_v35 = vrot.slane %v1278_v58, 4  ;;  %v1461_v0 = vadd.f32 %v1460_v27, %v1411_v12  ;;  %v1257_v53 = vrot.slane %v1256_v40, 1  ;;  %v1439_v49 = vadd.f32 %v1438_v45, %v1437_v16  ;;  %4702 = vmatmul.msk.f32.gmra.mxu3 %vm168_vm0, %v5584_v50 }
 0x105   :  { %v1267_v22 = vadd.f32 %v1266_v33, %v1265_v60  ;;  %v1449_v3 = vrot.slane %v1448_v34, 4  ;;  %v1245_v27 = vadd.f32 %v1244_v31, %v1243_v10  ;;  %v1427_v57 = vrot.slane %v1426_v1, 1 }
 0x106   :  { %v1280_v32 = vadd.f32 %v1279_v35, %v1278_v58  ;;  %v1462_v13 = vrot.slane %v1461_v0, 4  ;;  %v1258_v63 = vadd.f32 %v1257_v53, %v1256_v40  ;;  %v1440_v28 = vrot.slane %v1439_v49, 1  ;;  %v6132_v12 = vpop.f32.mrf.mxu2  ;;  %v6136_v42 = vpop.f32.mrf.mxu0 }
 0x107   :  { %9611 = vst [vmem:[#allocation24_spill] sm:$0xff] %v6132_v12  ;;  %v6134_v6 = vpop.f32.mrf.mxu3  ;;  %v1268_v38 = vrot.slane %v1267_v22, 2  ;;  %v1450_v29 = vadd.f32 %v1449_v3, %v1448_v34  ;;  %v6138_v50 = vpop.f32.mrf.mxu1  ;;  %v6141_v60 = vmul.f32 %v6067_v44, %v1245_v27  ;;  %v1428_v58 = vadd.f32 %v1427_v57, %v1426_v1 }
 0x108   :  { %9612 = vst [vmem:[#allocation25_spill] sm:$0xff] %v6134_v6  ;;  %v1281_v16 = vrot.slane %v1280_v32, 2  ;;  %v1463_v45 = vadd.f32 %v1462_v13, %v1461_v0  ;;  %v6144_v10 = vmul.f32 %v6067_v44, %v1258_v63  ;;  %v1441_v40 = vadd.f32 %v1440_v28, %v1439_v49  ;;  %v6154_v49 = vpop.permute.xlu1 %1881 }
 0x109   :  { %9613 = vst [vmem:[#allocation26_spill] sm:$0xff] %v6136_v42  ;;  %v1269_v33 = vadd.f32 %v1268_v38, %v1267_v22  ;;  %v1451_v35 = vrot.slane %v1450_v29, 2  ;;  %v1520_v34 = vmul.f32 %v1428_v58, %v6067_v44  ;;  %v1528_v0 = vmul.f32 %v6141_v60, %v6141_v60  ;;  %4607 = vmatmul.msk.f32.gmra.mxu0 %vm168_vm0, %v5628_v59 }
 0x10a   :  { %9614 = vst [vmem:[#allocation27_spill] sm:$0xff] %v6138_v50  ;;  %v1282_v31 = vadd.f32 %v1281_v16, %v1280_v32  ;;  %v1464_v53 = vrot.slane %v1463_v45, 2  ;;  %v1521_v3 = vmul.f32 %v1441_v40, %v6067_v44  ;;  %v1529_v1 = vmul.f32 %v6144_v10, %v6144_v10  ;;  %4639 = vmatmul.msk.f32.gmra.mxu1 %vm168_vm0, %v5628_v59 }
 0x10b   :  { %v1270_v13 = vrot.slane %v1269_v33, 1  ;;  %v1452_v27 = vadd.f32 %v1451_v35, %v1450_v29  ;;  %9615 = vst [vmem:[#allocation28_spill] sm:$0xff] %v6154_v49  ;;  %4671 = vmatmul.msk.f32.gmra.mxu2 %vm168_vm0, %v5628_v59  ;;  %v1536_v22 = vsub.f32 %v1520_v34, %v1528_v0 }
 0x10c   :  { %v1283_v32 = vrot.slane %v1282_v31, 1  ;;  %v1465_v57 = vadd.f32 %v1464_v53, %v1463_v45  ;;  %4703 = vmatmul.msk.f32.gmra.mxu3 %vm168_vm0, %v5628_v59  ;;  %v1537_v63 = vsub.f32 %v1521_v3, %v1529_v1  ;;  %v6185_v1 = vpop.permute.xlu2 %1777 }
 0x10d   :  { %v1271_v28 = vadd.f32 %v1270_v13, %v1269_v33  ;;  %v1453_v38 = vrot.slane %v1452_v27, 1  ;;  %v6162_v16 = vadd.f32 1e-05, %v1536_v22  ;;  %9620 = vst [vmem:[#allocation33_spill] sm:$0xff] %v6185_v1 }
 0x10e   :  { %v1284_v29 = vadd.f32 %v1283_v32, %v1282_v31  ;;  %v1466_v58 = vrot.slane %v1465_v57, 1  ;;  %v6164_v40 = vpop.f32.mrf.mxu2  ;;  %v6168_v6 = vadd.f32 1e-05, %v1537_v63  ;;  %v6173_v53 = vpop.f32.mrf.mxu0 }
 0x10f   :  { %9616 = vst [vmem:[#allocation29_spill] sm:$0xff] %v6164_v40  ;;  %v6166_v35 = vpop.f32.mrf.mxu3  ;;  %v6171_v34 = vmul.f32 %v6067_v44, %v1271_v28  ;;  %v1454_v45 = vadd.f32 %v1453_v38, %v1452_v27  ;;  %v6175_v59 = vpop.f32.mrf.mxu1  ;;  %4883 = vrsqrt.f32 %v6162_v16  ;;  %vm1622_vm2 = vweird.f32 %v6162_v16 }
 0x110   :  { %9617 = vst [vmem:[#allocation30_spill] sm:$0xff] %v6166_v35  ;;  %v6179_v33 = vmul.f32 %v6067_v44, %v1284_v29  ;;  %v1467_v31 = vadd.f32 %v1466_v58, %v1465_v57  ;;  %4885 = vrsqrt.f32 %v6168_v6  ;;  %v6204_v38 = vpop.permute.xlu1 %1773  ;;  %vm1632_vm3 = vweird.f32 %v6168_v6 }
 0x111   :  { %9618 = vst [vmem:[#allocation31_spill] sm:$0xff] %v6173_v53  ;;  %v1522_v0 = vmul.f32 %v1454_v45, %v6067_v44  ;;  %v1530_v3 = vmul.f32 %v6171_v34, %v6171_v34  ;;  %4608 = vmatmul.msk.f32.gmra.mxu0 %vm168_vm0, %v5673_v9 }
 0x112   :  { %9619 = vst [vmem:[#allocation32_spill] sm:$0xff] %v6175_v59  ;;  %v1523_v13 = vmul.f32 %v1467_v31, %v6067_v44  ;;  %v1531_v27 = vmul.f32 %v6179_v33, %v6179_v33  ;;  %4640 = vmatmul.msk.f32.gmra.mxu1 %vm168_vm0, %v5673_v9 }
 0x113   :  { %v1538_v22 = vsub.f32 %v1522_v0, %v1530_v3  ;;  %4672 = vmatmul.msk.f32.gmra.mxu2 %vm168_vm0, %v5673_v9  ;;  %9621 = vst [vmem:[#allocation34_spill] sm:$0xff] %v6204_v38 }
 0x114   :  { %v1539_v32 = vsub.f32 %v1523_v13, %v1531_v27  ;;  %4704 = vmatmul.msk.f32.gmra.mxu3 %vm168_vm0, %v5673_v9 }
 0x115   :  { %v6202_v28 = vadd.f32 1e-05, %v1538_v22  ;;  %v6208_v58 = vpop.eup %4883 }
 0x116   :  { %v6210_v45 = vadd.f32 1e-05, %v1539_v32  ;;  %v6212_v31 = vpop.f32.mrf.mxu2  ;;  %v6222_v27 = vpop.eup %4885  ;;  %v1617_v22 = vmul.f32 %v6208_v58, %v6162_v16  ;;  %vm1623_vm4 = vweird.f32 %v6208_v58 }
 0x117   :  { %9622 = vst [vmem:[#allocation35_spill] sm:$0xff] %v6212_v31  ;;  %v6214_v9 = vpop.f32.mrf.mxu3  ;;  %4887 = vrsqrt.f32 %v6202_v28  ;;  %v6232_v63 = vpop.f32.mrf.mxu0  ;;  %v1627_v13 = vmul.f32 %v6222_v27, %v6168_v6  ;;  %vm1633_vm5 = vweird.f32 %v6222_v27  ;;  %vm1642_vm6 = vweird.f32 %v6202_v28  ;;  %vm1624_vm8 = vmor %vm1622_vm2, %vm1623_vm4 }
 0x118   :  { %9623 = vst [vmem:[#allocation36_spill] sm:$0xff] %v6214_v9  ;;  %v6234_v3 = vpop.f32.mrf.mxu1  ;;  %4889 = vrsqrt.f32 %v6210_v45  ;;  %v1618_v57 = vmul.f32 %v6208_v58, %v1617_v22  ;;  %v6262_v9 = vpop.permute.xlu0 %1785  ;;  %vm1652_vm7 = vweird.f32 %v6210_v45  ;;  %vm1634_vm9 = vmor %vm1632_vm3, %vm1633_vm5  ;;  %v9635_v6 = vsub.f32 %v6018_v48, %v6141_v60 }
 0x119   :  { %9624 = vst [vmem:[#allocation37_spill] sm:$0xff] %v6232_v63  ;;  %v1628_v35 = vmul.f32 %v6222_v27, %v1627_v13  ;;  %4609 = vmatmul.msk.f32.gmra.mxu0 %vm168_vm0, %v5719_v18  ;;  %v9638_v48 = vsub.f32 %v6005_v36, %v6141_v60 }
 0x11a   :  { %9625 = vst [vmem:[#allocation38_spill] sm:$0xff] %v6234_v3  ;;  %v1619_v32 = vmul.f32 0.5, %v1618_v57  ;;  %v6260_v3 = vpop.permute.xlu2 %1873  ;;  %4641 = vmatmul.msk.f32.gmra.mxu1 %vm168_vm0, %v5719_v18 }
 0x11b   :  { %9626 = vst [vmem:[#allocation39_spill] sm:$0xff] %v6260_v3  ;;  %4673 = vmatmul.msk.f32.gmra.mxu2 %vm168_vm0, %v5719_v18  ;;  %v1629_v57 = vmul.f32 0.5, %v1628_v35 }
 0x11c   :  { %9627 = vst [vmem:[#allocation40_spill] sm:$0xff] %v6262_v9  ;;  %4705 = vmatmul.msk.f32.gmra.mxu3 %vm168_vm0, %v5719_v18  ;;  %v1620_v13 = vsub.f32 1.5, %v1619_v32 }
 0x11d   :  { %v6280_v31 = vpop.eup %4887  ;;  %v1630_v63 = vsub.f32 1.5, %v1629_v57 }
 0x11e   :  { %v6288_v40 = vpop.eup %4889  ;;  %v1637_v18 = vmul.f32 %v6280_v31, %v6202_v28  ;;  %v6293_v29 = vpop.f32.mrf.mxu2  ;;  %v1621_v35 = vmul.f32 %v6208_v58, %v1620_v13  ;;  %vm1643_vm10 = vweird.f32 %v6280_v31 }
 0x11f   :  { %9628 = vst [vmem:[#allocation41_spill] sm:$0xff] %v6293_v29  ;;  %v6295_v32 = vpop.f32.mrf.mxu3  ;;  %v1647_v57 = vmul.f32 %v6288_v40, %v6210_v45  ;;  %v6305_v12 = vpop.f32.mrf.mxu0  ;;  %v1631_v13 = vmul.f32 %v6222_v27, %v1630_v63  ;;  %vm1653_vm11 = vweird.f32 %v6288_v40  ;;  %v9633_v63 = vsub.f32 %v6072_v8, %v6141_v60  ;;  %vm1644_vm12 = vmor %vm1642_vm6, %vm1643_vm10 }
 0x120   :  { %9629 = vst [vmem:[#allocation42_spill] sm:$0xff] %v6295_v32  ;;  %v6307_v59 = vpop.f32.mrf.mxu1  ;;  %v1638_v0 = vmul.f32 %v6280_v31, %v1637_v18  ;;  %v6319_v29 = vpop.permute.xlu1 %1769  ;;  %vm1654_vm13 = vmor %vm1652_vm7, %vm1653_vm11  ;;  %v9650_v45 = vsub.f32 %v6108_v62, %v6179_v33 }
 0x121   :  { %9630 = vst [vmem:[#allocation43_spill] sm:$0xff] %v6305_v12  ;;  %v6326_v12 = vsel %vm1624_vm8, %v6208_v58, %v1621_v35  ;;  %v1648_v16 = vmul.f32 %v6288_v40, %v1647_v57  ;;  %v6340_v32 = vsel %vm1634_vm9, %v6222_v27, %v1631_v13  ;;  %v9634_v35 = vld [vmem:[#allocation5_spill] sm:$0xff]  ;;  %v9636_v57 = vsub.f32 %v6075_v56, %v6144_v10  ;;  %v6374_v50 = vpop.permute.xlu0 %1877 }
 0x122   :  { %9631 = vst [vmem:[#allocation44_spill] sm:$0xff] %v6307_v59  ;;  %v1752_v18 = vmul.f32 %v6326_v12, %v9633_v63  ;;  %v1639_v58 = vmul.f32 0.5, %v1638_v0  ;;  %4610 = vmatmul.msk.f32.gmra.mxu0 %vm168_vm0, %v9634_v35  ;;  %v1744_v59 = vmul.f32 %v6326_v12, %v9635_v6  ;;  %4642 = vmatmul.msk.f32.gmra.mxu1 %vm168_vm0, %v9634_v35 }
 0x123   :  { %9632 = vst [vmem:[#allocation45_spill] sm:$0xff] %v6319_v29  ;;  %v1753_v22 = vmul.f32 %v6340_v32, %v9636_v57  ;;  %v1649_v8 = vmul.f32 0.5, %v1648_v16  ;;  %4674 = vmatmul.msk.f32.gmra.mxu2 %vm168_vm0, %v9634_v35  ;;  %v9637_v0 = vsub.f32 %v6021_v55, %v6144_v10  ;;  %v1736_v13 = vmul.f32 %v6326_v12, %v9638_v48  ;;  %v9639_v16 = vld [vmem:[#allocation19_spill] sm:$0xff] }
 0x124   :  { %v1640_v56 = vsub.f32 1.5, %v1639_v58  ;;  %4706 = vmatmul.msk.f32.gmra.mxu3 %vm168_vm0, %v9634_v35  ;;  %v1848_v63 = vmul.f32 %v9639_v16, %v1752_v18  ;;  %v1840_v6 = vmul.f32 %v6262_v9, %v1744_v59  ;;  %v9640_v57 = vsub.f32 %v6008_v24, %v6144_v10  ;;  %9642 = vst [vmem:[#allocation46_spill] sm:$0xff] %v6374_v50 }
 0x125   :  { %v1745_v27 = vmul.f32 %v6340_v32, %v9637_v0  ;;  %v1650_v53 = vsub.f32 1.5, %v1649_v8  ;;  %v6372_v0 = vpop.permute.xlu2 %1869  ;;  %v1849_v36 = vmul.f32 %v9639_v16, %v1753_v22  ;;  %v1832_v35 = vmul.f32 %v6130_v2, %v1736_v13 }
 0x126   :  { %v1737_v55 = vmul.f32 %v6340_v32, %v9640_v57  ;;  %9641 = vst [vmem:[#allocation5_spill] sm:$0xff] %v6372_v0  ;;  %v1641_v18 = vmul.f32 %v6280_v31, %v1640_v56  ;;  %v6380_v48 = vpop.f32.mrf.mxu2  ;;  %v1944_v24 = vadd.f32 %v6114_v5, %v1848_v63  ;;  %v1936_v8 = vadd.f32 %v6154_v49, %v1840_v6 }
 0x127   :  { %v1841_v58 = vmul.f32 %v6262_v9, %v1745_v27  ;;  %9643 = vst [vmem:[#allocation47_spill] sm:$0xff] %v6380_v48  ;;  %v6382_v59 = vpop.f32.mrf.mxu3  ;;  %v1651_v22 = vmul.f32 %v6288_v40, %v1650_v53  ;;  %v6392_v27 = vpop.f32.mrf.mxu0  ;;  %v1945_v56 = vadd.f32 %v6114_v5, %v1849_v36  ;;  %v1928_v63 = vadd.f32 %v6374_v50, %v1832_v35  ;;  %v9652_v48 = vld [vmem:[#allocation6_spill] sm:$0xff] }
 0x128   :  { %9644 = vst [vmem:[#allocation48_spill] sm:$0xff] %v6382_v59  ;;  %v1833_v57 = vmul.f32 %v6130_v2, %v1737_v55  ;;  %v6394_v13 = vpop.f32.mrf.mxu1  ;;  %v6400_v6 = vsel %vm1644_vm12, %v6280_v31, %v1641_v18  ;;  %v2008_v28 = vmax.f32 %v1944_v24, 0.0  ;;  %v9647_v55 = vld [vmem:[#allocation14_spill] sm:$0xff]  ;;  %v9648_v36 = vsub.f32 %v6105_v20, %v6171_v34  ;;  %v9649_v18 = vld [vmem:[#allocation11_spill] sm:$0xff] }
 0x129   :  { %9645 = vst [vmem:[#allocation49_spill] sm:$0xff] %v6392_v27  ;;  %v1937_v59 = vadd.f32 %v6154_v49, %v1841_v58  ;;  %v6414_v35 = vsel %vm1654_vm13, %v6288_v40, %v1651_v22  ;;  %v2009_v31 = vmax.f32 %v1945_v56, 0.0  ;;  %v2000_v20 = vmax.f32 %v1936_v8, 0.0 }
 0x12a   :  { %9646 = vst [vmem:[#allocation50_spill] sm:$0xff] %v6394_v13  ;;  %v1929_v53 = vadd.f32 %v6374_v50, %v1833_v57  ;;  %v1754_v58 = vmul.f32 %v6400_v6, %v9648_v36  ;;  %v1755_v24 = vmul.f32 %v6414_v35, %v9650_v45  ;;  %v6422_v57 = vpop.permute.xlu1 %1865  ;;  %4611 = vmatmul.msk.f32.gmra.mxu0 %vm168_vm0, %v9652_v48  ;;  %v1992_v62 = vmax.f32 %v1928_v63, 0.0 }
 0x12b   :  { %9651 = vst [vmem:[#allocation14_spill] sm:$0xff] %v6422_v57  ;;  %v2001_v27 = vmax.f32 %v1937_v59, 0.0  ;;  %v9653_v40 = vsub.f32 %v5967_v47, %v6141_v60  ;;  %4643 = vmatmul.msk.f32.gmra.mxu1 %vm168_vm0, %v9652_v48  ;;  %4675 = vmatmul.msk.f32.gmra.mxu2 %vm168_vm0, %v9652_v48  ;;  %v9654_v56 = vsub.f32 %v5976_v17, %v6144_v10 }
 0x12c   :  { %v1850_v8 = vmul.f32 %v9639_v16, %v1754_v58  ;;  %v9655_v59 = vsub.f32 %v5938_v26, %v6141_v60  ;;  %4707 = vmatmul.msk.f32.gmra.mxu3 %vm168_vm0, %v9652_v48  ;;  %2085 = vmatpush.msra.mxu0 %v2008_v28  ;;  %v1993_v45 = vmax.f32 %v1929_v53, 0.0  ;;  %v1851_v63 = vmul.f32 %v9639_v16, %v1755_v24 }
 0x12d   :  { %v1728_v22 = vmul.f32 %v6326_v12, %v9653_v40  ;;  %v1729_v36 = vmul.f32 %v6340_v32, %v9654_v56  ;;  %v9656_v17 = vsub.f32 %v5952_v37, %v6144_v10  ;;  %2120 = vmatpush.msra.mxu1 %v2009_v31  ;;  %v9657_v48 = vsub.f32 %v6059_v39, %v6171_v34 }
 0x12e   :  { %v1720_v47 = vmul.f32 %v6326_v12, %v9655_v59  ;;  %v1946_v26 = vadd.f32 %v6114_v5, %v1850_v8  ;;  %2086 = vmatpush.msra.mxu0 %v2000_v20  ;;  %v6458_v53 = vpop.f32.mrf.mxu2  ;;  %v1947_v31 = vadd.f32 %v6114_v5, %v1851_v63  ;;  %v6476_v63 = vpop.permute.xlu2 %1761 }
 0x12f   :  { %v1824_v40 = vmul.f32 %v6185_v1, %v1728_v22  ;;  %v1721_v56 = vmul.f32 %v6340_v32, %v9656_v17  ;;  %v1825_v58 = vmul.f32 %v6185_v1, %v1729_v36  ;;  %v1746_v28 = vmul.f32 %v6400_v6, %v9657_v48  ;;  %9658 = vst [vmem:[#allocation11_spill] sm:$0xff] %v6458_v53  ;;  %v6460_v24 = vpop.f32.mrf.mxu3  ;;  %v6469_v39 = vpop.f32.mrf.mxu0 }
 0x130   :  { %v1816_v59 = vmul.f32 %v6204_v38, %v1720_v47  ;;  %9659 = vst [vmem:[#allocation6_spill] sm:$0xff] %v6460_v24  ;;  %v9660_v36 = vsub.f32 %v6062_v41, %v6179_v33  ;;  %2121 = vmatpush.msra.mxu1 %v2001_v27  ;;  %v6471_v47 = vpop.f32.mrf.mxu1  ;;  %v2010_v17 = vmax.f32 %v1946_v26, 0.0  ;;  %2087 = vmatpush.msra.mxu0 %v1992_v62  ;;  %v2011_v13 = vmax.f32 %v1947_v31, 0.0  ;;  %v6487_v62 = vpop.permute.xlu0 %1765 }
 0x131   :  { %v1920_v37 = vadd.f32 %v6260_v3, %v1824_v40  ;;  %v1817_v22 = vmul.f32 %v6204_v38, %v1721_v56  ;;  %9661 = vst [vmem:[#allocation51_spill] sm:$0xff] %v6469_v39  ;;  %v1921_v20 = vadd.f32 %v6260_v3, %v1825_v58  ;;  %v1842_v40 = vmul.f32 %v6262_v9, %v1746_v28 }
 0x132   :  { %v1747_v8 = vmul.f32 %v6414_v35, %v9660_v36  ;;  %9662 = vst [vmem:[#allocation52_spill] sm:$0xff] %v6471_v47  ;;  %v1912_v48 = vadd.f32 %v6372_v0, %v1816_v59  ;;  %2122 = vmatpush.msra.mxu1 %v1993_v45  ;;  %2155 = vmatpush.msra.mxu2 %v2010_v17  ;;  %v9665_v59 = vld [vmem:[#allocation12_spill] sm:$0xff]  ;;  %v9697_v47 = vld [vmem:[#allocation15_spill] sm:$0xff] }
 0x133   :  { %9663 = vst [vmem:[#allocation53_spill] sm:$0xff] %v6476_v63  ;;  %v1984_v56 = vmax.f32 %v1920_v37, 0.0  ;;  %v1913_v41 = vadd.f32 %v6372_v0, %v1817_v22  ;;  %v1985_v36 = vmax.f32 %v1921_v20, 0.0  ;;  %v1938_v24 = vadd.f32 %v6154_v49, %v1842_v40  ;;  %2190 = vmatpush.msra.mxu3 %v2011_v13  ;;  %v9669_v20 = vld [vmem:[#allocation7_spill] sm:$0xff] }
 0x134   :  { %v1843_v27 = vmul.f32 %v6262_v9, %v1747_v8  ;;  %v9664_v58 = vsub.f32 %v5885_v61, %v6141_v60  ;;  %v1547_v28 = vsub.f32 %v9665_v59, %v6179_v33  ;;  %9666 = vst [vmem:[#allocation12_spill] sm:$0xff] %v6487_v62  ;;  %v1976_v37 = vmax.f32 %v1912_v48, 0.0  ;;  %4612 = vmatmul.msk.f32.gmra.mxu0 %vm168_vm0, %v9669_v20 }
 0x135   :  { %2088 = vmatpush.msra.mxu0 %v1984_v56  ;;  %v9667_v45 = vsub.f32 %v5909_v14, %v6144_v10  ;;  %v9668_v61 = vsub.f32 %v6034_v21, %v6171_v34  ;;  %2123 = vmatpush.msra.mxu1 %v1985_v36  ;;  %v1977_v17 = vmax.f32 %v1913_v41, 0.0  ;;  %v9670_v48 = vsub.f32 %v6049_v30, %v6179_v33  ;;  %v6509_v21 = vpop.permute.xlu1 %1861 }
 0x136   :  { %v1712_v26 = vmul.f32 %v6326_v12, %v9664_v58  ;;  %v1939_v31 = vadd.f32 %v6154_v49, %v1843_v27  ;;  %v9671_v14 = vsub.f32 %v5873_v51, %v6141_v60  ;;  %9672 = vst [vmem:[#allocation7_spill] sm:$0xff] %v6509_v21  ;;  %4644 = vmatmul.msk.f32.gmra.mxu1 %vm168_vm0, %v9669_v20  ;;  %v2002_v41 = vmax.f32 %v1938_v24, 0.0 }
 0x137   :  { %v1713_v22 = vmul.f32 %v6340_v32, %v9667_v45  ;;  %v1738_v8 = vmul.f32 %v6400_v6, %v9668_v61  ;;  %v1739_v40 = vmul.f32 %v6414_v35, %v9670_v48  ;;  %4676 = vmatmul.msk.f32.gmra.mxu2 %vm168_vm0, %v9669_v20  ;;  %v9673_v36 = vsub.f32 %v5879_v54, %v6144_v10  ;;  %v6528_v54 = vpop.f32.mrf.mxu2 }
 0x138   :  { %v1808_v13 = vmul.f32 %v6319_v29, %v1712_v26  ;;  %v1704_v56 = vmul.f32 %v6326_v12, %v9671_v14  ;;  %4708 = vmatmul.msk.f32.gmra.mxu3 %vm168_vm0, %v9669_v20  ;;  %2089 = vmatpush.msra.mxu0 %v1976_v37  ;;  %v2003_v58 = vmax.f32 %v1939_v31, 0.0  ;;  %9674 = vst [vmem:[#allocation54_spill] sm:$0xff] %v6528_v54  ;;  %v6541_v14 = vpop.f32.mrf.mxu1 }
 0x139   :  { %v1809_v27 = vmul.f32 %v6319_v29, %v1713_v22  ;;  %v1834_v30 = vmul.f32 %v6130_v2, %v1738_v8  ;;  %v1705_v51 = vmul.f32 %v6340_v32, %v9673_v36  ;;  %v1835_v45 = vmul.f32 %v6130_v2, %v1739_v40  ;;  %2124 = vmatpush.msra.mxu1 %v1977_v17  ;;  %v6530_v8 = vpop.f32.mrf.mxu3  ;;  %v6539_v40 = vpop.f32.mrf.mxu0 }
 0x13a   :  { %v1904_v26 = vadd.f32 %v6422_v57, %v1808_v13  ;;  %v1800_v24 = vmul.f32 %v6487_v62, %v1704_v56  ;;  %2156 = vmatpush.msra.mxu2 %v2002_v41  ;;  %9675 = vst [vmem:[#allocation55_spill] sm:$0xff] %v6530_v8  ;;  %2191 = vmatpush.msra.mxu3 %v2003_v58 }
 0x13b   :  { %v1905_v22 = vadd.f32 %v6422_v57, %v1809_v27  ;;  %v1930_v61 = vadd.f32 %v6374_v50, %v1834_v30  ;;  %v1801_v20 = vmul.f32 %v6487_v62, %v1705_v51  ;;  %v1931_v31 = vadd.f32 %v6374_v50, %v1835_v45  ;;  %9677 = vst [vmem:[#allocation56_spill] sm:$0xff] %v6539_v40 }
 0x13c   :  { %v1968_v37 = vmax.f32 %v1904_v26, 0.0  ;;  %v1896_v13 = vadd.f32 %v6509_v21, %v1800_v24  ;;  %v9676_v17 = vsub.f32 %v5999_v15, %v6171_v34  ;;  %9678 = vst [vmem:[#allocation57_spill] sm:$0xff] %v6541_v14  ;;  %v9679_v30 = vsub.f32 %v6002_v23, %v6179_v33  ;;  %v6553_v24 = vpop.permute.xlu2 %1857 }
 0x13d   :  { %v1969_v56 = vmax.f32 %v1905_v22, 0.0  ;;  %v1994_v41 = vmax.f32 %v1930_v61, 0.0  ;;  %v1897_v27 = vadd.f32 %v6509_v21, %v1801_v20  ;;  %v1995_v51 = vmax.f32 %v1931_v31, 0.0  ;;  %9681 = vst [vmem:[#allocation58_spill] sm:$0xff] %v6553_v24 }
 0x13e   :  { %v1730_v48 = vmul.f32 %v6400_v6, %v9676_v17  ;;  %v1731_v36 = vmul.f32 %v6414_v35, %v9679_v30  ;;  %2090 = vmatpush.msra.mxu0 %v1968_v37  ;;  %v1960_v58 = vmax.f32 %v1896_v13, 0.0  ;;  %v9680_v26 = vsub.f32 %v5870_v7, %v6141_v60 }
 0x13f   :  { %2125 = vmatpush.msra.mxu1 %v1969_v56  ;;  %2157 = vmatpush.msra.mxu2 %v1994_v41  ;;  %v1961_v22 = vmax.f32 %v1897_v27, 0.0  ;;  %v9682_v23 = vsub.f32 %v5876_v52, %v6144_v10  ;;  %v9683_v37 = vsub.f32 %v5958_v43, %v6171_v34  ;;  %v9684_v60 = vsub.f32 %v5964_v46, %v6179_v33 }
 0x140   :  { %v1826_v15 = vmul.f32 %v6185_v1, %v1730_v48  ;;  %v1696_v45 = vmul.f32 %v6326_v12, %v9680_v26  ;;  %v1827_v61 = vmul.f32 %v6185_v1, %v1731_v36  ;;  %2192 = vmatpush.msra.mxu3 %v1995_v51  ;;  %2091 = vmatpush.msra.mxu0 %v1960_v58 }
 0x141   :  { %v1697_v20 = vmul.f32 %v6340_v32, %v9682_v23  ;;  %v1722_v31 = vmul.f32 %v6400_v6, %v9683_v37  ;;  %v1723_v13 = vmul.f32 %v6414_v35, %v9684_v60  ;;  %2126 = vmatpush.msra.mxu1 %v1961_v22  ;;  %v4949_v32 = vld [vmem:[%s9450_s1 + $0x78] sm:$0xff]  ;;  %v9685_v56 = vsub.f32 %v5924_v19, %v6171_v34  ;;  %v6594_v26 = vpop.f32.mrf.mxu3 }
 0x142   :  { %v1922_v7 = vadd.f32 %v6260_v3, %v1826_v15  ;;  %v1792_v12 = vmul.f32 %v6476_v63, %v1696_v45  ;;  %v1923_v52 = vadd.f32 %v6260_v3, %v1827_v61  ;;  %4613 = vmatmul.msk.f32.gmra.mxu0 %vm168_vm0, %v4949_v32  ;;  %4645 = vmatmul.msk.f32.gmra.mxu1 %vm168_vm0, %v4949_v32  ;;  %v6592_v15 = vpop.f32.mrf.mxu2 }
 0x143   :  { %v1793_v10 = vmul.f32 %v6476_v63, %v1697_v20  ;;  %v1818_v43 = vmul.f32 %v6204_v38, %v1722_v31  ;;  %v1819_v46 = vmul.f32 %v6204_v38, %v1723_v13  ;;  %4677 = vmatmul.msk.f32.gmra.mxu2 %vm168_vm0, %v4949_v32  ;;  %v1714_v41 = vmul.f32 %v6400_v6, %v9685_v56  ;;  %v6602_v20 = vpop.f32.mrf.mxu0 }
 0x144   :  { %v1986_v17 = vmax.f32 %v1922_v7, 0.0  ;;  %v1888_v48 = vadd.f32 %v6553_v24, %v1792_v12  ;;  %v1987_v27 = vmax.f32 %v1923_v52, 0.0  ;;  %4709 = vmatmul.msk.f32.gmra.mxu3 %vm168_vm0, %v4949_v32  ;;  %v9686_v51 = vsub.f32 %v5935_v25, %v6179_v33  ;;  %9687 = vst [vmem:[#allocation59_spill] sm:$0xff] %v6592_v15  ;;  %v6604_v25 = vpop.f32.mrf.mxu1  ;;  %v2016_v32 = vld [vmem:[%s9451_s2] sm:$0xff] }
 0x145   :  { %v1889_v30 = vadd.f32 %v6553_v24, %v1793_v10  ;;  %v1914_v36 = vadd.f32 %v6372_v0, %v1818_v43  ;;  %9688 = vst [vmem:[#allocation60_spill] sm:$0xff] %v6594_v26  ;;  %v1915_v45 = vadd.f32 %v6372_v0, %v1819_v46  ;;  %v1810_v22 = vmul.f32 %v6319_v29, %v1714_v41 }
 0x146   :  { %v1715_v58 = vmul.f32 %v6414_v35, %v9686_v51  ;;  %2158 = vmatpush.msra.mxu2 %v1986_v17  ;;  %v1952_v19 = vmax.f32 %v1888_v48, 0.0  ;;  %v9689_v61 = vsub.f32 %v5901_v11, %v6171_v34  ;;  %2193 = vmatpush.msra.mxu3 %v1987_v27  ;;  %v9690_v12 = vsub.f32 %v9647_v55, %v6179_v33 }
 0x147   :  { %v1953_v37 = vmax.f32 %v1889_v30, 0.0  ;;  %v1978_v31 = vmax.f32 %v1914_v36, 0.0  ;;  %v1979_v13 = vmax.f32 %v1915_v45, 0.0  ;;  %v1906_v11 = vadd.f32 %v6422_v57, %v1810_v22  ;;  %v2017_v45 = vld [vmem:[%s9451_s2 + $0x8] sm:$0xff] }
 0x148   :  { %v1706_v23 = vmul.f32 %v6400_v6, %v9689_v61  ;;  %v1811_v7 = vmul.f32 %v6319_v29, %v1715_v58  ;;  %v1707_v60 = vmul.f32 %v6414_v35, %v9690_v12  ;;  %2092 = vmatpush.msra.mxu0 %v1952_v19  ;;  %v9691_v10 = vsub.f32 %v9649_v18, %v6171_v34  ;;  %v6644_v22 = vld [vmem:[%s9454_s5 + $0x8] sm:$0xff]  ;;  %v2018_v12 = vld [vmem:[%s9451_s2 + $0x10] sm:$0xff] }
 0x149   :  { %2127 = vmatpush.msra.mxu1 %v1953_v37  ;;  %2159 = vmatpush.msra.mxu2 %v1978_v31  ;;  %v1699_v48 = vmul.f32 %v6414_v35, %v1547_v28  ;;  %v1970_v46 = vmax.f32 %v1906_v11, 0.0  ;;  %v1073_v28 = vpop.f32.mrf.mxu3  ;;  %v4999_v37 = vmov 3  }
 0x14a   :  { %v1802_v52 = vmul.f32 %v6487_v62, %v1706_v23  ;;  %v1698_v43 = vmul.f32 %v6400_v6, %v9691_v10  ;;  %v1907_v55 = vadd.f32 %v6422_v57, %v1811_v7  ;;  %v1803_v17 = vmul.f32 %v6487_v62, %v1707_v60  ;;  %2194 = vmatpush.msra.mxu3 %v1979_v13  ;;  %v1008_v59 = vpop.f32.mrf.mxu2  ;;  %v6655_v60 = vld [vmem:[%s9454_s5] sm:$0xff]  ;;  %v6663_v13 = vld [vmem:[%s9454_s5 + $0x18] sm:$0xff] }
 0x14b   :  { %v1795_v41 = vmul.f32 %v6476_v63, %v1699_v48  ;;  %4710 = vmatmul.msk.f32.vlgmr.msra.gmra.mxu0 %vm2058_vm14, %v2016_v32  ;;  %2160 = vmatpush.msra.mxu2 %v1970_v46  ;;  %v881_v51 = vpop.f32.mrf.mxu0  ;;  %9692 = vst [vmem:[#allocation61_spill] sm:$0xff] %v6655_v60 }
 0x14c   :  { %v1898_v34 = vadd.f32 %v6509_v21, %v1802_v52  ;;  %v1794_v6 = vmul.f32 %v6476_v63, %v1698_v43  ;;  %v1971_v18 = vmax.f32 %v1907_v55, 0.0  ;;  %v1899_v56 = vadd.f32 %v6509_v21, %v1803_v17  ;;  %4716 = vmatmul.msk.f32.vlgmr.msra.gmra.mxu1 %vm2058_vm14, %v2016_v32  ;;  %v946_v58 = vpop.f32.mrf.mxu1  ;;  %4857 = vset.pattern.permute.xlu1 %v4999_v37  ;;  %v6672_v55 = vld [vmem:[%s9454_s5 + $0x28] sm:$0xff] }
 0x14d   :  { %v1891_v35 = vadd.f32 %v6553_v24, %v1795_v41  ;;  %4856 = vset.pattern.permute.xlu0 %v4999_v37  ;;  %2035 = vperm.xlu1 %4857, %v6644_v22   ;;  %v9694_v41 = vld [vmem:[#allocation8_spill] sm:$0xff] }
 0x14e   :  { %v1962_v27 = vmax.f32 %v1898_v34, 0.0  ;;  %v1890_v30 = vadd.f32 %v6553_v24, %v1794_v6  ;;  %2195 = vmatpush.msra.mxu3 %v1971_v18  ;;  %v1963_v33 = vmax.f32 %v1899_v56, 0.0  ;;  %4858 = vset.pattern.permute.xlu2 %v4999_v37  ;;  %v9693_v34 = vld [vmem:[#allocation10_spill] sm:$0xff] }
 0x14f   :  { %v1955_v19 = vmax.f32 %v1891_v35, 0.0  ;;  %2030 = vperm.xlu0 %4856, %v6655_v60   ;;  %v6680_v6 = vadd.f32 %v9693_v34, %v881_v51  ;;  %v6683_v18 = vadd.f32 %v9693_v34, %v946_v58  ;;  %v2020_v35 = vld [vmem:[%s9451_s2 + $0x20] sm:$0xff] }
 0x150   :  { %2161 = vmatpush.msra.mxu2 %v1962_v27  ;;  %v1954_v36 = vmax.f32 %v1890_v30, 0.0  ;;  %2196 = vmatpush.msra.mxu3 %v1963_v33  ;;  %v6687_v27 = vadd.f32 %v9694_v41, %v6602_v20  ;;  %v6691_v30 = vadd.f32 %v9694_v41, %v6604_v25  ;;  %v6694_v33 = vadd.f32 %v9694_v41, %v1008_v59  ;;  %v9696_v25 = vld [vmem:[#allocation9_spill] sm:$0xff] }
 0x151   :  { %v1076_v23 = vpop.f32.mrf.mxu3 }
 0x152   :  { %2162 = vmatpush.msra.mxu2 %v1954_v36  ;;  %2197 = vmatpush.msra.mxu3 %v1955_v19  ;;  %v1011_v61 = vpop.f32.mrf.mxu2  ;;  %v6700_v36 = vadd.f32 %v9694_v41, %v1073_v28  ;;  %v6706_v20 = vadd.f32 %v9693_v34, %v1076_v23  ;;  %v1364_v28 = vmul.f32 %v6680_v6, %v6680_v6 }
 0x153   :  { %4722 = vmatmul.msk.f32.vlgmr.msra.gmra.mxu2 %vm2058_vm14, %v2016_v32  ;;  %4728 = vmatmul.msk.f32.vlgmr.msra.gmra.mxu3 %vm2058_vm14, %v2016_v32  ;;  %v884_v31 = vpop.f32.mrf.mxu0  ;;  %v2019_v32 = vld [vmem:[%s9451_s2 + $0x18] sm:$0xff]  ;;  %v6703_v51 = vadd.f32 %v9693_v34, %v1011_v61  ;;  %v1365_v19 = vmul.f32 %v6683_v18, %v6683_v18  ;;  %v1357_v61 = vmul.f32 %v6691_v30, %v6691_v30 }
 0x154   :  { %4711 = vmatmul.msk.f32.gmra.mxu0 %vm2058_vm14, %v2017_v45  ;;  %4717 = vmatmul.msk.f32.gmra.mxu1 %vm2058_vm14, %v2017_v45  ;;  %v949_v7 = vpop.f32.mrf.mxu1  ;;  %9695 = vst [vmem:[#allocation10_spill] sm:$0xff] %v6700_v36  ;;  %v6710_v58 = vadd.f32 %v9696_v25, %v884_v31  ;;  %v1358_v23 = vmul.f32 %v6694_v33, %v6694_v33 }
 0x155   :  { %2045 = vperm.xlu1 %4857, %v6663_v13   ;;  %v6713_v59 = vadd.f32 %v9696_v25, %v949_v7  ;;  %v1359_v37 = vmul.f32 %v6700_v36, %v6700_v36  ;;  %v1285_v31 = vadd.f32 %v6680_v6, %v6687_v27  ;;  %v1366_v7 = vmul.f32 %v6703_v51, %v6703_v51 }
 0x156   :  { %v1298_v34 = vadd.f32 %v6683_v18, %v6691_v30  ;;  %v1372_v41 = vmul.f32 %v6710_v58, %v6710_v58  ;;  %v1481_v14 = vadd.f32 %v1365_v19, %v1357_v61  ;;  %v1311_v24 = vadd.f32 %v6703_v51, %v6694_v33 }
 0x157   :  { %2055 = vperm.xlu0 %4856, %v6672_v55   ;;  %v1373_v26 = vmul.f32 %v6713_v59, %v6713_v59  ;;  %v1324_v63 = vadd.f32 %v6706_v20, %v6700_v36 }
 0x159   :  { %v1079_v52 = vpop.f32.mrf.mxu3  ;;  %v1482_v61 = vadd.f32 %v1481_v14, %v1373_v26 }
 0x15a   :  { %v1014_v11 = vpop.f32.mrf.mxu2  ;;  %v6746_v40 = vadd.f32 %v9696_v25, %v1079_v52  ;;  %v2021_v52 = vld [vmem:[%s9451_s2 + $0x28] sm:$0xff] }
 0x15b   :  { %4723 = vmatmul.msk.f32.gmra.mxu2 %vm2058_vm14, %v2017_v45  ;;  %4729 = vmatmul.msk.f32.gmra.mxu3 %vm2058_vm14, %v2017_v45  ;;  %v887_v10 = vpop.f32.mrf.mxu0  ;;  %v1356_v45 = vmul.f32 %v6687_v27, %v6687_v27  ;;  %v6743_v15 = vadd.f32 %v9696_v25, %v1014_v11  ;;  %v1286_v11 = vadd.f32 %v1285_v31, %v6710_v58 }
 0x15c   :  { %4712 = vmatmul.msk.f32.gmra.mxu0 %vm2058_vm14, %v2018_v12  ;;  %4718 = vmatmul.msk.f32.gmra.mxu1 %vm2058_vm14, %v2018_v12  ;;  %v952_v43 = vpop.f32.mrf.mxu1  ;;  %v6749_v39 = vadd.f32 %v9697_v47, %v887_v10  ;;  %v1494_v25 = vadd.f32 %v1366_v7, %v1358_v23  ;;  %v1299_v10 = vadd.f32 %v1298_v34, %v6713_v59 }
 0x15d   :  { %v1468_v53 = vadd.f32 %v1364_v28, %v1356_v45  ;;  %v6757_v21 = vadd.f32 %v9697_v47, %v952_v43  ;;  %v1374_v31 = vmul.f32 %v6743_v15, %v6743_v15  ;;  %v1375_v23 = vmul.f32 %v6746_v40, %v6746_v40 }
 0x15e   :  { %v1312_v14 = vadd.f32 %v1311_v24, %v6743_v15  ;;  %v1287_v26 = vadd.f32 %v1286_v11, %v6749_v39 }
 0x15f   :  { %v1469_v45 = vadd.f32 %v1468_v53, %v1372_v41  ;;  %v9699_v41 = vld [vmem:[#allocation16_spill] sm:$0xff] }
 0x161   :  { %v1082_v48 = vpop.f32.mrf.mxu3 }
 0x162   :  { %v1017_v17 = vpop.f32.mrf.mxu2  ;;  %v6770_v43 = vadd.f32 %v9697_v47, %v1082_v48  ;;  %v1381_v48 = vmul.f32 %v6757_v21, %v6757_v21 }
 0x163   :  { %4724 = vmatmul.msk.f32.gmra.mxu2 %vm2058_vm14, %v2018_v12  ;;  %4730 = vmatmul.msk.f32.gmra.mxu3 %vm2058_vm14, %v2018_v12  ;;  %v890_v46 = vpop.f32.mrf.mxu0  ;;  %v1367_v12 = vmul.f32 %v6706_v20, %v6706_v20  ;;  %v6764_v19 = vadd.f32 %v9697_v47, %v1017_v17  ;;  %v9698_v17 = vld [vmem:[#allocation13_spill] sm:$0xff]  ;;  %v1325_v47 = vadd.f32 %v1324_v63, %v6746_v40 }
 0x164   :  { %4713 = vmatmul.msk.f32.gmra.mxu0 %vm2058_vm14, %v2019_v32  ;;  %4719 = vmatmul.msk.f32.gmra.mxu1 %vm2058_vm14, %v2019_v32  ;;  %v955_v56 = vpop.f32.mrf.mxu1  ;;  %v6778_v7 = vadd.f32 %v9698_v17, %v890_v46  ;;  %v1495_v63 = vadd.f32 %v1494_v25, %v1374_v31  ;;  %v1383_v34 = vmul.f32 %v6770_v43, %v6770_v43 }
 0x165   :  { %v1507_v28 = vadd.f32 %v1367_v12, %v1359_v37  ;;  %v1380_v37 = vmul.f32 %v6749_v39, %v6749_v39  ;;  %v6781_v53 = vadd.f32 %v9698_v17, %v955_v56  ;;  %v1382_v46 = vmul.f32 %v6764_v19, %v6764_v19 }
 0x166   :  { %v1483_v31 = vadd.f32 %v1482_v61, %v1381_v48  ;;  %v1288_v3 = vadd.f32 %v1287_v26, %v6778_v7 }
 0x167   :  { %v1508_v0 = vadd.f32 %v1507_v28, %v1375_v23  ;;  %v1470_v29 = vadd.f32 %v1469_v45, %v1380_v37  ;;  %v9700_v45 = vld [vmem:[#allocation17_spill] sm:$0xff] }
 0x169   :  { %v1085_v8 = vpop.f32.mrf.mxu3  ;;  %v1509_v37 = vadd.f32 %v1508_v0, %v1383_v34 }
 0x16a   :  { %v6797_v12 = vadd.f32 %v9698_v17, %v1085_v8  ;;  %v1389_v8 = vmul.f32 %v6781_v53, %v6781_v53 }
 0x16b   :  { %4725 = vmatmul.msk.f32.gmra.mxu2 %vm2058_vm14, %v2019_v32  ;;  %4731 = vmatmul.msk.f32.gmra.mxu3 %vm2058_vm14, %v2019_v32  ;;  %v1020_v32 = vpop.f32.mrf.mxu2  ;;  %v893_v54 = vpop.f32.mrf.mxu0 }
 0x16c   :  { %4714 = vmatmul.msk.f32.gmra.mxu0 %vm2058_vm14, %v2020_v35  ;;  %4720 = vmatmul.msk.f32.gmra.mxu1 %vm2058_vm14, %v2020_v35  ;;  %v958_v42 = vpop.f32.mrf.mxu1  ;;  %v6794_v56 = vadd.f32 %v9698_v17, %v1020_v32  ;;  %v6802_v11 = vadd.f32 %v9699_v41, %v893_v54  ;;  %v1388_v32 = vmul.f32 %v6778_v7, %v6778_v7 }
 0x16d   :  { %v6805_v62 = vadd.f32 %v9699_v41, %v958_v42  ;;  %v1313_v17 = vadd.f32 %v1312_v14, %v6764_v19  ;;  %v1326_v54 = vadd.f32 %v1325_v47, %v6770_v43  ;;  %v1496_v42 = vadd.f32 %v1495_v63, %v1382_v46 }
 0x16e   :  { %v1390_v38 = vmul.f32 %v6794_v56, %v6794_v56  ;;  %v1391_v28 = vmul.f32 %v6797_v12, %v6797_v12  ;;  %v1396_v61 = vmul.f32 %v6802_v11, %v6802_v11  ;;  %v1471_v26 = vadd.f32 %v1470_v29, %v1388_v32 }
 0x16f   :  { %v1397_v14 = vmul.f32 %v6805_v62, %v6805_v62  ;;  %v1484_v46 = vadd.f32 %v1483_v31, %v1389_v8  ;;  %v1314_v0 = vadd.f32 %v1313_v17, %v6794_v56  ;;  %v1289_v34 = vadd.f32 %v1288_v3, %v6802_v11 }
 0x170   :  { %v1510_v60 = vadd.f32 %v1509_v37, %v1391_v28  ;;  %v1472_v32 = vadd.f32 %v1471_v26, %v1396_v61 }
 0x173   :  { %4726 = vmatmul.msk.f32.gmra.mxu2 %vm2058_vm14, %v2020_v35  ;;  %4732 = vmatmul.msk.f32.gmra.mxu3 %vm2058_vm14, %v2020_v35  ;;  %v1300_v35 = vadd.f32 %v1299_v10, %v6757_v21  ;;  %v1023_v24 = vpop.f32.mrf.mxu2  ;;  %v1088_v10 = vpop.f32.mrf.mxu3 }
 0x174   :  { %4715 = vmatmul.msk.f32.gmra.mxu0 %vm2058_vm14, %v2021_v52  ;;  %4721 = vmatmul.msk.f32.gmra.mxu1 %vm2058_vm14, %v2021_v52  ;;  %v896_v57 = vpop.f32.mrf.mxu0  ;;  %v961_v25 = vpop.f32.mrf.mxu1  ;;  %v6832_v63 = vadd.f32 %v9699_v41, %v1023_v24  ;;  %v6838_v1 = vadd.f32 %v9699_v41, %v1088_v10  ;;  %v1485_v24 = vadd.f32 %v1484_v46, %v1397_v14 }
 0x175   :  { %v6820_v23 = vadd.f32 %v9700_v45, %v896_v57  ;;  %v6828_v47 = vadd.f32 %v9700_v45, %v961_v25  ;;  %v1301_v48 = vadd.f32 %v1300_v35, %v6781_v53  ;;  %v1327_v57 = vadd.f32 %v1326_v54, %v6797_v12 }
 0x176   :  { %v1315_v28 = vadd.f32 %v1314_v0, %v6832_v63  ;;  %v1399_v37 = vmul.f32 %v6838_v1, %v6838_v1 }
 0x177   :  { %v1302_v25 = vadd.f32 %v1301_v48, %v6805_v62  ;;  %v1404_v29 = vmul.f32 %v6820_v23, %v6820_v23  ;;  %v1405_v8 = vmul.f32 %v6828_v47, %v6828_v47  ;;  %v1290_v41 = vadd.f32 %v1289_v34, %v6820_v23 }
 0x179   :  { %v1303_v61 = vadd.f32 %v1302_v25, %v6828_v47  ;;  %v1473_v26 = vadd.f32 %v1472_v32, %v1404_v29  ;;  %v1486_v34 = vadd.f32 %v1485_v24, %v1405_v8  ;;  %v1328_v29 = vadd.f32 %v1327_v57, %v6838_v1 }
 0x17b   :  { %4727 = vmatmul.msk.f32.gmra.mxu2 %vm2058_vm14, %v2021_v52  ;;  %4733 = vmatmul.msk.f32.gmra.mxu3 %vm2058_vm14, %v2021_v52  ;;  %v1497_v52 = vadd.f32 %v1496_v42, %v1390_v38  ;;  %v1026_v35 = vpop.f32.mrf.mxu2  ;;  %v1091_v3 = vpop.f32.mrf.mxu3  ;;  %v1398_v38 = vmul.f32 %v6832_v63, %v6832_v63 }
 0x17c   :  { %v6846_v31 = vadd.f32 %v9700_v45, %v1026_v35  ;;  %v899_v17 = vpop.f32.mrf.mxu0  ;;  %v6852_v10 = vadd.f32 %v9700_v45, %v1091_v3  ;;  %v964_v42 = vpop.f32.mrf.mxu1 }
 0x17d   :  { %v6855_v54 = vadd.f32 %v6055_v4, %v899_v17  ;;  %v6862_v14 = vadd.f32 %v6055_v4, %v964_v42  ;;  %v1498_v3 = vadd.f32 %v1497_v52, %v1398_v38  ;;  %v1511_v42 = vadd.f32 %v1510_v60, %v1399_v37 }
 0x17e   :  { %v1406_v48 = vmul.f32 %v6846_v31, %v6846_v31  ;;  %v1407_v0 = vmul.f32 %v6852_v10, %v6852_v10  ;;  %v1316_v24 = vadd.f32 %v1315_v28, %v6846_v31  ;;  %v1329_v49 = vadd.f32 %v1328_v29, %v6852_v10 }
 0x17f   :  { %v1291_v45 = vadd.f32 %v1290_v41, %v6855_v54  ;;  %v1412_v46 = vmul.f32 %v6855_v54, %v6855_v54  ;;  %v1304_v35 = vadd.f32 %v1303_v61, %v6862_v14  ;;  %v1413_v25 = vmul.f32 %v6862_v14, %v6862_v14  ;;  %v6878_v41 = vld [vmem:[%s9454_s5 + $0x10] sm:$0xff] }
 0x180   :  { %2040 = vperm.xlu2 %4858, %v6878_v41   ;;  %v1499_v61 = vadd.f32 %v1498_v3, %v1406_v48  ;;  %v1512_v5 = vadd.f32 %v1511_v42, %v1407_v0 }
 0x181   :  { %v1292_v32 = vrot.slane %v1291_v45, 4  ;;  %v1474_v17 = vadd.f32 %v1473_v26, %v1412_v46  ;;  %v1305_v8 = vrot.slane %v1304_v35, 4  ;;  %v1487_v50 = vadd.f32 %v1486_v34, %v1413_v25 }
 0x183   :  { %v1293_v52 = vadd.f32 %v1292_v32, %v1291_v45  ;;  %v1475_v38 = vrot.slane %v1474_v17, 4  ;;  %v1029_v57 = vpop.f32.mrf.mxu2  ;;  %v1306_v26 = vadd.f32 %v1305_v8, %v1304_v35  ;;  %v1488_v46 = vrot.slane %v1487_v50, 4  ;;  %v1094_v9 = vpop.f32.mrf.mxu3 }
 0x184   :  { %v6884_v2 = vadd.f32 %v6055_v4, %v1029_v57  ;;  %v6886_v60 = vpop.f32.mrf.mxu0  ;;  %v6889_v34 = vadd.f32 %v6055_v4, %v1094_v9  ;;  %v6891_v48 = vpop.f32.mrf.mxu1  ;;  %v9515_v35 = vmov 4  }
 0x185   :  { %9701 = vst [vmem:[#allocation8_spill] sm:$0xff] %v6886_v60  ;;  %v1294_v28 = vrot.slane %v1293_v52, 2  ;;  %v1476_v37 = vadd.f32 %v1475_v38, %v1474_v17  ;;  %v1307_v25 = vrot.slane %v1306_v26, 2  ;;  %v1489_v45 = vadd.f32 %v1488_v46, %v1487_v50  ;;  %4859 = vset.pattern.permute.xlu1 %v9515_v35 }
 0x186   :  { %9702 = vst [vmem:[#allocation9_spill] sm:$0xff] %v6891_v48  ;;  %v1317_v3 = vadd.f32 %v1316_v24, %v6884_v2  ;;  %v1414_v0 = vmul.f32 %v6884_v2, %v6884_v2  ;;  %v1330_v42 = vadd.f32 %v1329_v49, %v6889_v34  ;;  %v1415_v4 = vmul.f32 %v6889_v34, %v6889_v34 }
 0x187   :  { %v1295_v29 = vadd.f32 %v1294_v28, %v1293_v52  ;;  %v1477_v32 = vrot.slane %v1476_v37, 2  ;;  %2825 = vperm.xlu1 %4859, %v6672_v55   ;;  %v1308_v9 = vadd.f32 %v1307_v25, %v1306_v26  ;;  %v1490_v17 = vrot.slane %v1489_v45, 2  ;;  %v6904_v52 = vld [vmem:[%s9454_s5 + $0x20] sm:$0xff] }
 0x188   :  { %v1318_v50 = vrot.slane %v1317_v3, 4  ;;  %v1500_v8 = vadd.f32 %v1499_v61, %v1414_v0  ;;  %v1331_v57 = vrot.slane %v1330_v42, 4  ;;  %v1513_v46 = vadd.f32 %v1512_v5, %v1415_v4  ;;  %2050 = vperm.xlu2 %4858, %v6904_v52  }
 0x189   :  { %v1296_v24 = vrot.slane %v1295_v29, 1  ;;  %v1478_v38 = vadd.f32 %v1477_v32, %v1476_v37  ;;  %v1309_v28 = vrot.slane %v1308_v9, 1  ;;  %v1491_v49 = vadd.f32 %v1490_v17, %v1489_v45 }
 0x18a   :  { %v1319_v35 = vadd.f32 %v1318_v50, %v1317_v3  ;;  %v1501_v48 = vrot.slane %v1500_v8, 4  ;;  %v1332_v25 = vadd.f32 %v1331_v57, %v1330_v42  ;;  %v1514_v16 = vrot.slane %v1513_v46, 4 }
 0x18b   :  { %v1297_v60 = vadd.f32 %v1296_v24, %v1295_v29  ;;  %v1479_v26 = vrot.slane %v1478_v38, 1  ;;  %v6907_v61 = vpop.f32.mrf.mxu2  ;;  %v1310_v37 = vadd.f32 %v1309_v28, %v1308_v9  ;;  %v1492_v0 = vrot.slane %v1491_v49, 1  ;;  %v6909_v4 = vpop.f32.mrf.mxu3 }
 0x18c   :  { %9703 = vst [vmem:[#allocation15_spill] sm:$0xff] %v6907_v61  ;;  %v1320_v5 = vrot.slane %v1319_v35, 2  ;;  %v1502_v32 = vadd.f32 %v1501_v48, %v1500_v8  ;;  %v6911_v36 = vpop.f32.mrf.mxu0  ;;  %v1333_v17 = vrot.slane %v1332_v25, 2  ;;  %v1515_v50 = vadd.f32 %v1514_v16, %v1513_v46  ;;  %v6916_v29 = vpop.f32.mrf.mxu1 }
 0x18d   :  { %9704 = vst [vmem:[#allocation13_spill] sm:$0xff] %v6909_v4  ;;  %v6914_v45 = vmul.f32 %v6067_v44, %v1297_v60  ;;  %v1480_v3 = vadd.f32 %v1479_v26, %v1478_v38  ;;  %v6919_v42 = vmul.f32 %v6067_v44, %v1310_v37  ;;  %v1493_v24 = vadd.f32 %v1492_v0, %v1491_v49 }
 0x18e   :  { %9705 = vst [vmem:[#allocation16_spill] sm:$0xff] %v6911_v36  ;;  %v1321_v9 = vadd.f32 %v1320_v5, %v1319_v35  ;;  %v1503_v57 = vrot.slane %v1502_v32, 2  ;;  %v1334_v28 = vadd.f32 %v1333_v17, %v1332_v25  ;;  %v1516_v49 = vrot.slane %v1515_v50, 2 }
 0x18f   :  { %9706 = vst [vmem:[#allocation17_spill] sm:$0xff] %v6916_v29  ;;  %v1524_v48 = vmul.f32 %v1480_v3, %v6067_v44  ;;  %v1532_v8 = vmul.f32 %v6914_v45, %v6914_v45  ;;  %2817 = vperm.xlu1 %4859, %v6663_v13   ;;  %v1525_v60 = vmul.f32 %v1493_v24, %v6067_v44  ;;  %v9707_v5 = vmov 4  }
 0x190   :  { %v1533_v16 = vmul.f32 %v6919_v42, %v6919_v42  ;;  %v1322_v38 = vrot.slane %v1321_v9, 1  ;;  %v1504_v26 = vadd.f32 %v1503_v57, %v1502_v32  ;;  %v1335_v37 = vrot.slane %v1334_v28, 1  ;;  %4860 = vset.pattern.permute.xlu2 %v9707_v5 }
 0x191   :  { %v1540_v46 = vsub.f32 %v1524_v48, %v1532_v8  ;;  %v1517_v17 = vadd.f32 %v1516_v49, %v1515_v50  ;;  %2821 = vperm.xlu2 %4860, %v6904_v52  }
 0x192   :  { %v1541_v35 = vsub.f32 %v1525_v60, %v1533_v16  ;;  %v1323_v0 = vadd.f32 %v1322_v38, %v1321_v9  ;;  %v1505_v4 = vrot.slane %v1504_v26, 1  ;;  %v1336_v25 = vadd.f32 %v1335_v37, %v1334_v28 }
 0x193   :  { %v6929_v3 = vadd.f32 1e-05, %v1540_v46  ;;  %v6931_v61 = vpop.f32.mrf.mxu2  ;;  %v6939_v32 = vpop.f32.mrf.mxu3  ;;  %v9520_v28 = vmov 5   ;;  %v1518_v38 = vrot.slane %v1517_v17, 1 }
 0x194   :  { %9708 = vst [vmem:[#allocation62_spill] sm:$0xff] %v6931_v61  ;;  %v6934_v24 = vadd.f32 1e-05, %v1541_v35  ;;  %v6937_v48 = vmul.f32 %v6067_v44, %v1323_v0  ;;  %v6941_v57 = vpop.f32.mrf.mxu0  ;;  %v1506_v9 = vadd.f32 %v1505_v4, %v1504_v26  ;;  %v6944_v8 = vpop.f32.mrf.mxu1  ;;  %4861 = vset.pattern.permute.xlu0 %v9520_v28  ;;  %v6951_v60 = vmul.f32 %v6067_v44, %v1336_v25 }
 0x195   :  { %9709 = vst [vmem:[#allocation63_spill] sm:$0xff] %v6939_v32  ;;  %4891 = vrsqrt.f32 %v6929_v3  ;;  %2897 = vperm.xlu0 %4861, %v6672_v55   ;;  %v1519_v37 = vadd.f32 %v1518_v38, %v1517_v17  ;;  %vm1662_vm15 = vweird.f32 %v6929_v3  ;;  %v9716_v32 = vmov 5  }
 0x196   :  { %9710 = vst [vmem:[#allocation64_spill] sm:$0xff] %v6941_v57  ;;  %4893 = vrsqrt.f32 %v6934_v24  ;;  %v1534_v50 = vmul.f32 %v6937_v48, %v6937_v48  ;;  %v1526_v16 = vmul.f32 %v1506_v9, %v6067_v44  ;;  %v1535_v0 = vmul.f32 %v6951_v60, %v6951_v60 }
 0x197   :  { %9711 = vst [vmem:[#allocation65_spill] sm:$0xff] %v6944_v8  ;;  %2813 = vperm.xlu1 %4859, %v6878_v41   ;;  %vm1672_vm0 = vweird.f32 %v6934_v24 }
 0x198   :  { %v1542_v26 = vsub.f32 %v1526_v16, %v1534_v50  ;;  %v1527_v16 = vmul.f32 %v1519_v37, %v6067_v44 }
 0x199   :  { %4862 = vset.pattern.permute.xlu2 %v9520_v28 }
 0x19a   :  { %v6974_v17 = vadd.f32 1e-05, %v1542_v26  ;;  %2893 = vperm.xlu2 %4862, %v6904_v52  }
 0x19b   :  { %v6972_v50 = vpop.eup %4891  ;;  %v6977_v38 = vpop.f32.mrf.mxu2 }
 0x19c   :  { %9712 = vst [vmem:[#allocation66_spill] sm:$0xff] %v6977_v38  ;;  %v6984_v25 = vpop.eup %4893  ;;  %v1657_v46 = vmul.f32 %v6972_v50, %v6929_v3  ;;  %v6989_v26 = vpop.f32.mrf.mxu3  ;;  %4895 = vrsqrt.f32 %v6974_v17  ;;  %vm1663_vm1 = vweird.f32 %v6972_v50  ;;  %vm1682_vm3 = vweird.f32 %v6974_v17 }
 0x19d   :  { %9713 = vst [vmem:[#allocation67_spill] sm:$0xff] %v6989_v26  ;;  %v6991_v37 = vpop.f32.mrf.mxu0  ;;  %v1667_v49 = vmul.f32 %v6984_v25, %v6934_v24  ;;  %v7003_v4 = vpop.f32.mrf.mxu1  ;;  %v1543_v26 = vsub.f32 %v1527_v16, %v1535_v0  ;;  %4863 = vset.pattern.permute.xlu0 %v9707_v5  ;;  %vm1673_vm2 = vweird.f32 %v6984_v25  ;;  %vm1664_vm4 = vmor %vm1662_vm15, %vm1663_vm1 }
 0x19e   :  { %9714 = vst [vmem:[#allocation68_spill] sm:$0xff] %v6991_v37  ;;  %v1658_v9 = vmul.f32 %v6972_v50, %v1657_v46  ;;  %2809 = vperm.xlu0 %4863, %v6644_v22   ;;  %vm1674_vm5 = vmor %vm1672_vm0, %vm1673_vm2 }
 0x19f   :  { %9715 = vst [vmem:[#allocation69_spill] sm:$0xff] %v7003_v4  ;;  %v1668_v38 = vmul.f32 %v6984_v25, %v1667_v49  ;;  %4864 = vset.pattern.permute.xlu1 %v9716_v32  ;;  %v7024_v52 = vadd.f32 1e-05, %v1543_v26 }
 0x1a0   :  { %v1659_v16 = vmul.f32 0.5, %v1658_v9  ;;  %2885 = vperm.xlu1 %4864, %v6878_v41  }
 0x1a1   :  { %v1669_v55 = vmul.f32 0.5, %v1668_v38  ;;  %4897 = vrsqrt.f32 %v7024_v52  ;;  %vm1692_vm7 = vweird.f32 %v7024_v52 }
 0x1a2   :  { %v1660_v0 = vsub.f32 1.5, %v1659_v16  ;;  %v7039_v26 = vpop.eup %4895  ;;  %2889 = vperm.xlu2 %4862, %v6663_v13   ;;  %v9722_v13 = vsub.f32 %v6855_v54, %v6914_v45 }
 0x1a3   :  { %v1670_v38 = vsub.f32 1.5, %v1669_v55  ;;  %v7041_v49 = vpop.f32.mrf.mxu2  ;;  %v1677_v9 = vmul.f32 %v7039_v26, %v6974_v17  ;;  %vm1683_vm6 = vweird.f32 %v7039_v26 }
 0x1a4   :  { %9717 = vst [vmem:[#allocation70_spill] sm:$0xff] %v7041_v49  ;;  %v1661_v28 = vmul.f32 %v6972_v50, %v1660_v0  ;;  %v7053_v41 = vpop.f32.mrf.mxu3  ;;  %vm1684_vm9 = vmor %vm1682_vm3, %vm1683_vm6 }
 0x1a5   :  { %9718 = vst [vmem:[#allocation71_spill] sm:$0xff] %v7053_v41  ;;  %v7055_v55 = vpop.f32.mrf.mxu0  ;;  %v1671_v0 = vmul.f32 %v6984_v25, %v1670_v38  ;;  %v7067_v16 = vpop.f32.mrf.mxu1  ;;  %v1678_v3 = vmul.f32 %v7039_v26, %v1677_v9  ;;  %v9721_v38 = vld [vmem:[#allocation10_spill] sm:$0xff]  ;;  %v9724_v9 = vsub.f32 %v6802_v11, %v6914_v45  ;;  %v9725_v41 = vsub.f32 %v6862_v14, %v6919_v42  ;;  %v9728_v14 = vld [vmem:[#allocation19_spill] sm:$0xff] }
 0x1a6   :  { %9719 = vst [vmem:[#allocation72_spill] sm:$0xff] %v7055_v55  ;;  %v7076_v46 = vsel %vm1664_vm4, %v6972_v50, %v1661_v28  ;;  %v9723_v50 = vsub.f32 %v6820_v23, %v6914_v45  ;;  %v9733_v55 = vld [vmem:[#allocation28_spill] sm:$0xff] }
 0x1a7   :  { %9720 = vst [vmem:[#allocation73_spill] sm:$0xff] %v7067_v16  ;;  %v1756_v35 = vmul.f32 %v7076_v46, %v9722_v13  ;;  %v7091_v28 = vsel %vm1674_vm5, %v6984_v25, %v1671_v0  ;;  %v1740_v49 = vmul.f32 %v7076_v46, %v9724_v9  ;;  %v4898_v16 = vpop.eup %4897  ;;  %v1679_v13 = vmul.f32 0.5, %v1678_v3  ;;  %v9729_v3 = vld [vmem:[#allocation40_spill] sm:$0xff] }
 0x1a8   :  { %v1748_v24 = vmul.f32 %v7076_v46, %v9723_v50  ;;  %v1757_v54 = vmul.f32 %v7091_v28, %v9725_v41  ;;  %2881 = vperm.xlu1 %4864, %v6644_v22   ;;  %v9726_v25 = vsub.f32 %v6828_v47, %v6919_v42  ;;  %v9727_v0 = vsub.f32 %v6805_v62, %v6919_v42 }
 0x1a9   :  { %v1687_v50 = vmul.f32 %v4898_v16, %v7024_v52  ;;  %vm1693_vm8 = vweird.f32 %v4898_v16  ;;  %v1852_v41 = vmul.f32 %v9728_v14, %v1756_v35  ;;  %v1680_v22 = vsub.f32 1.5, %v1679_v13 }
 0x1aa   :  { %v1749_v23 = vmul.f32 %v7091_v28, %v9726_v25  ;;  %v1741_v11 = vmul.f32 %v7091_v28, %v9727_v0  ;;  %v1844_v9 = vmul.f32 %v9729_v3, %v1748_v24  ;;  %v1853_v61 = vmul.f32 %v9728_v14, %v1757_v54  ;;  %v9730_v25 = vld [vmem:[#allocation23_spill] sm:$0xff]  ;;  %v9732_v0 = vld [vmem:[#allocation22_spill] sm:$0xff]  ;;  %4865 = vset.pattern.permute.xlu2 %v9707_v5  ;;  %vm1694_vm10 = vmor %vm1692_vm7, %vm1693_vm8 }
 0x1ab   :  { %v1836_v4 = vmul.f32 %v9730_v25, %v1740_v49  ;;  %v1688_v8 = vmul.f32 %v4898_v16, %v1687_v50  ;;  %v7121_v62 = vpop.f32.mrf.mxu2  ;;  %v1948_v29 = vadd.f32 %v9732_v0, %v1852_v41  ;;  %v1681_v35 = vmul.f32 %v7039_v26, %v1680_v22  ;;  %v9736_v49 = vld [vmem:[#allocation46_spill] sm:$0xff] }
 0x1ac   :  { %v1845_v47 = vmul.f32 %v9729_v3, %v1749_v23  ;;  %9731 = vst [vmem:[#allocation10_spill] sm:$0xff] %v7121_v62  ;;  %v1940_v37 = vadd.f32 %v9733_v55, %v1844_v9  ;;  %v1837_v57 = vmul.f32 %v9730_v25, %v1741_v11  ;;  %v7127_v36 = vpop.f32.mrf.mxu3  ;;  %v1949_v54 = vadd.f32 %v9732_v0, %v1853_v61 }
 0x1ad   :  { %9734 = vst [vmem:[#allocation19_spill] sm:$0xff] %v7127_v36  ;;  %v7129_v24 = vpop.f32.mrf.mxu0  ;;  %v1932_v23 = vadd.f32 %v9736_v49, %v1836_v4  ;;  %v1689_v11 = vmul.f32 0.5, %v1688_v8  ;;  %v7139_v50 = vpop.f32.mrf.mxu1  ;;  %v2012_v41 = vmax.f32 %v1948_v29, 0.0  ;;  %v9738_v36 = vld [vmem:[#allocation61_spill] sm:$0xff]  ;;  %v7144_v61 = vsel %vm1684_vm9, %v7039_v26, %v1681_v35 }
 0x1ae   :  { %9735 = vst [vmem:[#allocation40_spill] sm:$0xff] %v7129_v24  ;;  %v1941_v13 = vadd.f32 %v9733_v55, %v1845_v47  ;;  %v2004_v9 = vmax.f32 %v1940_v37, 0.0  ;;  %v1933_v22 = vadd.f32 %v9736_v49, %v1837_v57  ;;  %2805 = vperm.xlu2 %4865, %v9738_v36   ;;  %v2013_v4 = vmax.f32 %v1949_v54, 0.0 }
 0x1af   :  { %9737 = vst [vmem:[#allocation23_spill] sm:$0xff] %v7139_v50  ;;  %v1996_v5 = vmax.f32 %v1932_v23, 0.0  ;;  %v9739_v62 = vsub.f32 %v6884_v2, %v6937_v48  ;;  %v1690_v8 = vsub.f32 1.5, %v1689_v11  ;;  %2225 = vmatpush.msrb.mxu0 %v2012_v41  ;;  %v9740_v29 = vsub.f32 %v6778_v7, %v6914_v45 }
 0x1b0   :  { %v2005_v47 = vmax.f32 %v1941_v13, 0.0  ;;  %v1997_v50 = vmax.f32 %v1933_v22, 0.0  ;;  %2260 = vmatpush.msrb.mxu1 %v2013_v4  ;;  %v9741_v37 = vsub.f32 %v6781_v53, %v6919_v42  ;;  %v9742_v35 = vsub.f32 %v6749_v39, %v6914_v45  ;;  %v9745_v53 = vld [vmem:[#allocation33_spill] sm:$0xff] }
 0x1b1   :  { %v1758_v17 = vmul.f32 %v7144_v61, %v9739_v62  ;;  %v1732_v57 = vmul.f32 %v7076_v46, %v9740_v29  ;;  %v9743_v62 = vsub.f32 %v6757_v21, %v6919_v42  ;;  %v9744_v7 = vsub.f32 %v6846_v31, %v6937_v48  ;;  %2226 = vmatpush.msrb.mxu0 %v2004_v9  ;;  %v9747_v31 = vld [vmem:[#allocation34_spill] sm:$0xff] }
 0x1b2   :  { %v1733_v26 = vmul.f32 %v7091_v28, %v9741_v37  ;;  %v1724_v2 = vmul.f32 %v7076_v46, %v9742_v35  ;;  %v1691_v23 = vmul.f32 %v4898_v16, %v1690_v8  ;;  %v9746_v39 = vsub.f32 %v6710_v58, %v6914_v45  ;;  %2261 = vmatpush.msrb.mxu1 %v2005_v47  ;;  %v9749_v37 = vld [vmem:[#allocation45_spill] sm:$0xff] }
 0x1b3   :  { %v1725_v54 = vmul.f32 %v7091_v28, %v9743_v62  ;;  %v1750_v13 = vmul.f32 %v7144_v61, %v9744_v7  ;;  %v1828_v11 = vmul.f32 %v9745_v53, %v1732_v57  ;;  %v1854_v41 = vmul.f32 %v9728_v14, %v1758_v17  ;;  %2227 = vmatpush.msrb.mxu0 %v1996_v5  ;;  %v9748_v17 = vld [vmem:[#allocation39_spill] sm:$0xff]  ;;  %v9752_v62 = vld [vmem:[#allocation5_spill] sm:$0xff] }
 0x1b4   :  { %v1716_v22 = vmul.f32 %v7076_v46, %v9746_v39  ;;  %v1829_v21 = vmul.f32 %v9745_v53, %v1733_v26  ;;  %v1820_v4 = vmul.f32 %v9747_v31, %v1724_v2  ;;  %v7183_v29 = vsel %vm1694_vm10, %v4898_v16, %v1691_v23  ;;  %v7192_v26 = vpop.f32.mrf.mxu2  ;;  %2262 = vmatpush.msrb.mxu1 %v1997_v50 }
 0x1b5   :  { %v1821_v9 = vmul.f32 %v9747_v31, %v1725_v54  ;;  %v1846_v8 = vmul.f32 %v9729_v3, %v1750_v13  ;;  %v1924_v58 = vadd.f32 %v9748_v17, %v1828_v11  ;;  %v1950_v57 = vadd.f32 %v9732_v0, %v1854_v41  ;;  %9751 = vst [vmem:[#allocation22_spill] sm:$0xff] %v7192_v26  ;;  %v7197_v54 = vpop.f32.mrf.mxu3  ;;  %v7199_v7 = vpop.f32.mrf.mxu0 }
 0x1b6   :  { %v1812_v35 = vmul.f32 %v9749_v37, %v1716_v22  ;;  %v9750_v52 = vsub.f32 %v6889_v34, %v6951_v60  ;;  %v1925_v2 = vadd.f32 %v9748_v17, %v1829_v21  ;;  %v1916_v16 = vadd.f32 %v9752_v62, %v1820_v4  ;;  %9753 = vst [vmem:[#allocation28_spill] sm:$0xff] %v7197_v54  ;;  %v7207_v50 = vpop.f32.mrf.mxu1 }
 0x1b7   :  { %v1917_v5 = vadd.f32 %v9752_v62, %v1821_v9  ;;  %9754 = vst [vmem:[#allocation46_spill] sm:$0xff] %v7199_v7  ;;  %v1988_v13 = vmax.f32 %v1924_v58, 0.0  ;;  %v2014_v23 = vmax.f32 %v1950_v57, 0.0  ;;  %v1942_v11 = vadd.f32 %v9733_v55, %v1846_v8  ;;  %4866 = vset.pattern.permute.xlu2 %v9716_v32  ;;  %v9757_v58 = vld [vmem:[#allocation14_spill] sm:$0xff] }
 0x1b8   :  { %v1759_v47 = vmul.f32 %v7183_v29, %v9750_v52  ;;  %v9755_v34 = vsub.f32 %v6852_v10, %v6951_v60  ;;  %9756 = vst [vmem:[#allocation61_spill] sm:$0xff] %v7207_v50  ;;  %v1989_v39 = vmax.f32 %v1925_v2, 0.0  ;;  %v1980_v21 = vmax.f32 %v1916_v16, 0.0  ;;  %2877 = vperm.xlu2 %4866, %v9738_v36  }
 0x1b9   :  { %v1981_v4 = vmax.f32 %v1917_v5, 0.0  ;;  %2228 = vmatpush.msrb.mxu0 %v1988_v13  ;;  %2295 = vmatpush.msrb.mxu2 %v2014_v23  ;;  %v2006_v9 = vmax.f32 %v1942_v11, 0.0  ;;  %v1908_v10 = vadd.f32 %v9757_v58, %v1812_v35  ;;  %v9758_v57 = vsub.f32 %v6713_v59, %v6919_v42  ;;  %v9763_v23 = vld [vmem:[#allocation12_spill] sm:$0xff] }
 0x1ba   :  { %v1751_v41 = vmul.f32 %v7183_v29, %v9755_v34  ;;  %v1855_v22 = vmul.f32 %v9728_v14, %v1759_v47  ;;  %2263 = vmatpush.msrb.mxu1 %v1989_v39  ;;  %v9759_v14 = vsub.f32 %v6832_v63, %v6937_v48  ;;  %v9760_v47 = vsub.f32 %v6838_v1, %v6951_v60 }
 0x1bb   :  { %v1717_v32 = vmul.f32 %v7091_v28, %v9758_v57  ;;  %v9761_v35 = vsub.f32 %v6680_v6, %v6914_v45  ;;  %2229 = vmatpush.msrb.mxu0 %v1980_v21  ;;  %2296 = vmatpush.msrb.mxu2 %v2006_v9  ;;  %v9762_v63 = vsub.f32 %v6683_v18, %v6919_v42  ;;  %vm3004_vm8 = vcmask 392192  }
 0x1bc   :  { %v1847_v8 = vmul.f32 %v9729_v3, %v1751_v41  ;;  %v1951_v52 = vadd.f32 %v9732_v0, %v1855_v22  ;;  %v1742_v36 = vmul.f32 %v7144_v61, %v9759_v14  ;;  %v1743_v3 = vmul.f32 %v7183_v29, %v9760_v47  ;;  %2264 = vmatpush.msrb.mxu1 %v1981_v4  ;;  %v9765_v4 = vld [vmem:[#allocation7_spill] sm:$0xff] }
 0x1bd   :  { %v1708_v59 = vmul.f32 %v7076_v46, %v9761_v35  ;;  %v1972_v0 = vmax.f32 %v1908_v10, 0.0  ;;  %v1813_v16 = vmul.f32 %v9749_v37, %v1717_v32  ;;  %v1709_v5 = vmul.f32 %v7091_v28, %v9762_v63  ;;  %v7263_v35 = vpop.f32.mrf.mxu3 }
 0x1be   :  { %v1943_v2 = vadd.f32 %v9733_v55, %v1847_v8  ;;  %v2015_v1 = vmax.f32 %v1951_v52, 0.0  ;;  %v1838_v13 = vmul.f32 %v9730_v25, %v1742_v36  ;;  %v1839_v6 = vmul.f32 %v9730_v25, %v1743_v3  ;;  %v7258_v36 = vpop.f32.mrf.mxu2  ;;  %9770 = vst [vmem:[#allocation39_spill] sm:$0xff] %v7263_v35 }
 0x1bf   :  { %v1804_v11 = vmul.f32 %v9763_v23, %v1708_v59  ;;  %2230 = vmatpush.msrb.mxu0 %v1972_v0  ;;  %v1909_v55 = vadd.f32 %v9757_v58, %v1813_v16  ;;  %v1805_v41 = vmul.f32 %v9763_v23, %v1709_v5  ;;  %v9764_v39 = vsub.f32 %v6794_v56, %v6937_v48  ;;  %v7261_v3 = vpop.f32.mrf.mxu0  ;;  %v7266_v0 = vpop.f32.mrf.mxu1 }
 0x1c0   :  { %v2007_v34 = vmax.f32 %v1943_v2, 0.0  ;;  %2330 = vmatpush.msrb.mxu3 %v2015_v1  ;;  %v1934_v22 = vadd.f32 %v9736_v49, %v1838_v13  ;;  %v1935_v21 = vadd.f32 %v9736_v49, %v1839_v6  ;;  %v9766_v9 = vsub.f32 %v6797_v12, %v6951_v60  ;;  %9768 = vst [vmem:[#allocation33_spill] sm:$0xff] %v7258_v36 }
 0x1c1   :  { %v1734_v18 = vmul.f32 %v7144_v61, %v9764_v39  ;;  %v1900_v25 = vadd.f32 %v9765_v4, %v1804_v11  ;;  %v1973_v10 = vmax.f32 %v1909_v55, 0.0  ;;  %v1901_v57 = vadd.f32 %v9765_v4, %v1805_v41  ;;  %9769 = vst [vmem:[#allocation34_spill] sm:$0xff] %v7261_v3 }
 0x1c2   :  { %v1735_v8 = vmul.f32 %v7183_v29, %v9766_v9  ;;  %v9767_v56 = vsub.f32 %v6687_v27, %v6914_v45  ;;  %2331 = vmatpush.msrb.mxu3 %v2007_v34  ;;  %v1998_v14 = vmax.f32 %v1934_v22, 0.0  ;;  %v1999_v49 = vmax.f32 %v1935_v21, 0.0  ;;  %9771 = vst [vmem:[#allocation45_spill] sm:$0xff] %v7266_v0  ;;  %v9772_v27 = vld [vmem:[#allocation53_spill] sm:$0xff] }
 0x1c3   :  { %v1830_v32 = vmul.f32 %v9745_v53, %v1734_v18  ;;  %v1964_v47 = vmax.f32 %v1900_v25, 0.0  ;;  %2265 = vmatpush.msrb.mxu1 %v1973_v10  ;;  %v1965_v59 = vmax.f32 %v1901_v57, 0.0  ;;  %v9774_v63 = vsub.f32 %v6764_v19, %v6937_v48 }
 0x1c4   :  { %v1700_v52 = vmul.f32 %v7076_v46, %v9767_v56  ;;  %v1831_v12 = vmul.f32 %v9745_v53, %v1735_v8  ;;  %v9773_v46 = vsub.f32 %v6691_v30, %v6919_v42  ;;  %2297 = vmatpush.msrb.mxu2 %v1998_v14  ;;  %2332 = vmatpush.msrb.mxu3 %v1999_v49  ;;  %v9776_v30 = vld [vmem:[#allocation58_spill] sm:$0xff] }
 0x1c5   :  { %v1926_v2 = vadd.f32 %v9748_v17, %v1830_v32  ;;  %v1726_v5 = vmul.f32 %v7144_v61, %v9774_v63  ;;  %v9775_v1 = vsub.f32 %v6770_v43, %v6951_v60  ;;  %2231 = vmatpush.msrb.mxu0 %v1964_v47  ;;  %2266 = vmatpush.msrb.mxu1 %v1965_v59  ;;  %v4951_v63 = vld [vmem:[%s9451_s2 + $0x8] sm:$0xff] }
 0x1c6   :  { %v1796_v45 = vmul.f32 %v9772_v27, %v1700_v52  ;;  %v1701_v16 = vmul.f32 %v7091_v28, %v9773_v46  ;;  %v1927_v53 = vadd.f32 %v9748_v17, %v1831_v12  ;;  %v9777_v17 = vsub.f32 %v6743_v15, %v6937_v48 }
 0x1c7   :  { %v1727_v13 = vmul.f32 %v7183_v29, %v9775_v1  ;;  %v1990_v6 = vmax.f32 %v1926_v2, 0.0  ;;  %v1822_v34 = vmul.f32 %v9747_v31, %v1726_v5  ;;  %v9778_v43 = vsub.f32 %v6746_v40, %v6951_v60 }
 0x1c8   :  { %v1892_v42 = vadd.f32 %v9776_v30, %v1796_v45  ;;  %v1797_v28 = vmul.f32 %v9772_v27, %v1701_v16  ;;  %v1718_v11 = vmul.f32 %v7144_v61, %v9777_v17  ;;  %v1991_v19 = vmax.f32 %v1927_v53, 0.0  ;;  %v2094_v49 = vpop.f32.mrf.mxu0  ;;  %v7326_v45 = vpop.f32.mrf.mxu2 }
 0x1c9   :  { %v1823_v55 = vmul.f32 %v9747_v31, %v1727_v13  ;;  %v1719_v41 = vmul.f32 %v7183_v29, %v9778_v43  ;;  %2298 = vmatpush.msrb.mxu2 %v1990_v6  ;;  %v9779_v15 = vsub.f32 %v6703_v51, %v6937_v48  ;;  %v1918_v25 = vadd.f32 %v9752_v62, %v1822_v34  ;;  %v2129_v12 = vpop.f32.mrf.mxu1  ;;  %v4952_v6 = vld [vmem:[%s9451_s2 + $0x10] sm:$0xff]  ;;  %v7349_v17 = vpop.permute.xlu0 %2030 }
 0x1ca   :  { %v1956_v39 = vmax.f32 %v1892_v42, 0.0  ;;  %v1893_v18 = vadd.f32 %v9776_v30, %v1797_v28  ;;  %v1814_v22 = vmul.f32 %v9749_v37, %v1718_v11  ;;  %2333 = vmatpush.msrb.mxu3 %v1991_v19  ;;  %v9780_v9 = vsub.f32 %v6706_v20, %v6951_v60  ;;  %9783 = vst [vmem:[#allocation5_spill] sm:$0xff] %v7326_v45  ;;  %v7345_v42 = vpop.permute.xlu1 %2035 }
 0x1cb   :  { %v1710_v21 = vmul.f32 %v7144_v61, %v9779_v15  ;;  %v1919_v31 = vadd.f32 %v9752_v62, %v1823_v55  ;;  %v1815_v40 = vmul.f32 %v9749_v37, %v1719_v41  ;;  %v9781_v32 = vsub.f32 %v6694_v33, %v6937_v48  ;;  %v4950_v37 = vld [vmem:[%s9451_s2] sm:$0xff]  ;;  %v4953_v41 = vld [vmem:[%s9451_s2 + $0x18] sm:$0xff] }
 0x1cc   :  { %v1711_v8 = vmul.f32 %v7183_v29, %v9780_v9  ;;  %2232 = vmatpush.msrb.mxu0 %v1956_v39  ;;  %v1957_v10 = vmax.f32 %v1893_v18, 0.0  ;;  %v1910_v57 = vadd.f32 %v9757_v58, %v1814_v22  ;;  %v1982_v52 = vmax.f32 %v1918_v25, 0.0 }
 0x1cd   :  { %v1806_v51 = vmul.f32 %v9763_v23, %v1710_v21  ;;  %v1702_v56 = vmul.f32 %v7144_v61, %v9781_v32  ;;  %v1983_v62 = vmax.f32 %v1919_v31, 0.0  ;;  %4734 = vmatmul.msk.f32.vlgmr.msrb.gmra.mxu0 %vm2058_vm14, %v4950_v37  ;;  %v1911_v20 = vadd.f32 %v9757_v58, %v1815_v40 }
 0x1ce   :  { %v1807_v14 = vmul.f32 %v9763_v23, %v1711_v8  ;;  %2267 = vmatpush.msrb.mxu1 %v1957_v10  ;;  %v9782_v48 = vsub.f32 %v9721_v38, %v6951_v60  ;;  %2299 = vmatpush.msrb.mxu2 %v1982_v52  ;;  %v1974_v59 = vmax.f32 %v1910_v57, 0.0  ;;  %v7329_v23 = vpop.f32.mrf.mxu3  ;;  %v7353_v34 = vadd.f32 %v2094_v49, %v7349_v17 }
 0x1cf   :  { %v1902_v47 = vadd.f32 %v9765_v4, %v1806_v51  ;;  %v1798_v33 = vmul.f32 %v9772_v27, %v1702_v56  ;;  %2334 = vmatpush.msrb.mxu3 %v1983_v62  ;;  %v1975_v2 = vmax.f32 %v1911_v20, 0.0  ;;  %4740 = vmatmul.msk.f32.vlgmr.msrb.gmra.mxu1 %vm2058_vm14, %v4950_v37  ;;  %9784 = vst [vmem:[#allocation14_spill] sm:$0xff] %v7329_v23  ;;  %v5002_v9 = vmov 48.0  }
 0x1d0   :  { %v1703_v61 = vmul.f32 %v7183_v29, %v9782_v48  ;;  %v1903_v58 = vadd.f32 %v9765_v4, %v1807_v14  ;;  %2300 = vmatpush.msrb.mxu2 %v1974_v59  ;;  %v2460_v15 = vmul.f32 %v7353_v34, %v7353_v34  ;;  %v7376_v31 = vadd.f32 %v2129_v12, %v7349_v17  ;;  %v4954_v59 = vld [vmem:[%s9451_s2 + $0x20] sm:$0xff] }
 0x1d1   :  { %v1894_v46 = vadd.f32 %v9776_v30, %v1798_v33  ;;  %2335 = vmatpush.msrb.mxu3 %v1975_v2  ;;  %v1966_v60 = vmax.f32 %v1902_v47, 0.0  ;;  %v2097_v5 = vpop.f32.mrf.mxu0  ;;  %4899 = vrcp.f32 %v5002_v9 }
 0x1d2   :  { %v1799_v16 = vmul.f32 %v9772_v27, %v1703_v61  ;;  %v1967_v38 = vmax.f32 %v1903_v58, 0.0  ;;  %v2132_v27 = vpop.f32.mrf.mxu1  ;;  %v7358_v43 = vadd.f32 %v2097_v5, %v7345_v42  ;;  %v7371_v21 = vpop.permute.xlu1 %2045  ;;  %v2461_v47 = vmul.f32 %v7376_v31, %v7376_v31 }
 0x1d3   :  { %2301 = vmatpush.msrb.mxu2 %v1966_v60  ;;  %v1958_v53 = vmax.f32 %v1894_v46, 0.0  ;;  %v7382_v8 = vadd.f32 %v2132_v27, %v7345_v42 }
 0x1d4   :  { %v1895_v29 = vadd.f32 %v9776_v30, %v1799_v16  ;;  %2336 = vmatpush.msrb.mxu3 %v1967_v38  ;;  %v2468_v25 = vmul.f32 %v7358_v43, %v7358_v43  ;;  %v2357_v40 = vadd.f32 %v7358_v43, %v7353_v34 }
 0x1d5   :  { %2302 = vmatpush.msrb.mxu2 %v1958_v53  ;;  %4735 = vmatmul.msk.f32.gmra.mxu0 %vm2058_vm14, %v4951_v63  ;;  %v2469_v33 = vmul.f32 %v7382_v8, %v7382_v8 }
 0x1d6   :  { %v1959_v4 = vmax.f32 %v1895_v29, 0.0  ;;  %4746 = vmatmul.msk.f32.vlgmr.msrb.gmra.mxu2 %vm2058_vm14, %v4950_v37  ;;  %v2164_v1 = vpop.f32.mrf.mxu2  ;;  %v2199_v13 = vpop.f32.mrf.mxu3  ;;  %v2508_v62 = vadd.f32 %v2468_v25, %v2460_v15 }
 0x1d7   :  { %4741 = vmatmul.msk.f32.gmra.mxu1 %vm2058_vm14, %v4951_v63  ;;  %v7385_v57 = vadd.f32 %v2164_v1, %v7349_v17  ;;  %v7400_v14 = vadd.f32 %v2199_v13, %v7349_v17  ;;  %v7423_v16 = vpop.eup %4899  ;;  %v2519_v1 = vadd.f32 %v2469_v33, %v2461_v47 }
 0x1d8   :  { %2337 = vmatpush.msrb.mxu3 %v1959_v4  ;;  %vm2450_vm11 = vweird.f32 %v7423_v16 }
 0x1d9   :  { %4752 = vmatmul.msk.f32.vlgmr.msrb.gmra.mxu3 %vm2058_vm14, %v4950_v37  ;;  %v2100_v30 = vpop.f32.mrf.mxu0  ;;  %v2368_v37 = vadd.f32 %v7382_v8, %v7376_v31  ;;  %v2462_v38 = vmul.f32 %v7385_v57, %v7385_v57 }
 0x1da   :  { %v2135_v28 = vpop.f32.mrf.mxu1  ;;  %v7355_v55 = vpop.permute.xlu2 %2040 }
 0x1db   :  { %v7366_v22 = vadd.f32 %v2100_v30, %v7355_v55  ;;  %v7388_v51 = vadd.f32 %v2135_v28, %v7355_v55 }
 0x1dd   :  { %4736 = vmatmul.msk.f32.gmra.mxu0 %vm2058_vm14, %v4952_v6  ;;  %v2476_v52 = vmul.f32 %v7366_v22, %v7366_v22  ;;  %v2358_v12 = vadd.f32 %v2357_v40, %v7366_v22  ;;  %v2369_v58 = vadd.f32 %v2368_v37, %v7388_v51  ;;  %v2477_v46 = vmul.f32 %v7388_v51, %v7388_v51 }
 0x1de   :  { %4747 = vmatmul.msk.f32.gmra.mxu2 %vm2058_vm14, %v4951_v63  ;;  %v2167_v11 = vpop.f32.mrf.mxu2  ;;  %v2202_v19 = vpop.f32.mrf.mxu3 }
 0x1df   :  { %4742 = vmatmul.msk.f32.gmra.mxu1 %vm2058_vm14, %v4952_v6  ;;  %v7410_v48 = vadd.f32 %v2167_v11, %v7345_v42  ;;  %v7413_v61 = vadd.f32 %v2202_v19, %v7345_v42  ;;  %v2509_v4 = vadd.f32 %v2508_v62, %v2476_v52 }
 0x1e1   :  { %4753 = vmatmul.msk.f32.gmra.mxu3 %vm2058_vm14, %v4951_v63  ;;  %v2103_v39 = vpop.f32.mrf.mxu0  ;;  %v2463_v63 = vmul.f32 %v7400_v14, %v7400_v14  ;;  %v2471_v30 = vmul.f32 %v7413_v61, %v7413_v61  ;;  %v2379_v9 = vadd.f32 %v7410_v48, %v7385_v57  ;;  %v2390_v47 = vadd.f32 %v7413_v61, %v7400_v14 }
 0x1e2   :  { %v2138_v18 = vpop.f32.mrf.mxu1  ;;  %v7391_v56 = vadd.f32 %v2103_v39, %v7371_v21  ;;  %v7397_v20 = vpop.permute.xlu2 %2050 }
 0x1e3   :  { %9785 = vst [vmem:[#allocation12_spill] sm:$0xff] %v7397_v20  ;;  %v7403_v49 = vadd.f32 %v2138_v18, %v7371_v21  ;;  %v2520_v18 = vadd.f32 %v2519_v1, %v2477_v46 }
 0x1e4   :  { %v2484_v53 = vmul.f32 %v7391_v56, %v7391_v56  ;;  %v2359_v28 = vadd.f32 %v2358_v12, %v7391_v56  ;;  %v4955_v12 = vld [vmem:[%s9451_s2 + $0x28] sm:$0xff] }
 0x1e5   :  { %4737 = vmatmul.msk.f32.gmra.mxu0 %vm2058_vm14, %v4953_v41  ;;  %v2485_v27 = vmul.f32 %v7403_v49, %v7403_v49  ;;  %v2370_v39 = vadd.f32 %v2369_v58, %v7403_v49  ;;  %v2541_v58 = vadd.f32 %v2471_v30, %v2463_v63 }
 0x1e6   :  { %4748 = vmatmul.msk.f32.gmra.mxu2 %vm2058_vm14, %v4952_v6  ;;  %v2170_v10 = vpop.f32.mrf.mxu2  ;;  %v2205_v32 = vpop.f32.mrf.mxu3  ;;  %v2510_v40 = vadd.f32 %v2509_v4, %v2484_v53 }
 0x1e7   :  { %4743 = vmatmul.msk.f32.gmra.mxu1 %vm2058_vm14, %v4953_v41  ;;  %v7443_v13 = vadd.f32 %v2170_v10, %v7355_v55  ;;  %v7451_v19 = vadd.f32 %v2205_v32, %v7355_v55  ;;  %v7459_v10 = vpop.permute.xlu0 %2055  ;;  %v2521_v32 = vadd.f32 %v2520_v18, %v2485_v27 }
 0x1e8   :  { %9786 = vst [vmem:[#allocation7_spill] sm:$0xff] %v7459_v10 }
 0x1e9   :  { %4754 = vmatmul.msk.f32.gmra.mxu3 %vm2058_vm14, %v4952_v6  ;;  %v2106_v2 = vpop.f32.mrf.mxu0  ;;  %v2470_v6 = vmul.f32 %v7410_v48, %v7410_v48  ;;  %v2478_v62 = vmul.f32 %v7443_v13, %v7443_v13 }
 0x1ea   :  { %v2141_v60 = vpop.f32.mrf.mxu1  ;;  %v7429_v29 = vadd.f32 %v2106_v2, %v7397_v20  ;;  %v2479_v2 = vmul.f32 %v7451_v19, %v7451_v19 }
 0x1eb   :  { %v7437_v5 = vadd.f32 %v2141_v60, %v7397_v20  ;;  %v2530_v37 = vadd.f32 %v2470_v6, %v2462_v38  ;;  %v2380_v6 = vadd.f32 %v2379_v9, %v7443_v13 }
 0x1ec   :  { %v2492_v25 = vmul.f32 %v7429_v29, %v7429_v29  ;;  %v2360_v33 = vadd.f32 %v2359_v28, %v7429_v29 }
 0x1ed   :  { %4738 = vmatmul.msk.f32.gmra.mxu0 %vm2058_vm14, %v4954_v59  ;;  %v2493_v52 = vmul.f32 %v7437_v5, %v7437_v5  ;;  %v2371_v53 = vadd.f32 %v2370_v39, %v7437_v5 }
 0x1ee   :  { %4749 = vmatmul.msk.f32.gmra.mxu2 %vm2058_vm14, %v4953_v41  ;;  %v2173_v11 = vpop.f32.mrf.mxu2  ;;  %v2208_v15 = vpop.f32.mrf.mxu3  ;;  %v2511_v27 = vadd.f32 %v2510_v40, %v2492_v25  ;;  %v2542_v25 = vadd.f32 %v2541_v58, %v2479_v2 }
 0x1ef   :  { %4744 = vmatmul.msk.f32.gmra.mxu1 %vm2058_vm14, %v4954_v59  ;;  %v7477_v38 = vadd.f32 %v2173_v11, %v7371_v21  ;;  %v7485_v63 = vadd.f32 %v2208_v15, %v7371_v21  ;;  %v2522_v28 = vadd.f32 %v2521_v32, %v2493_v52  ;;  %v2531_v11 = vadd.f32 %v2530_v37, %v2478_v62 }
 0x1f1   :  { %4755 = vmatmul.msk.f32.gmra.mxu3 %vm2058_vm14, %v4953_v41  ;;  %v2446_v41 = vmul.f32 48.0, %v7423_v16  ;;  %v2109_v46 = vpop.f32.mrf.mxu0  ;;  %v2486_v32 = vmul.f32 %v7477_v38, %v7477_v38  ;;  %v2487_v2 = vmul.f32 %v7485_v63, %v7485_v63 }
 0x1f2   :  { %v7480_v4 = vadd.f32 %v2109_v46, %v7459_v10  ;;  %v2144_v1 = vpop.f32.mrf.mxu1 }
 0x1f3   :  { %v2447_v60 = vsub.f32 1.0, %v2446_v41  ;;  %v7488_v30 = vadd.f32 %v2144_v1, %v7459_v10  ;;  %v2391_v41 = vadd.f32 %v2390_v47, %v7451_v19 }
 0x1f4   :  { %v2361_v39 = vadd.f32 %v2360_v33, %v7480_v4  ;;  %v2500_v18 = vmul.f32 %v7480_v4, %v7480_v4 }
 0x1f5   :  { %4739 = vmatmul.msk.f32.gmra.mxu0 %vm2058_vm14, %v4955_v12  ;;  %v2448_v40 = vmul.f32 %v7423_v16, %v2447_v60  ;;  %v2372_v15 = vadd.f32 %v2371_v53, %v7488_v30  ;;  %v2501_v9 = vmul.f32 %v7488_v30, %v7488_v30  ;;  %v2381_v60 = vadd.f32 %v2380_v6, %v7477_v38 }
 0x1f6   :  { %4750 = vmatmul.msk.f32.gmra.mxu2 %vm2058_vm14, %v4954_v59  ;;  %v2211_v62 = vpop.f32.mrf.mxu3  ;;  %v2362_v37 = vrot.slane %v2361_v39, 4  ;;  %v2512_v47 = vadd.f32 %v2511_v27, %v2500_v18 }
 0x1f7   :  { %4745 = vmatmul.msk.f32.gmra.mxu1 %vm2058_vm14, %v4955_v12  ;;  %v7505_v33 = vadd.f32 %v2211_v62, %v7397_v20  ;;  %v2373_v58 = vrot.slane %v2372_v15, 4  ;;  %v2523_v46 = vadd.f32 %v2522_v28, %v2501_v9  ;;  %v2449_v23 = vadd.f32 %v7423_v16, %v2448_v40 }
 0x1f8   :  { %v2363_v53 = vadd.f32 %v2362_v37, %v2361_v39  ;;  %v2513_v1 = vrot.slane %v2512_v47, 4  ;;  %v2532_v62 = vadd.f32 %v2531_v11, %v2486_v32  ;;  %v2543_v28 = vadd.f32 %v2542_v25, %v2487_v2 }
 0x1f9   :  { %4756 = vmatmul.msk.f32.gmra.mxu3 %vm2058_vm14, %v4954_v59  ;;  %v2176_v59 = vpop.f32.mrf.mxu2  ;;  %v2374_v45 = vadd.f32 %v2373_v58, %v2372_v15  ;;  %v2524_v27 = vrot.slane %v2523_v46, 4  ;;  %v2495_v6 = vmul.f32 %v7505_v33, %v7505_v33  ;;  %v7524_v11 = vsel %vm2450_vm11, %v7423_v16, %v2449_v23 }
 0x1fa   :  { %v7500_v52 = vadd.f32 %v2176_v59, %v7397_v20  ;;  %v2392_v59 = vadd.f32 %v2391_v41, %v7485_v63  ;;  %v2364_v35 = vrot.slane %v2363_v53, 2  ;;  %v2514_v36 = vadd.f32 %v2513_v1, %v2512_v47  ;;  %9787 = vst [vmem:[#allocation53_spill] sm:$0xff] %v7524_v11 }
 0x1fb   :  { %v2375_v39 = vrot.slane %v2374_v45, 2  ;;  %v2525_v9 = vadd.f32 %v2524_v27, %v2523_v46  ;;  %v7532_v27 = vpop.permute.xlu2 %2821 }
 0x1fc   :  { %v2494_v18 = vmul.f32 %v7500_v52, %v7500_v52  ;;  %v2382_v41 = vadd.f32 %v2381_v60, %v7500_v52  ;;  %v2365_v40 = vadd.f32 %v2364_v35, %v2363_v53  ;;  %v2515_v15 = vrot.slane %v2514_v36, 2 }
 0x1fd   :  { %v2393_v37 = vadd.f32 %v2392_v59, %v7505_v33  ;;  %v2376_v32 = vadd.f32 %v2375_v39, %v2374_v45  ;;  %v2526_v47 = vrot.slane %v2525_v9, 2  ;;  %v2544_v60 = vadd.f32 %v2543_v28, %v2495_v6 }
 0x1fe   :  { %4751 = vmatmul.msk.f32.gmra.mxu2 %vm2058_vm14, %v4955_v12  ;;  %v2533_v1 = vadd.f32 %v2532_v62, %v2494_v18  ;;  %v2366_v25 = vrot.slane %v2365_v40, 1  ;;  %v2516_v2 = vadd.f32 %v2515_v15, %v2514_v36  ;;  %v7537_v36 = vpop.permute.xlu1 %2825 }
 0x1ff   :  { %v2377_v35 = vrot.slane %v2376_v32, 1  ;;  %v2527_v53 = vadd.f32 %v2526_v47, %v2525_v9 }
 0x200   :  { %v2367_v23 = vadd.f32 %v2366_v25, %v2365_v40  ;;  %v2517_v16 = vrot.slane %v2516_v2, 1 }
 0x201   :  { %4757 = vmatmul.msk.f32.gmra.mxu3 %vm2058_vm14, %v4955_v12  ;;  %v2179_v58 = vpop.f32.mrf.mxu2  ;;  %v2214_v12 = vpop.f32.mrf.mxu3  ;;  %v2378_v62 = vadd.f32 %v2377_v35, %v2376_v32  ;;  %v2528_v39 = vrot.slane %v2527_v53, 1 }
 0x202   :  { %v7527_v46 = vadd.f32 %v2179_v58, %v7459_v10  ;;  %v7530_v59 = vadd.f32 %v2214_v12, %v7459_v10  ;;  %v7543_v9 = vmul.f32 %v7524_v11, %v2367_v23  ;;  %v2518_v15 = vadd.f32 %v2517_v16, %v2516_v2 }
 0x203   :  { %v2529_v58 = vadd.f32 %v2528_v39, %v2527_v53 }
 0x204   :  { %v2383_v45 = vadd.f32 %v2382_v41, %v7527_v46  ;;  %v2502_v18 = vmul.f32 %v7527_v46, %v7527_v46  ;;  %v2394_v6 = vadd.f32 %v2393_v37, %v7530_v59  ;;  %v2503_v28 = vmul.f32 %v7530_v59, %v7530_v59 }
 0x205   :  { %v7546_v41 = vmul.f32 %v7524_v11, %v2378_v62  ;;  %v2596_v32 = vmul.f32 %v2518_v15, %v7524_v11  ;;  %v2604_v37 = vmul.f32 %v7543_v9, %v7543_v9  ;;  %v2597_v54 = vmul.f32 %v2529_v58, %v7524_v11 }
 0x206   :  { %v2384_v40 = vrot.slane %v2383_v45, 4  ;;  %v2534_v47 = vadd.f32 %v2533_v1, %v2502_v18  ;;  %v2395_v25 = vrot.slane %v2394_v6, 4  ;;  %v2545_v12 = vadd.f32 %v2544_v60, %v2503_v28  ;;  %v7558_v3 = vpop.permute.xlu1 %2817 }
 0x207   :  { %v2605_v23 = vmul.f32 %v7546_v41, %v7546_v41  ;;  %v2612_v16 = vsub.f32 %v2596_v32, %v2604_v37 }
 0x208   :  { %v2385_v35 = vadd.f32 %v2384_v40, %v2383_v45  ;;  %v2535_v2 = vrot.slane %v2534_v47, 4  ;;  %v2396_v18 = vadd.f32 %v2395_v25, %v2394_v6  ;;  %v2546_v62 = vrot.slane %v2545_v12, 4  ;;  %v7556_v45 = vpop.permute.xlu2 %2893 }
 0x209   :  { %v2613_v26 = vsub.f32 %v2597_v54, %v2605_v23  ;;  %v2668_v39 = vadd.f32 1e-05, %v2612_v16 }
 0x20a   :  { %v2386_v1 = vrot.slane %v2385_v35, 2  ;;  %v2536_v53 = vadd.f32 %v2535_v2, %v2534_v47  ;;  %v2397_v28 = vrot.slane %v2396_v18, 2  ;;  %v2547_v15 = vadd.f32 %v2546_v62, %v2545_v12 }
 0x20b   :  { %v7554_v0 = vadd.f32 1e-05, %v2613_v26  ;;  %4901 = vrsqrt.f32 %v2668_v39  ;;  %v2660_v26 = vsub.f32 %v7480_v4, %v7543_v9  ;;  %v2661_v12 = vsub.f32 %v7488_v30, %v7546_v41 }
 0x20c   :  { %v2387_v60 = vadd.f32 %v2386_v1, %v2385_v35  ;;  %v2537_v50 = vrot.slane %v2536_v53, 2  ;;  %v2398_v58 = vadd.f32 %v2397_v28, %v2396_v18  ;;  %v2548_v25 = vrot.slane %v2547_v15, 2 }
 0x20d   :  { %4903 = vrsqrt.f32 %v7554_v0  ;;  %vm2682_vm12 = vweird.f32 %v2668_v39  ;;  %vm2692_vm13 = vweird.f32 %v7554_v0  ;;  %v2652_v4 = vsub.f32 %v7429_v29, %v7543_v9 }
 0x20e   :  { %v2388_v40 = vrot.slane %v2387_v60, 1  ;;  %v2538_v6 = vadd.f32 %v2537_v50, %v2536_v53  ;;  %v2399_v47 = vrot.slane %v2398_v58, 1  ;;  %v2549_v37 = vadd.f32 %v2548_v25, %v2547_v15 }
 0x20f   :  { %v2653_v62 = vsub.f32 %v7437_v5, %v7546_v41  ;;  %v2645_v25 = vsub.f32 %v7403_v49, %v7546_v41  ;;  %v2636_v29 = vsub.f32 %v7366_v22, %v7543_v9 }
 0x210   :  { %v2389_v54 = vadd.f32 %v2388_v40, %v2387_v60  ;;  %v2539_v32 = vrot.slane %v2538_v6, 1  ;;  %v2400_v23 = vadd.f32 %v2399_v47, %v2398_v58  ;;  %v2550_v50 = vrot.slane %v2549_v37, 1 }
 0x211   :  { %v4902_v16 = vpop.eup %4901  ;;  %v2644_v40 = vsub.f32 %v7391_v56, %v7543_v9 }
 0x212   :  { %v7566_v35 = vmul.f32 %v7524_v11, %v2389_v54  ;;  %v2540_v2 = vadd.f32 %v2539_v32, %v2538_v6  ;;  %v7572_v18 = vmul.f32 %v7524_v11, %v2400_v23  ;;  %v2677_v60 = vmul.f32 %v4902_v16, %v2668_v39  ;;  %v7589_v32 = vpop.permute.xlu2 %2889 }
 0x213   :  { %v4904_v53 = vpop.eup %4903  ;;  %v2551_v15 = vadd.f32 %v2550_v50, %v2549_v37  ;;  %vm2683_vm15 = vweird.f32 %v4902_v16 }
 0x214   :  { %v2606_v1 = vmul.f32 %v7566_v35, %v7566_v35  ;;  %v2598_v28 = vmul.f32 %v2540_v2, %v7524_v11  ;;  %v2687_v58 = vmul.f32 %v4904_v53, %v7554_v0  ;;  %v2607_v6 = vmul.f32 %v7572_v18, %v7572_v18  ;;  %v7595_v2 = vpop.permute.xlu1 %2813  ;;  %vm2684_vm1 = vmor %vm2682_vm12, %vm2683_vm15 }
 0x215   :  { %v2678_v5 = vmul.f32 %v4902_v16, %v2677_v60  ;;  %v2599_v47 = vmul.f32 %v2551_v15, %v7524_v11  ;;  %vm2693_vm0 = vweird.f32 %v4904_v53 }
 0x216   :  { %v2614_v54 = vsub.f32 %v2598_v28, %v2606_v1  ;;  %v2688_v37 = vmul.f32 %v4904_v53, %v2687_v58  ;;  %vm2694_vm2 = vmor %vm2692_vm13, %vm2693_vm0 }
 0x217   :  { %v2679_v22 = vmul.f32 0.5, %v2678_v5  ;;  %v2615_v1 = vsub.f32 %v2599_v47, %v2607_v6  ;;  %v7640_v5 = vpop.permute.xlu0 %2897 }
 0x218   :  { %v7599_v50 = vadd.f32 1e-05, %v2614_v54  ;;  %v2689_v60 = vmul.f32 0.5, %v2688_v37 }
 0x219   :  { %v2680_v23 = vsub.f32 1.5, %v2679_v22  ;;  %v7608_v56 = vadd.f32 1e-05, %v2615_v1 }
 0x21a   :  { %4905 = vrsqrt.f32 %v7599_v50  ;;  %v2690_v6 = vsub.f32 1.5, %v2689_v60  ;;  %vm2702_vm3 = vweird.f32 %v7599_v50 }
 0x21b   :  { %v2681_v22 = vmul.f32 %v4902_v16, %v2680_v23  ;;  %4907 = vrsqrt.f32 %v7608_v56  ;;  %vm2712_vm4 = vweird.f32 %v7608_v56 }
 0x21c   :  { %v2691_v60 = vmul.f32 %v4904_v53, %v2690_v6 }
 0x21d   :  { %v2685_v54 = vsel %vm2684_vm1, %v4902_v16, %v2681_v22  ;;  %v7645_v22 = vpop.permute.xlu2 %2805 }
 0x21e   :  { %v2796_v1 = vmul.f32 %v2685_v54, %v2660_v26  ;;  %v2695_v6 = vsel %vm2694_vm2, %v4904_v53, %v2691_v60  ;;  %v2788_v49 = vmul.f32 %v2685_v54, %v2652_v4  ;;  %v2780_v37 = vmul.f32 %v2685_v54, %v2644_v40  ;;  %v7648_v26 = vpop.permute.xlu1 %2885 }
 0x21f   :  { %v2797_v16 = vmul.f32 %v2695_v6, %v2661_v12  ;;  %v2789_v0 = vmul.f32 %v2695_v6, %v2653_v62  ;;  %v2781_v28 = vmul.f32 %v2695_v6, %v2645_v25  ;;  %v2772_v23 = vmul.f32 %v2685_v54, %v2636_v29 }
 0x220   :  { %v4906_v47 = vpop.eup %4905  ;;  %v2868_v53 = vmul.f32 %v7537_v36, %v2796_v1  ;;  %v2860_v4 = vmul.f32 %v7532_v27, %v2788_v49  ;;  %v2852_v12 = vmul.f32 %v7558_v3, %v2780_v37 }
 0x221   :  { %v2697_v39 = vmul.f32 %v4906_v47, %v7599_v50  ;;  %vm2703_vm5 = vweird.f32 %v4906_v47  ;;  %v4908_v40 = vpop.eup %4907  ;;  %v2869_v60 = vmul.f32 %v7537_v36, %v2797_v16  ;;  %v2861_v30 = vmul.f32 %v7532_v27, %v2789_v0 }
 0x222   :  { %v2853_v62 = vmul.f32 %v7558_v3, %v2781_v28  ;;  %v2707_v29 = vmul.f32 %v4908_v40, %v7608_v56  ;;  %vm2713_vm6 = vweird.f32 %v4908_v40  ;;  %v2940_v58 = vadd.f32 %v7640_v5, %v2868_v53  ;;  %vm7667_vm7 = vmor %vm2702_vm3, %vm2703_vm5 }
 0x223   :  { %v2698_v25 = vmul.f32 %v4906_v47, %v2697_v39  ;;  %v2941_v15 = vadd.f32 %v7640_v5, %v2869_v60  ;;  %v2932_v1 = vadd.f32 %v7556_v45, %v2860_v4  ;;  %v2933_v49 = vadd.f32 %v7556_v45, %v2861_v30  ;;  %vm7692_vm9 = vmor %vm2712_vm4, %vm2713_vm6 }
 0x224   :  { %v2924_v16 = vadd.f32 %v7589_v32, %v2852_v12  ;;  %v2708_v0 = vmul.f32 %v4908_v40, %v2707_v29  ;;  %v2988_v24 = vmax.f32 %v2940_v58, 0.0  ;;  %v2925_v37 = vadd.f32 %v7589_v32, %v2853_v62  ;;  %v7683_v29 = vpop.permute.xlu0 %2809 }
 0x225   :  { %v2699_v7 = vmul.f32 0.5, %v2698_v25  ;;  %v2989_v28 = vmax.f32 %v2941_v15, 0.0  ;;  %v2980_v39 = vmax.f32 %v2932_v1, 0.0  ;;  %v2981_v44 = vmax.f32 %v2933_v49, 0.0 }
 0x226   :  { %v2972_v11 = vmax.f32 %v2924_v16, 0.0  ;;  %v2709_v20 = vmul.f32 0.5, %v2708_v0  ;;  %3039 = vmatpush.msra.mxu0 %v2988_v24  ;;  %v2973_v53 = vmax.f32 %v2925_v37, 0.0  ;;  %v2844_v60 = vmul.f32 %v7595_v2, %v2772_v23  ;;  %v7704_v56 = vpop.permute.xlu1 %2881 }
 0x227   :  { %v2700_v10 = vsub.f32 1.5, %v2699_v7  ;;  %3080 = vmatpush.msra.mxu1 %v2989_v28  ;;  %v9790_v15 = vsub.f32 %v7388_v51, %v7546_v41  ;;  %v9791_v7 = vsub.f32 %v7358_v43, %v7543_v9  ;;  %v9792_v24 = vsub.f32 %v7382_v8, %v7546_v41 }
 0x228   :  { %v9793_v50 = vsub.f32 %v7353_v34, %v7543_v9  ;;  %v2710_v25 = vsub.f32 1.5, %v2709_v20  ;;  %3040 = vmatpush.msra.mxu0 %v2980_v39  ;;  %v2916_v51 = vadd.f32 %v7648_v26, %v2844_v60  ;;  %v9794_v43 = vsub.f32 %v7376_v31, %v7546_v41  ;;  %v7696_v34 = vpop.permute.xlu2 %2877 }
 0x229   :  { %v2773_v58 = vmul.f32 %v2695_v6, %v9790_v15  ;;  %v2764_v30 = vmul.f32 %v2685_v54, %v9791_v7  ;;  %v2765_v23 = vmul.f32 %v2695_v6, %v9792_v24  ;;  %v2701_v62 = vmul.f32 %v4906_v47, %v2700_v10  ;;  %9797 = vst [vmem:[#allocation58_spill] sm:$0xff] %v7696_v34 }
 0x22a   :  { %v2756_v12 = vmul.f32 %v2685_v54, %v9793_v50  ;;  %v2757_v1 = vmul.f32 %v2695_v6, %v9794_v43  ;;  %3081 = vmatpush.msra.mxu1 %v2981_v44  ;;  %v2711_v41 = vmul.f32 %v4908_v40, %v2710_v25  ;;  %3041 = vmatpush.msra.mxu0 %v2972_v11  ;;  %v2964_v6 = vmax.f32 %v2916_v51, 0.0  ;;  %v7736_v51 = vld [vmem:[%s9452_s3] sm:$0xff] }
 0x22b   :  { %v2845_v20 = vmul.f32 %v7595_v2, %v2773_v58  ;;  %v2836_v10 = vmul.f32 %v7683_v29, %v2764_v30  ;;  %v2837_v9 = vmul.f32 %v7683_v29, %v2765_v23  ;;  %v2705_v31 = vsel %vm7667_vm7, %v4906_v47, %v2701_v62  ;;  %9803 = vst [vmem:[#allocation74_spill] sm:$0xff] %v7736_v51 }
 0x22c   :  { %v2828_v54 = vmul.f32 %v7645_v22, %v2756_v12  ;;  %v2829_v49 = vmul.f32 %v7645_v22, %v2757_v1  ;;  %v9798_v44 = vsub.f32 %v7527_v46, %v7566_v35  ;;  %3082 = vmatpush.msra.mxu1 %v2973_v53  ;;  %v2715_v47 = vsel %vm7692_vm9, %v4908_v40, %v2711_v41 }
 0x22d   :  { %v2917_v0 = vadd.f32 %v7648_v26, %v2845_v20  ;;  %v2908_v37 = vadd.f32 %v7704_v56, %v2836_v10  ;;  %v2909_v28 = vadd.f32 %v7704_v56, %v2837_v9  ;;  %3042 = vmatpush.msra.mxu0 %v2964_v6  ;;  %v9799_v11 = vsub.f32 %v7500_v52, %v7566_v35 }
 0x22e   :  { %v2798_v16 = vmul.f32 %v2705_v31, %v9798_v44  ;;  %v2900_v60 = vadd.f32 %v7696_v34, %v2828_v54  ;;  %v2901_v46 = vadd.f32 %v7696_v34, %v2829_v49  ;;  %v9800_v53 = vsub.f32 %v7530_v59, %v7572_v18 }
 0x22f   :  { %v2790_v39 = vmul.f32 %v2705_v31, %v9799_v11  ;;  %v2965_v15 = vmax.f32 %v2917_v0, 0.0  ;;  %v2956_v7 = vmax.f32 %v2908_v37, 0.0  ;;  %v2957_v30 = vmax.f32 %v2909_v28, 0.0 }
 0x230   :  { %v2799_v4 = vmul.f32 %v2715_v47, %v9800_v53  ;;  %v2870_v58 = vmul.f32 %v7537_v36, %v2798_v16  ;;  %v9801_v24 = vsub.f32 %v7505_v33, %v7572_v18  ;;  %v2948_v23 = vmax.f32 %v2900_v60, 0.0 }
 0x231   :  { %v2862_v40 = vmul.f32 %v7532_v27, %v2790_v39  ;;  %3083 = vmatpush.msra.mxu1 %v2965_v15  ;;  %3043 = vmatpush.msra.mxu0 %v2956_v7  ;;  %v2949_v59 = vmax.f32 %v2901_v46, 0.0  ;;  %v9802_v62 = vsub.f32 %v7477_v38, %v7566_v35  ;;  %v9804_v1 = vsub.f32 %v7485_v63, %v7572_v18 }
 0x232   :  { %v2791_v52 = vmul.f32 %v2715_v47, %v9801_v24  ;;  %v2942_v50 = vadd.f32 %v7640_v5, %v2870_v58  ;;  %v2871_v12 = vmul.f32 %v7537_v36, %v2799_v4  ;;  %v9805_v20 = vsub.f32 %v7443_v13, %v7566_v35 }
 0x233   :  { %v2782_v25 = vmul.f32 %v2705_v31, %v9802_v62  ;;  %v2934_v33 = vadd.f32 %v7556_v45, %v2862_v40  ;;  %v2783_v8 = vmul.f32 %v2715_v47, %v9804_v1  ;;  %3084 = vmatpush.msra.mxu1 %v2957_v30  ;;  %3044 = vmatpush.msra.mxu0 %v2948_v23  ;;  %v7793_v62 = vld [vmem:[%s9454_s5] sm:$0xff] }
 0x234   :  { %v2863_v43 = vmul.f32 %v7532_v27, %v2791_v52  ;;  %v2774_v10 = vmul.f32 %v2705_v31, %v9805_v20  ;;  %v2990_v9 = vmax.f32 %v2942_v50, 0.0  ;;  %v2943_v38 = vadd.f32 %v7640_v5, %v2871_v12  ;;  %4758 = vmatmul.msk.f32.vlgmr.msra.gmra.mxu0 %vm3004_vm8, %v7736_v51  ;;  %v7782_v12 = vld [vmem:[%s9452_s3 + $0x8] sm:$0xff]  ;;  %v7814_v20 = vld [vmem:[%s9454_s5 + $0x10] sm:$0xff] }
 0x235   :  { %v2854_v54 = vmul.f32 %v7558_v3, %v2782_v25  ;;  %v9806_v41 = vsub.f32 %v7451_v19, %v7572_v18  ;;  %v2982_v49 = vmax.f32 %v2934_v33, 0.0  ;;  %v2855_v63 = vmul.f32 %v7558_v3, %v2783_v8  ;;  %3085 = vmatpush.msra.mxu1 %v2949_v59  ;;  %9811 = vst [vmem:[#allocation75_spill] sm:$0xff] %v7782_v12  ;;  %v7809_v8 = vld [vmem:[%s9452_s3 + $0x10] sm:$0xff] }
 0x236   :  { %v2935_v44 = vadd.f32 %v7556_v45, %v2863_v43  ;;  %v2846_v13 = vmul.f32 %v7595_v2, %v2774_v10  ;;  %3121 = vmatpush.msra.mxu2 %v2990_v9  ;;  %v2991_v16 = vmax.f32 %v2943_v38, 0.0  ;;  %v9807_v19 = vsub.f32 %v7410_v48, %v7566_v35  ;;  %4766 = vmatmul.msk.f32.vlgmr.msra.gmra.mxu1 %vm3004_vm8, %v7736_v51  ;;  %v7801_v43 = vld [vmem:[%s9454_s5 + $0x8] sm:$0xff]  ;;  %v7832_v9 = vld [vmem:[%s9454_s5 + $0x18] sm:$0xff] }
 0x237   :  { %v2775_v6 = vmul.f32 %v2715_v47, %v9806_v41  ;;  %v2926_v0 = vadd.f32 %v7589_v32, %v2854_v54  ;;  %v2927_v39 = vadd.f32 %v7589_v32, %v2855_v63  ;;  %v9808_v46 = vsub.f32 %v7413_v61, %v7572_v18  ;;  %9812 = vst [vmem:[#allocation76_spill] sm:$0xff] %v7809_v8  ;;  %v7824_v10 = vld [vmem:[%s9454_s5 + $0x28] sm:$0xff]  ;;  %v7840_v38 = vld [vmem:[%s9452_s3 + $0x18] sm:$0xff]  ;;  %v7845_v54 = vld [vmem:[%s9454_s5 + $0x20] sm:$0xff] }
 0x238   :  { %v2766_v28 = vmul.f32 %v2705_v31, %v9807_v19  ;;  %v2983_v11 = vmax.f32 %v2935_v44, 0.0  ;;  %v2918_v60 = vadd.f32 %v7648_v26, %v2846_v13  ;;  %3162 = vmatpush.msra.mxu3 %v2991_v16  ;;  %3122 = vmatpush.msra.mxu2 %v2982_v49  ;;  %v9809_v58 = vsub.f32 %v7385_v57, %v7566_v35  ;;  %v7857_v49 = vld [vmem:[%s9454_s5 + $0x30] sm:$0xff]  ;;  %v7865_v44 = vld [vmem:[%s9452_s3 + $0x20] sm:$0xff]  ;;  %v7870_v63 = vld [vmem:[%s9454_s5 + $0x38] sm:$0xff] }
 0x239   :  { %v2847_v37 = vmul.f32 %v7595_v2, %v2775_v6  ;;  %v2767_v53 = vmul.f32 %v2715_v47, %v9808_v46  ;;  %v2974_v4 = vmax.f32 %v2926_v0, 0.0  ;;  %v2975_v30 = vmax.f32 %v2927_v39, 0.0  ;;  %9813 = vst [vmem:[#allocation77_spill] sm:$0xff] %v7840_v38 }
 0x23a   :  { %v2838_v48 = vmul.f32 %v7683_v29, %v2766_v28  ;;  %v2758_v7 = vmul.f32 %v2705_v31, %v9809_v58  ;;  %v9810_v24 = vsub.f32 %v7400_v14, %v7572_v18  ;;  %3163 = vmatpush.msra.mxu3 %v2983_v11  ;;  %v2966_v61 = vmax.f32 %v2918_v60, 0.0  ;;  %9814 = vst [vmem:[#allocation78_spill] sm:$0xff] %v7865_v44  ;;  %v7897_v60 = vld [vmem:[%s9452_s3 + $0x30] sm:$0xff] }
 0x23b   :  { %v2919_v15 = vadd.f32 %v7648_v26, %v2847_v37  ;;  %v2839_v40 = vmul.f32 %v7683_v29, %v2767_v53  ;;  %3123 = vmatpush.msra.mxu2 %v2974_v4  ;;  %v5003_v31 = vmov 6   ;;  %v7884_v37 = vld [vmem:[%s9452_s3 + $0x28] sm:$0xff]  ;;  %9816 = vst [vmem:[#allocation80_spill] sm:$0xff] %v7897_v60 }
 0x23c   :  { %v2759_v52 = vmul.f32 %v2715_v47, %v9810_v24  ;;  %v2910_v23 = vadd.f32 %v7704_v56, %v2838_v48  ;;  %v2830_v50 = vmul.f32 %v7645_v22, %v2758_v7  ;;  %4867 = vset.pattern.permute.xlu0 %v5003_v31  ;;  %4868 = vset.pattern.permute.xlu1 %v5003_v31 }
 0x23d   :  { %v2911_v57 = vadd.f32 %v7704_v56, %v2839_v40  ;;  %3164 = vmatpush.msra.mxu3 %v2975_v30  ;;  %3124 = vmatpush.msra.mxu2 %v2966_v61  ;;  %v2967_v14 = vmax.f32 %v2919_v15, 0.0  ;;  %9815 = vst [vmem:[#allocation79_spill] sm:$0xff] %v7884_v37  ;;  %v7930_v61 = vld [vmem:[%s9452_s3 + $0x38] sm:$0xff] }
 0x23e   :  { %v2831_v35 = vmul.f32 %v7645_v22, %v2759_v52  ;;  %v2958_v18 = vmax.f32 %v2910_v23, 0.0  ;;  %v2902_v47 = vadd.f32 %v7696_v34, %v2830_v50  ;;  %4759 = vmatmul.msk.f32.gmra.mxu0 %vm3004_vm8, %v7782_v12  ;;  %3358 = vperm.xlu0 %4867, %v7793_v62  }
 0x23f   :  { %3165 = vmatpush.msra.mxu3 %v2967_v14  ;;  %v2959_v25 = vmax.f32 %v2911_v57, 0.0  ;;  %4767 = vmatmul.msk.f32.gmra.mxu1 %vm3004_vm8, %v7782_v12 }
 0x240   :  { %v2903_v59 = vadd.f32 %v7696_v34, %v2831_v35  ;;  %3125 = vmatpush.msra.mxu2 %v2958_v18  ;;  %v2950_v33 = vmax.f32 %v2902_v47, 0.0  ;;  %3362 = vperm.xlu1 %4868, %v7801_v43  }
 0x241   :  { %3166 = vmatpush.msra.mxu3 %v2959_v25  ;;  %4869 = vset.pattern.permute.xlu2 %v5003_v31 }
 0x242   :  { %3126 = vmatpush.msra.mxu2 %v2950_v33  ;;  %v2951_v1 = vmax.f32 %v2903_v59, 0.0  ;;  %3366 = vperm.xlu2 %4869, %v7814_v20  }
 0x243   :  { %4774 = vmatmul.msk.f32.vlgmr.msra.gmra.mxu2 %vm3004_vm8, %v7736_v51 }
 0x244   :  { %3167 = vmatpush.msra.mxu3 %v2951_v1 }
 0x245   :  { %4782 = vmatmul.msk.f32.vlgmr.msra.gmra.mxu3 %vm3004_vm8, %v7736_v51 }
 0x246   :  { %4760 = vmatmul.msk.f32.gmra.mxu0 %vm3004_vm8, %v7809_v8  ;;  %3378 = vperm.xlu0 %4867, %v7824_v10  }
 0x247   :  { %4768 = vmatmul.msk.f32.gmra.mxu1 %vm3004_vm8, %v7809_v8 }
 0x248   :  { %3370 = vperm.xlu1 %4868, %v7832_v9  }
 0x24a   :  { %3374 = vperm.xlu2 %4869, %v7845_v54   ;;  %v2234_v41 = vpop.f32.mrf.mxu0 }
 0x24b   :  { %4775 = vmatmul.msk.f32.gmra.mxu2 %vm3004_vm8, %v7782_v12  ;;  %v7912_v58 = vadd.f32 %v2234_v41, %v7349_v17  ;;  %v9819_v41 = vld [vmem:[#allocation12_spill] sm:$0xff] }
 0x24c   :  { %v2269_v6 = vpop.f32.mrf.mxu1 }
 0x24d   :  { %4783 = vmatmul.msk.f32.gmra.mxu3 %vm3004_vm8, %v7782_v12  ;;  %v7915_v7 = vadd.f32 %v2269_v6, %v7349_v17  ;;  %v2464_v35 = vmul.f32 %v7912_v58, %v7912_v58 }
 0x24e   :  { %4761 = vmatmul.msk.f32.gmra.mxu0 %vm3004_vm8, %v7840_v38 }
 0x24f   :  { %4769 = vmatmul.msk.f32.gmra.mxu1 %vm3004_vm8, %v7840_v38  ;;  %v2465_v18 = vmul.f32 %v7915_v7, %v7915_v7 }
 0x250   :  { %3382 = vperm.xlu1 %4868, %v7857_v49  }
 0x252   :  { %3386 = vperm.xlu2 %4869, %v7870_v63   ;;  %v2237_v13 = vpop.f32.mrf.mxu0 }
 0x253   :  { %4776 = vmatmul.msk.f32.gmra.mxu2 %vm3004_vm8, %v7809_v8  ;;  %v7904_v4 = vadd.f32 %v2237_v13, %v7345_v42 }
 0x254   :  { %v2272_v16 = vpop.f32.mrf.mxu1 }
 0x255   :  { %4784 = vmatmul.msk.f32.gmra.mxu3 %vm3004_vm8, %v7809_v8  ;;  %v7907_v48 = vadd.f32 %v2272_v16, %v7345_v42  ;;  %v2472_v40 = vmul.f32 %v7904_v4, %v7904_v4  ;;  %v2401_v25 = vadd.f32 %v7904_v4, %v7912_v58 }
 0x256   :  { %4762 = vmatmul.msk.f32.gmra.mxu0 %vm3004_vm8, %v7865_v44 }
 0x257   :  { %4770 = vmatmul.msk.f32.gmra.mxu1 %vm3004_vm8, %v7865_v44  ;;  %v2473_v23 = vmul.f32 %v7907_v48, %v7907_v48  ;;  %v2552_v33 = vadd.f32 %v2472_v40, %v2464_v35 }
 0x259   :  { %v2304_v0 = vpop.f32.mrf.mxu2  ;;  %v2563_v16 = vadd.f32 %v2473_v23, %v2465_v18 }
 0x25a   :  { %v2240_v28 = vpop.f32.mrf.mxu0  ;;  %v7939_v31 = vadd.f32 %v2304_v0, %v7349_v17 }
 0x25b   :  { %4777 = vmatmul.msk.f32.gmra.mxu2 %vm3004_vm8, %v7840_v38  ;;  %v7918_v30 = vadd.f32 %v2240_v28, %v7355_v55 }
 0x25c   :  { %v2339_v19 = vpop.f32.mrf.mxu3  ;;  %v2275_v11 = vpop.f32.mrf.mxu1  ;;  %9817 = vst [vmem:[#allocation81_spill] sm:$0xff] %v7939_v31  ;;  %v2466_v28 = vmul.f32 %v7939_v31, %v7939_v31 }
 0x25d   :  { %4785 = vmatmul.msk.f32.gmra.mxu3 %vm3004_vm8, %v7840_v38  ;;  %v7925_v24 = vadd.f32 %v2275_v11, %v7355_v55  ;;  %v7947_v47 = vadd.f32 %v2339_v19, %v7349_v17  ;;  %v2480_v59 = vmul.f32 %v7918_v30, %v7918_v30  ;;  %v2412_v17 = vadd.f32 %v7907_v48, %v7915_v7 }
 0x25e   :  { %4763 = vmatmul.msk.f32.gmra.mxu0 %vm3004_vm8, %v7884_v37  ;;  %v2402_v11 = vadd.f32 %v2401_v25, %v7918_v30 }
 0x25f   :  { %4771 = vmatmul.msk.f32.gmra.mxu1 %vm3004_vm8, %v7884_v37  ;;  %9818 = vst [vmem:[#allocation82_spill] sm:$0xff] %v7947_v47  ;;  %v2481_v1 = vmul.f32 %v7925_v24, %v7925_v24  ;;  %v2553_v23 = vadd.f32 %v2552_v33, %v2480_v59 }
 0x261   :  { %v2307_v39 = vpop.f32.mrf.mxu2  ;;  %v2564_v35 = vadd.f32 %v2563_v16, %v2481_v1 }
 0x262   :  { %v2243_v53 = vpop.f32.mrf.mxu0  ;;  %v7963_v0 = vadd.f32 %v2307_v39, %v7345_v42  ;;  %v2467_v39 = vmul.f32 %v7947_v47, %v7947_v47 }
 0x263   :  { %4778 = vmatmul.msk.f32.gmra.mxu2 %vm3004_vm8, %v7865_v44  ;;  %v7942_v14 = vadd.f32 %v2243_v53, %v7371_v21 }
 0x264   :  { %v2342_v46 = vpop.f32.mrf.mxu3  ;;  %v2278_v15 = vpop.f32.mrf.mxu1  ;;  %9820 = vst [vmem:[#allocation12_spill] sm:$0xff] %v7963_v0  ;;  %v2423_v25 = vadd.f32 %v7963_v0, %v7939_v31  ;;  %v2474_v59 = vmul.f32 %v7963_v0, %v7963_v0 }
 0x265   :  { %4786 = vmatmul.msk.f32.gmra.mxu3 %vm3004_vm8, %v7865_v44  ;;  %v7966_v19 = vadd.f32 %v2278_v15, %v7371_v21  ;;  %v7974_v53 = vadd.f32 %v2342_v46, %v7345_v42  ;;  %v2488_v40 = vmul.f32 %v7942_v14, %v7942_v14  ;;  %v2413_v15 = vadd.f32 %v2412_v17, %v7925_v24  ;;  %v9822_v44 = vld [vmem:[#allocation7_spill] sm:$0xff] }
 0x266   :  { %4764 = vmatmul.msk.f32.gmra.mxu0 %vm3004_vm8, %v7897_v60  ;;  %v2403_v18 = vadd.f32 %v2402_v11, %v7942_v14  ;;  %v9542_v17 = vmov 7   ;;  %v2574_v0 = vadd.f32 %v2474_v59, %v2466_v28 }
 0x267   :  { %4772 = vmatmul.msk.f32.gmra.mxu1 %vm3004_vm8, %v7897_v60  ;;  %9821 = vst [vmem:[#allocation83_spill] sm:$0xff] %v7974_v53  ;;  %v2489_v33 = vmul.f32 %v7966_v19, %v7966_v19  ;;  %4870 = vset.pattern.permute.xlu1 %v9542_v17  ;;  %v2475_v16 = vmul.f32 %v7974_v53, %v7974_v53 }
 0x268   :  { %v2554_v11 = vadd.f32 %v2553_v23, %v2488_v40  ;;  %3998 = vperm.xlu1 %4870, %v7857_v49   ;;  %v2434_v8 = vadd.f32 %v7974_v53, %v7947_v47 }
 0x269   :  { %v2310_v52 = vpop.f32.mrf.mxu2  ;;  %v2565_v47 = vadd.f32 %v2564_v35, %v2489_v33  ;;  %v2585_v53 = vadd.f32 %v2475_v16, %v2467_v39 }
 0x26a   :  { %v2246_v57 = vpop.f32.mrf.mxu0  ;;  %v8009_v12 = vadd.f32 %v2310_v52, %v7355_v55 }
 0x26b   :  { %4779 = vmatmul.msk.f32.gmra.mxu2 %vm3004_vm8, %v7884_v37  ;;  %v7958_v6 = vadd.f32 %v2246_v57, %v9819_v41 }
 0x26c   :  { %v2345_v50 = vpop.f32.mrf.mxu3  ;;  %v2281_v13 = vpop.f32.mrf.mxu1 }
 0x26d   :  { %4787 = vmatmul.msk.f32.gmra.mxu3 %vm3004_vm8, %v7884_v37  ;;  %v7982_v57 = vadd.f32 %v2281_v13, %v9819_v41  ;;  %v2496_v42 = vmul.f32 %v7958_v6, %v7958_v6  ;;  %v2404_v37 = vadd.f32 %v2403_v18, %v7958_v6  ;;  %v8014_v40 = vadd.f32 %v2345_v50, %v7355_v55 }
 0x26e   :  { %4765 = vmatmul.msk.f32.gmra.mxu0 %vm3004_vm8, %v7930_v61 }
 0x26f   :  { %4773 = vmatmul.msk.f32.gmra.mxu1 %vm3004_vm8, %v7930_v61  ;;  %v2497_v17 = vmul.f32 %v7982_v57, %v7982_v57  ;;  %9823 = vst [vmem:[#allocation7_spill] sm:$0xff] %v8014_v40  ;;  %v2555_v23 = vadd.f32 %v2554_v11, %v2496_v42 }
 0x270   :  { %3994 = vperm.xlu1 %4870, %v7824_v10  }
 0x271   :  { %v2313_v46 = vpop.f32.mrf.mxu2  ;;  %v2566_v42 = vadd.f32 %v2565_v47, %v2497_v17 }
 0x272   :  { %v2249_v1 = vpop.f32.mrf.mxu0  ;;  %v8024_v51 = vadd.f32 %v2313_v46, %v7371_v21 }
 0x273   :  { %4780 = vmatmul.msk.f32.gmra.mxu2 %vm3004_vm8, %v7897_v60  ;;  %v8002_v38 = vadd.f32 %v2249_v1, %v9822_v44 }
 0x274   :  { %v2348_v13 = vpop.f32.mrf.mxu3  ;;  %v2284_v31 = vpop.f32.mrf.mxu1 }
 0x275   :  { %4788 = vmatmul.msk.f32.gmra.mxu3 %vm3004_vm8, %v7897_v60  ;;  %v2414_v60 = vadd.f32 %v2413_v15, %v7966_v19  ;;  %v2405_v18 = vadd.f32 %v2404_v37, %v8002_v38  ;;  %v2504_v1 = vmul.f32 %v8002_v38, %v8002_v38  ;;  %v8021_v52 = vadd.f32 %v2284_v31, %v9822_v44 }
 0x276   :  { %v2482_v37 = vmul.f32 %v8009_v12, %v8009_v12  ;;  %v2483_v31 = vmul.f32 %v8014_v40, %v8014_v40  ;;  %v8037_v59 = vadd.f32 %v2348_v13, %v7371_v21 }
 0x277   :  { %v2415_v15 = vadd.f32 %v2414_v60, %v7982_v57  ;;  %v2406_v55 = vrot.slane %v2405_v18, 4  ;;  %v2556_v50 = vadd.f32 %v2555_v23, %v2504_v1  ;;  %v2505_v28 = vmul.f32 %v8021_v52, %v8021_v52 }
 0x278   :  { %v2424_v60 = vadd.f32 %v2423_v25, %v8009_v12  ;;  %v2435_v25 = vadd.f32 %v2434_v8, %v8014_v40  ;;  %v2490_v23 = vmul.f32 %v8024_v51, %v8024_v51  ;;  %v2575_v21 = vadd.f32 %v2574_v0, %v2482_v37 }
 0x279   :  { %v2416_v11 = vadd.f32 %v2415_v15, %v8021_v52  ;;  %v2407_v39 = vadd.f32 %v2406_v55, %v2405_v18  ;;  %v2557_v35 = vrot.slane %v2556_v50, 4  ;;  %v2316_v46 = vpop.f32.mrf.mxu2  ;;  %v2567_v33 = vadd.f32 %v2566_v42, %v2505_v28 }
 0x27a   :  { %v8040_v17 = vadd.f32 %v2316_v46, %v9819_v41  ;;  %v2586_v42 = vadd.f32 %v2585_v53, %v2483_v31  ;;  %v2425_v28 = vadd.f32 %v2424_v60, %v8024_v51  ;;  %v2436_v8 = vadd.f32 %v2435_v25, %v8037_v59 }
 0x27b   :  { %4781 = vmatmul.msk.f32.gmra.mxu2 %vm3004_vm8, %v7930_v61  ;;  %v2417_v47 = vrot.slane %v2416_v11, 4  ;;  %v2408_v18 = vrot.slane %v2407_v39, 2  ;;  %v2558_v1 = vadd.f32 %v2557_v35, %v2556_v50  ;;  %v2568_v15 = vrot.slane %v2567_v33, 4 }
 0x27c   :  { %v2351_v16 = vpop.f32.mrf.mxu3  ;;  %v2498_v50 = vmul.f32 %v8040_v17, %v8040_v17  ;;  %v2576_v35 = vadd.f32 %v2575_v21, %v2490_v23  ;;  %v2491_v0 = vmul.f32 %v8037_v59, %v8037_v59  ;;  %v2426_v53 = vadd.f32 %v2425_v28, %v8040_v17 }
 0x27d   :  { %4789 = vmatmul.msk.f32.gmra.mxu3 %vm3004_vm8, %v7930_v61  ;;  %v2418_v13 = vadd.f32 %v2417_v47, %v2416_v11  ;;  %v8049_v55 = vadd.f32 %v2351_v16, %v9819_v41  ;;  %v2409_v46 = vadd.f32 %v2408_v18, %v2407_v39  ;;  %v2559_v61 = vrot.slane %v2558_v1, 2 }
 0x27e   :  { %v2569_v34 = vadd.f32 %v2568_v15, %v2567_v33  ;;  %v2577_v23 = vadd.f32 %v2576_v35, %v2498_v50  ;;  %v2587_v35 = vadd.f32 %v2586_v42, %v2491_v0 }
 0x27f   :  { %v2419_v40 = vrot.slane %v2418_v13, 2  ;;  %v2410_v37 = vrot.slane %v2409_v46, 1  ;;  %v2560_v11 = vadd.f32 %v2559_v61, %v2558_v1  ;;  %v2437_v60 = vadd.f32 %v2436_v8, %v8049_v55 }
 0x280   :  { %v2570_v47 = vrot.slane %v2569_v34, 2  ;;  %v2499_v33 = vmul.f32 %v8049_v55, %v8049_v55  ;;  %v9553_v1 = vmov 8  }
 0x281   :  { %v2420_v41 = vadd.f32 %v2419_v40, %v2418_v13  ;;  %v2411_v31 = vadd.f32 %v2410_v37, %v2409_v46  ;;  %v2561_v39 = vrot.slane %v2560_v11, 1  ;;  %v2319_v16 = vpop.f32.mrf.mxu2  ;;  %4874 = vset.pattern.permute.xlu0 %v9553_v1  ;;  %4871 = vset.pattern.permute.xlu2 %v9553_v1  ;;  %v9824_v40 = vld [vmem:[#allocation53_spill] sm:$0xff] }
 0x282   :  { %v2571_v18 = vadd.f32 %v2570_v47, %v2569_v34  ;;  %v8062_v21 = vadd.f32 %v2319_v16, %v9822_v44  ;;  %4872 = vset.pattern.permute.xlu1 %v9553_v1  ;;  %4086 = vperm.xlu0 %4874, %v7845_v54   ;;  %v2588_v16 = vadd.f32 %v2587_v35, %v2499_v33 }
 0x283   :  { %v2421_v25 = vrot.slane %v2420_v41, 1  ;;  %v8067_v13 = vmul.f32 %v9824_v40, %v2411_v31  ;;  %v2562_v28 = vadd.f32 %v2561_v39, %v2560_v11  ;;  %4090 = vperm.xlu1 %4872, %v7824_v10   ;;  %4098 = vperm.xlu2 %4871, %v7870_v63  }
 0x284   :  { %v2354_v15 = vpop.f32.mrf.mxu3  ;;  %v2572_v61 = vrot.slane %v2571_v18, 1  ;;  %v2427_v8 = vadd.f32 %v2426_v53, %v8062_v21  ;;  %v2506_v50 = vmul.f32 %v8062_v21, %v8062_v21 }
 0x285   :  { %v8070_v46 = vadd.f32 %v2354_v15, %v9822_v44  ;;  %v2422_v34 = vadd.f32 %v2421_v25, %v2420_v41  ;;  %v2600_v37 = vmul.f32 %v2562_v28, %v9824_v40  ;;  %v2608_v44 = vmul.f32 %v8067_v13, %v8067_v13 }
 0x286   :  { %v2573_v47 = vadd.f32 %v2572_v61, %v2571_v18  ;;  %v2428_v53 = vrot.slane %v2427_v8, 4  ;;  %v2578_v31 = vadd.f32 %v2577_v23, %v2506_v50  ;;  %v9825_v50 = vmov 7  }
 0x287   :  { %v2438_v11 = vadd.f32 %v2437_v60, %v8070_v46  ;;  %v8084_v41 = vmul.f32 %v9824_v40, %v2422_v34  ;;  %v2616_v39 = vsub.f32 %v2600_v37, %v2608_v44  ;;  %v2507_v10 = vmul.f32 %v8070_v46, %v8070_v46 }
 0x288   :  { %v2601_v42 = vmul.f32 %v2573_v47, %v9824_v40  ;;  %v2429_v15 = vadd.f32 %v2428_v53, %v2427_v8  ;;  %v2579_v60 = vrot.slane %v2578_v31, 4 }
 0x289   :  { %v2439_v25 = vrot.slane %v2438_v11, 4  ;;  %v2609_v0 = vmul.f32 %v8084_v41, %v8084_v41  ;;  %v8091_v28 = vadd.f32 1e-05, %v2616_v39  ;;  %v2589_v1 = vadd.f32 %v2588_v16, %v2507_v10 }
 0x28a   :  { %v2430_v61 = vrot.slane %v2429_v15, 2  ;;  %v2580_v33 = vadd.f32 %v2579_v60, %v2578_v31  ;;  %4875 = vset.pattern.permute.xlu0 %v9825_v50 }
 0x28b   :  { %v2440_v34 = vadd.f32 %v2439_v25, %v2438_v11  ;;  %v2617_v18 = vsub.f32 %v2601_v42, %v2609_v0  ;;  %4909 = vrsqrt.f32 %v8091_v28  ;;  %v2590_v44 = vrot.slane %v2589_v1, 4  ;;  %4876 = vset.pattern.permute.xlu1 %v9825_v50  ;;  %4002 = vperm.xlu0 %4875, %v7870_v63  }
 0x28c   :  { %v2431_v37 = vadd.f32 %v2430_v61, %v2429_v15  ;;  %v2581_v8 = vrot.slane %v2580_v33, 2  ;;  %3982 = vperm.xlu1 %4876, %v7814_v20   ;;  %4094 = vperm.xlu2 %4871, %v7857_v49   ;;  %v2664_v63 = vsub.f32 %v8002_v38, %v8067_v13  ;;  %v2656_v61 = vsub.f32 %v7958_v6, %v8067_v13 }
 0x28d   :  { %v2441_v23 = vrot.slane %v2440_v34, 2  ;;  %v8095_v35 = vadd.f32 1e-05, %v2617_v18  ;;  %v2591_v53 = vadd.f32 %v2590_v44, %v2589_v1  ;;  %v2657_v44 = vsub.f32 %v7982_v57, %v8084_v41 }
 0x28e   :  { %v2432_v11 = vrot.slane %v2431_v37, 1  ;;  %v2582_v31 = vadd.f32 %v2581_v8, %v2580_v33  ;;  %vm2722_vm10 = vweird.f32 %v8091_v28  ;;  %v2648_v6 = vsub.f32 %v7942_v14, %v8067_v13 }
 0x28f   :  { %v2442_v47 = vadd.f32 %v2441_v23, %v2440_v34  ;;  %4911 = vrsqrt.f32 %v8095_v35  ;;  %v2592_v25 = vrot.slane %v2591_v53, 2  ;;  %v2665_v34 = vsub.f32 %v8021_v52, %v8084_v41 }
 0x290   :  { %v2433_v16 = vadd.f32 %v2432_v11, %v2431_v37  ;;  %v2583_v42 = vrot.slane %v2582_v31, 1  ;;  %v2649_v57 = vsub.f32 %v7966_v19, %v8084_v41  ;;  %v2641_v14 = vsub.f32 %v7925_v24, %v8084_v41 }
 0x291   :  { %v2443_v39 = vrot.slane %v2442_v47, 1  ;;  %v4910_v10 = vpop.eup %4909  ;;  %v2593_v49 = vadd.f32 %v2592_v25, %v2591_v53  ;;  %vm2732_vm12 = vweird.f32 %v8095_v35  ;;  %v2632_v19 = vsub.f32 %v7904_v4, %v8067_v13 }
 0x292   :  { %v2717_v15 = vmul.f32 %v4910_v10, %v8091_v28  ;;  %v8106_v60 = vmul.f32 %v9824_v40, %v2433_v16  ;;  %v2584_v1 = vadd.f32 %v2583_v42, %v2582_v31  ;;  %v2640_v16 = vsub.f32 %v7918_v30, %v8067_v13 }
 0x293   :  { %v2444_v0 = vadd.f32 %v2443_v39, %v2442_v47  ;;  %v2594_v37 = vrot.slane %v2593_v49, 1  ;;  %3990 = vperm.xlu0 %4875, %v7845_v54   ;;  %vm2723_vm11 = vweird.f32 %v4910_v10  ;;  %v2624_v24 = vsub.f32 %v7912_v58, %v8067_v13 }
 0x294   :  { %v2718_v23 = vmul.f32 %v4910_v10, %v2717_v15  ;;  %v2610_v38 = vmul.f32 %v8106_v60, %v8106_v60  ;;  %v2602_v47 = vmul.f32 %v2584_v1, %v9824_v40  ;;  %3978 = vperm.xlu1 %4876, %v7801_v43   ;;  %4873 = vset.pattern.permute.xlu2 %v9825_v50  ;;  %vm2724_vm13 = vmor %vm2722_vm10, %vm2723_vm11 }
 0x295   :  { %v8111_v18 = vmul.f32 %v9824_v40, %v2444_v0  ;;  %v4912_v33 = vpop.eup %4911  ;;  %v2595_v53 = vadd.f32 %v2594_v37, %v2593_v49  ;;  %3986 = vperm.xlu2 %4873, %v7832_v9   ;;  %v2633_v15 = vsub.f32 %v7907_v48, %v8084_v41  ;;  %v2625_v1 = vsub.f32 %v7915_v7, %v8084_v41 }
 0x296   :  { %v2727_v8 = vmul.f32 %v4912_v33, %v8095_v35  ;;  %v2719_v11 = vmul.f32 0.5, %v2718_v23  ;;  %v2618_v39 = vsub.f32 %v2602_v47, %v2610_v38  ;;  %vm2733_vm15 = vweird.f32 %v4912_v33 }
 0x297   :  { %v2611_v54 = vmul.f32 %v8111_v18, %v8111_v18  ;;  %v2603_v50 = vmul.f32 %v2595_v53, %v9824_v40  ;;  %v2666_v23 = vsub.f32 %v8062_v21, %v8106_v60  ;;  %v2667_v38 = vsub.f32 %v8070_v46, %v8111_v18  ;;  %vm2734_vm0 = vmor %vm2732_vm12, %vm2733_vm15 }
 0x298   :  { %v2728_v31 = vmul.f32 %v4912_v33, %v2727_v8  ;;  %v2720_v25 = vsub.f32 1.5, %v2719_v11  ;;  %v8138_v0 = vadd.f32 1e-05, %v2618_v39  ;;  %v2658_v28 = vsub.f32 %v8040_v17, %v8106_v60 }
 0x299   :  { %v2619_v30 = vsub.f32 %v2603_v50, %v2611_v54  ;;  %v9826_v54 = vmov 8   ;;  %v2642_v50 = vsub.f32 %v8009_v12, %v8106_v60  ;;  %v2651_v21 = vsub.f32 %v8037_v59, %v8111_v18 }
 0x29a   :  { %v2729_v42 = vmul.f32 0.5, %v2728_v31  ;;  %v2721_v49 = vmul.f32 %v4910_v10, %v2720_v25  ;;  %4913 = vrsqrt.f32 %v8138_v0  ;;  %vm2742_vm1 = vweird.f32 %v8138_v0 }
 0x29b   :  { %v8157_v37 = vadd.f32 1e-05, %v2619_v30  ;;  %3974 = vperm.xlu0 %4875, %v7793_v62  }
 0x29c   :  { %v2730_v40 = vsub.f32 1.5, %v2729_v42  ;;  %v8153_v4 = vsel %vm2724_vm13, %v4910_v10, %v2721_v49  ;;  %4878 = vset.pattern.permute.xlu1 %v9826_v54 }
 0x29d   :  { %v2800_v8 = vmul.f32 %v8153_v4, %v2664_v63  ;;  %v2792_v11 = vmul.f32 %v8153_v4, %v2656_v61  ;;  %v2784_v53 = vmul.f32 %v8153_v4, %v2648_v6  ;;  %4915 = vrsqrt.f32 %v8157_v37  ;;  %4074 = vperm.xlu1 %4878, %v7801_v43   ;;  %4877 = vset.pattern.permute.xlu2 %v9826_v54 }
 0x29e   :  { %v2731_v47 = vmul.f32 %v4912_v33, %v2730_v40  ;;  %v2776_v10 = vmul.f32 %v8153_v4, %v2640_v16  ;;  %v2659_v63 = vsub.f32 %v8049_v55, %v8111_v18  ;;  %v2650_v61 = vsub.f32 %v8024_v51, %v8106_v60  ;;  %4082 = vperm.xlu2 %4877, %v7832_v9  }
 0x29f   :  { %v2872_v6 = vmul.f32 %v7537_v36, %v2800_v8  ;;  %v2864_v35 = vmul.f32 %v7532_v27, %v2792_v11  ;;  %v2856_v39 = vmul.f32 %v7558_v3, %v2784_v53  ;;  %vm2752_vm2 = vweird.f32 %v8157_v37 }
 0x2a0   :  { %v2735_v31 = vsel %vm2734_vm0, %v4912_v33, %v2731_v47  ;;  %v4914_v42 = vpop.eup %4913  ;;  %v2848_v30 = vmul.f32 %v7595_v2, %v2776_v10  ;;  %v2768_v47 = vmul.f32 %v8153_v4, %v2632_v19 }
 0x2a1   :  { %v2801_v43 = vmul.f32 %v2735_v31, %v2665_v34  ;;  %v2793_v16 = vmul.f32 %v2735_v31, %v2657_v44  ;;  %v2785_v25 = vmul.f32 %v2735_v31, %v2649_v57  ;;  %v2944_v49 = vadd.f32 %v7640_v5, %v2872_v6 }
 0x2a2   :  { %v2936_v33 = vadd.f32 %v7556_v45, %v2864_v35  ;;  %v2777_v40 = vmul.f32 %v2735_v31, %v2641_v14  ;;  %v2737_v9 = vmul.f32 %v4914_v42, %v8138_v0  ;;  %v2928_v34 = vadd.f32 %v7589_v32, %v2856_v39 }
 0x2a3   :  { %v2873_v8 = vmul.f32 %v7537_v36, %v2801_v43  ;;  %v2865_v52 = vmul.f32 %v7532_v27, %v2793_v16  ;;  %v2992_v44 = vmax.f32 %v2944_v49, 0.0  ;;  %v2857_v57 = vmul.f32 %v7558_v3, %v2785_v25  ;;  %v4916_v11 = vpop.eup %4915 }
 0x2a4   :  { %v2738_v53 = vmul.f32 %v4914_v42, %v2737_v9  ;;  %v2984_v14 = vmax.f32 %v2936_v33, 0.0  ;;  %v2747_v6 = vmul.f32 %v4916_v11, %v8157_v37  ;;  %v2920_v39 = vadd.f32 %v7648_v26, %v2848_v30 }
 0x2a5   :  { %v2945_v54 = vadd.f32 %v7640_v5, %v2873_v8  ;;  %v2937_v10 = vadd.f32 %v7556_v45, %v2865_v52  ;;  %3203 = vmatpush.msrb.mxu0 %v2992_v44  ;;  %v2929_v35 = vadd.f32 %v7589_v32, %v2857_v57  ;;  %v2849_v43 = vmul.f32 %v7595_v2, %v2777_v40 }
 0x2a6   :  { %v2739_v16 = vmul.f32 0.5, %v2738_v53  ;;  %vm2743_vm3 = vweird.f32 %v4914_v42  ;;  %v2976_v25 = vmax.f32 %v2928_v34, 0.0  ;;  %v2748_v49 = vmul.f32 %v4916_v11, %v2747_v6  ;;  %4078 = vperm.xlu2 %4877, %v7814_v20  }
 0x2a7   :  { %v2993_v19 = vmax.f32 %v2945_v54, 0.0  ;;  %3204 = vmatpush.msrb.mxu0 %v2984_v14  ;;  %v2985_v33 = vmax.f32 %v2937_v10, 0.0  ;;  %v2921_v8 = vadd.f32 %v7648_v26, %v2849_v43  ;;  %v2840_v9 = vmul.f32 %v7683_v29, %v2768_v47  ;;  %vm2744_vm4 = vmor %vm2742_vm1, %vm2743_vm3 }
 0x2a8   :  { %v2740_v52 = vsub.f32 1.5, %v2739_v16  ;;  %v2769_v30 = vmul.f32 %v2735_v31, %v2633_v15  ;;  %v2760_v40 = vmul.f32 %v8153_v4, %v2624_v24  ;;  %v2761_v34 = vmul.f32 %v2735_v31, %v2625_v1  ;;  %v9827_v4 = vld [vmem:[#allocation58_spill] sm:$0xff] }
 0x2a9   :  { %3244 = vmatpush.msrb.mxu1 %v2993_v19  ;;  %v2749_v44 = vmul.f32 0.5, %v2748_v49  ;;  %3205 = vmatpush.msrb.mxu0 %v2976_v25  ;;  %v2977_v57 = vmax.f32 %v2929_v35, 0.0  ;;  %v2968_v47 = vmax.f32 %v2920_v39, 0.0  ;;  %v2912_v20 = vadd.f32 %v7704_v56, %v2840_v9  ;;  %v9829_v49 = vld [vmem:[#allocation7_spill] sm:$0xff] }
 0x2aa   :  { %v2741_v53 = vmul.f32 %v4914_v42, %v2740_v52  ;;  %v2841_v48 = vmul.f32 %v7683_v29, %v2769_v30  ;;  %v2832_v15 = vmul.f32 %v7645_v22, %v2760_v40  ;;  %v2833_v58 = vmul.f32 %v7645_v22, %v2761_v34  ;;  %v9831_v52 = vld [vmem:[#allocation83_spill] sm:$0xff] }
 0x2ab   :  { %3245 = vmatpush.msrb.mxu1 %v2985_v33  ;;  %v2750_v7 = vsub.f32 1.5, %v2749_v44  ;;  %vm2753_vm5 = vweird.f32 %v4916_v11  ;;  %3206 = vmatpush.msrb.mxu0 %v2968_v47  ;;  %v2969_v13 = vmax.f32 %v2921_v8, 0.0  ;;  %v2960_v41 = vmax.f32 %v2912_v20, 0.0  ;;  %v9830_v8 = vld [vmem:[#allocation12_spill] sm:$0xff] }
 0x2ac   :  { %v2745_v24 = vsel %vm2744_vm4, %v4914_v42, %v2741_v53  ;;  %v2913_v1 = vadd.f32 %v7704_v56, %v2841_v48  ;;  %v2904_v31 = vadd.f32 %v9827_v4, %v2832_v15  ;;  %v2905_v54 = vadd.f32 %v9827_v4, %v2833_v58  ;;  %vm2754_vm6 = vmor %vm2752_vm2, %vm2753_vm5 }
 0x2ad   :  { %3246 = vmatpush.msrb.mxu1 %v2977_v57  ;;  %v2802_v14 = vmul.f32 %v2745_v24, %v2666_v23  ;;  %v2751_v10 = vmul.f32 %v4916_v11, %v2750_v7  ;;  %3207 = vmatpush.msrb.mxu0 %v2960_v41  ;;  %v2794_v0 = vmul.f32 %v2745_v24, %v2658_v28 }
 0x2ae   :  { %v2786_v42 = vmul.f32 %v2745_v24, %v2650_v61  ;;  %v2961_v6 = vmax.f32 %v2913_v1, 0.0  ;;  %v2952_v35 = vmax.f32 %v2904_v31, 0.0  ;;  %v2778_v23 = vmul.f32 %v2745_v24, %v2642_v50  ;;  %4070 = vperm.xlu2 %4877, %v7793_v62   ;;  %v9828_v50 = vld [vmem:[#allocation74_spill] sm:$0xff] }
 0x2af   :  { %3247 = vmatpush.msrb.mxu1 %v2969_v13  ;;  %v2874_v17 = vmul.f32 %v7537_v36, %v2802_v14  ;;  %v2755_v28 = vsel %vm2754_vm6, %v4916_v11, %v2751_v10  ;;  %v2866_v39 = vmul.f32 %v7532_v27, %v2794_v0  ;;  %v2953_v59 = vmax.f32 %v2905_v54, 0.0  ;;  %v9834_v54 = vld [vmem:[#allocation75_spill] sm:$0xff] }
 0x2b0   :  { %v2858_v51 = vmul.f32 %v7558_v3, %v2786_v42  ;;  %v2803_v37 = vmul.f32 %v2755_v28, %v2667_v38  ;;  %3208 = vmatpush.msrb.mxu0 %v2952_v35  ;;  %v2795_v12 = vmul.f32 %v2755_v28, %v2659_v63  ;;  %v2787_v61 = vmul.f32 %v2755_v28, %v2651_v21 }
 0x2b1   :  { %3248 = vmatpush.msrb.mxu1 %v2961_v6  ;;  %4790 = vmatmul.msk.f32.vlgmr.msrb.gmra.mxu0 %vm3004_vm8, %v9828_v50  ;;  %v2946_v11 = vadd.f32 %v7640_v5, %v2874_v17  ;;  %v2938_v43 = vadd.f32 %v7556_v45, %v2866_v39  ;;  %v8255_v62 = vpop.f32.mrf.mxu0  ;;  %v2850_v46 = vmul.f32 %v7595_v2, %v2778_v23  ;;  %v9835_v17 = vld [vmem:[#allocation76_spill] sm:$0xff] }
 0x2b2   :  { %v2875_v38 = vmul.f32 %v7537_v36, %v2803_v37  ;;  %v2867_v16 = vmul.f32 %v7532_v27, %v2795_v12  ;;  %v2930_v55 = vadd.f32 %v7589_v32, %v2858_v51  ;;  %v2859_v63 = vmul.f32 %v7558_v3, %v2787_v61  ;;  %v9832_v3 = vld [vmem:[#allocation81_spill] sm:$0xff] }
 0x2b3   :  { %3249 = vmatpush.msrb.mxu1 %v2953_v59  ;;  %v2994_v19 = vmax.f32 %v2946_v11, 0.0  ;;  %v8264_v25 = vpop.f32.mrf.mxu1  ;;  %v2643_v33 = vsub.f32 %v9829_v49, %v8111_v18  ;;  %v2634_v9 = vsub.f32 %v9830_v8, %v8106_v60  ;;  %v2635_v30 = vsub.f32 %v9831_v52, %v8111_v18  ;;  %v9836_v37 = vld [vmem:[#allocation77_spill] sm:$0xff]  ;;  %v9837_v11 = vld [vmem:[#allocation26_spill] sm:$0xff]  ;;  %v9842_v49 = vld [vmem:[#allocation27_spill] sm:$0xff] }
 0x2b4   :  { %4798 = vmatmul.msk.f32.vlgmr.msrb.gmra.mxu1 %vm3004_vm8, %v9828_v50  ;;  %v2947_v36 = vadd.f32 %v7640_v5, %v2875_v38  ;;  %v2939_v27 = vadd.f32 %v7556_v45, %v2867_v16  ;;  %v2626_v40 = vsub.f32 %v9832_v3, %v8106_v60  ;;  %v2986_v34 = vmax.f32 %v2938_v43, 0.0  ;;  %v9833_v5 = vld [vmem:[#allocation82_spill] sm:$0xff]  ;;  %v9839_v38 = vld [vmem:[#allocation20_spill] sm:$0xff] }
 0x2b5   :  { %3285 = vmatpush.msrb.mxu2 %v2994_v19  ;;  %v2922_v44 = vadd.f32 %v7648_v26, %v2850_v46  ;;  %v2779_v57 = vmul.f32 %v2755_v28, %v2643_v33  ;;  %v2770_v47 = vmul.f32 %v2745_v24, %v2634_v9  ;;  %v2978_v53 = vmax.f32 %v2930_v55, 0.0  ;;  %v8313_v46 = vpop.permute.xlu1 %3362  ;;  %v9840_v55 = vld [vmem:[#allocation21_spill] sm:$0xff]  ;;  %v8319_v19 = vpop.permute.xlu0 %3358  ;;  %v9843_v8 = vld [vmem:[#allocation78_spill] sm:$0xff] }
 0x2b6   :  { %v2995_v20 = vmax.f32 %v2947_v36, 0.0  ;;  %v2931_v48 = vadd.f32 %v7589_v32, %v2859_v63  ;;  %v2627_v15 = vsub.f32 %v9833_v5, %v8111_v18  ;;  %v2771_v7 = vmul.f32 %v2755_v28, %v2635_v30  ;;  %9838 = vst [vmem:[#allocation53_spill] sm:$0xff] %v8313_v46  ;;  %v9846_v30 = vld [vmem:[#allocation32_spill] sm:$0xff] }
 0x2b7   :  { %3286 = vmatpush.msrb.mxu2 %v2986_v34  ;;  %v2851_v45 = vmul.f32 %v7595_v2, %v2779_v57  ;;  %v2842_v58 = vmul.f32 %v7683_v29, %v2770_v47  ;;  %v2762_v60 = vmul.f32 %v2745_v24, %v2626_v40  ;;  %v2987_v13 = vmax.f32 %v2939_v27, 0.0  ;;  %9841 = vst [vmem:[#allocation58_spill] sm:$0xff] %v8319_v19  ;;  %v9844_v27 = vld [vmem:[#allocation31_spill] sm:$0xff]  ;;  %v9847_v47 = vld [vmem:[#allocation24_spill] sm:$0xff] }
 0x2b8   :  { %3326 = vmatpush.msrb.mxu3 %v2995_v20  ;;  %v2763_v41 = vmul.f32 %v2755_v28, %v2627_v15  ;;  %v2970_v1 = vmax.f32 %v2922_v44, 0.0  ;;  %v2843_v18 = vmul.f32 %v7683_v29, %v2771_v7  ;;  %v2979_v2 = vmax.f32 %v2931_v48, 0.0  ;;  %v4964_v28 = vld [vmem:[%s9452_s3] sm:$0xff]  ;;  %v9850_v7 = vld [vmem:[#allocation25_spill] sm:$0xff] }
 0x2b9   :  { %3287 = vmatpush.msrb.mxu2 %v2978_v53  ;;  %v2923_v31 = vadd.f32 %v7648_v26, %v2851_v45  ;;  %4791 = vmatmul.msk.f32.gmra.mxu0 %vm3004_vm8, %v9834_v54  ;;  %v2914_v32 = vadd.f32 %v7704_v56, %v2842_v58  ;;  %v2834_v10 = vmul.f32 %v7645_v22, %v2762_v60  ;;  %v9848_v53 = vld [vmem:[#allocation37_spill] sm:$0xff] }
 0x2ba   :  { %3327 = vmatpush.msrb.mxu3 %v2987_v13  ;;  %v2835_v24 = vmul.f32 %v7645_v22, %v2763_v41  ;;  %v2915_v26 = vadd.f32 %v7704_v56, %v2843_v18  ;;  %v3047_v16 = vadd.f32 %v8255_v62, %v9839_v38  ;;  %v3088_v63 = vadd.f32 %v8264_v25, %v9840_v55  ;;  %v8330_v62 = vpop.permute.xlu2 %3366 }
 0x2bb   :  { %v3049_v14 = vpop.f32.mrf.mxu0  ;;  %3288 = vmatpush.msrb.mxu2 %v2970_v1  ;;  %v2962_v0 = vmax.f32 %v2914_v32, 0.0  ;;  %v2971_v6 = vmax.f32 %v2923_v31, 0.0  ;;  %v2906_v35 = vadd.f32 %v9827_v4, %v2834_v10  ;;  %9845 = vst [vmem:[#allocation74_spill] sm:$0xff] %v8330_v62  ;;  %v9851_v1 = vld [vmem:[#allocation29_spill] sm:$0xff] }
 0x2bc   :  { %4799 = vmatmul.msk.f32.gmra.mxu1 %vm3004_vm8, %v9834_v54  ;;  %v3090_v42 = vpop.f32.mrf.mxu1  ;;  %3328 = vmatpush.msrb.mxu3 %v2979_v2  ;;  %v2907_v29 = vadd.f32 %v9827_v4, %v2835_v24  ;;  %v2963_v21 = vmax.f32 %v2915_v26, 0.0  ;;  %v3050_v43 = vadd.f32 %v3049_v14, %v9837_v11  ;;  %v8333_v25 = vadd.f32 %v8319_v19, %v3047_v16  ;;  %v9853_v2 = vld [vmem:[#allocation38_spill] sm:$0xff]  ;;  %v9854_v24 = vld [vmem:[#allocation79_spill] sm:$0xff] }
 0x2bd   :  { %3289 = vmatpush.msrb.mxu2 %v2962_v0  ;;  %v2954_v23 = vmax.f32 %v2906_v35, 0.0  ;;  %v3091_v33 = vadd.f32 %v3090_v42, %v9842_v49  ;;  %v8341_v44 = vadd.f32 %v8319_v19, %v3088_v63  ;;  %v8351_v45 = vpop.permute.xlu1 %3370  ;;  %v9855_v42 = vld [vmem:[#allocation30_spill] sm:$0xff]  ;;  %v9861_v49 = vld [vmem:[#allocation36_spill] sm:$0xff] }
 0x2be   :  { %3329 = vmatpush.msrb.mxu3 %v2971_v6  ;;  %v2955_v22 = vmax.f32 %v2907_v29, 0.0  ;;  %v8327_v36 = vadd.f32 %v8313_v46, %v3050_v43  ;;  %9849 = vst [vmem:[#allocation7_spill] sm:$0xff] %v8351_v45  ;;  %v3565_v41 = vmul.f32 %v8333_v25, %v8333_v25 }
 0x2bf   :  { %3290 = vmatpush.msrb.mxu2 %v2954_v23  ;;  %v8344_v57 = vadd.f32 %v8313_v46, %v3091_v33  ;;  %v3566_v32 = vmul.f32 %v8341_v44, %v8341_v44 }
 0x2c0   :  { %3330 = vmatpush.msrb.mxu3 %v2963_v21  ;;  %4806 = vmatmul.msk.f32.vlgmr.msrb.gmra.mxu2 %vm3004_vm8, %v9828_v50  ;;  %v3573_v58 = vmul.f32 %v8327_v36, %v8327_v36 }
 0x2c1   :  { %4792 = vmatmul.msk.f32.gmra.mxu0 %vm3004_vm8, %v9835_v17  ;;  %v3574_v18 = vmul.f32 %v8344_v57, %v8344_v57  ;;  %v3466_v21 = vadd.f32 %v8344_v57, %v8341_v44 }
 0x2c2   :  { %3331 = vmatpush.msrb.mxu3 %v2955_v22  ;;  %v3629_v29 = vadd.f32 %v3573_v58, %v3565_v41  ;;  %v9857_v22 = vld [vmem:[#allocation43_spill] sm:$0xff]  ;;  %v9863_v58 = vld [vmem:[#allocation80_spill] sm:$0xff] }
 0x2c3   :  { %v3052_v56 = vpop.f32.mrf.mxu0  ;;  %4814 = vmatmul.msk.f32.vlgmr.msrb.gmra.mxu3 %vm3004_vm8, %v4964_v28 }
 0x2c4   :  { %4800 = vmatmul.msk.f32.gmra.mxu1 %vm3004_vm8, %v9835_v17  ;;  %v3093_v39 = vpop.f32.mrf.mxu1  ;;  %v3053_v52 = vadd.f32 %v3052_v56, %v9844_v27 }
 0x2c5   :  { %v3094_v3 = vadd.f32 %v3093_v39, %v9846_v30 }
 0x2c6   :  { %v3128_v4 = vpop.f32.mrf.mxu2  ;;  %v8349_v15 = vadd.f32 %v8330_v62, %v3053_v52 }
 0x2c7   :  { %v3129_v20 = vadd.f32 %v3128_v4, %v9847_v47  ;;  %v8357_v13 = vadd.f32 %v8330_v62, %v3094_v3 }
 0x2c8   :  { %v3169_v51 = vpop.f32.mrf.mxu3  ;;  %4807 = vmatmul.msk.f32.gmra.mxu2 %vm3004_vm8, %v9834_v54  ;;  %v3581_v35 = vmul.f32 %v8349_v15, %v8349_v15 }
 0x2c9   :  { %4793 = vmatmul.msk.f32.gmra.mxu0 %vm3004_vm8, %v9836_v37  ;;  %v3170_v60 = vadd.f32 %v3169_v51, %v9850_v7  ;;  %v8369_v14 = vadd.f32 %v8319_v19, %v3129_v20  ;;  %v3582_v4 = vmul.f32 %v8357_v13, %v8357_v13  ;;  %v9858_v51 = vld [vmem:[#allocation35_spill] sm:$0xff] }
 0x2cb   :  { %v3055_v59 = vpop.f32.mrf.mxu0  ;;  %4815 = vmatmul.msk.f32.gmra.mxu3 %vm3004_vm8, %v9834_v54  ;;  %v3453_v54 = vadd.f32 %v8327_v36, %v8333_v25  ;;  %9852 = vst [vmem:[#allocation12_spill] sm:$0xff] %v8369_v14  ;;  %v8385_v23 = vadd.f32 %v8319_v19, %v3170_v60  ;;  %v3567_v11 = vmul.f32 %v8369_v14, %v8369_v14 }
 0x2cc   :  { %4801 = vmatmul.msk.f32.gmra.mxu1 %vm3004_vm8, %v9836_v37  ;;  %v3096_v61 = vpop.f32.mrf.mxu1  ;;  %v3056_v48 = vadd.f32 %v3055_v59, %v9848_v53  ;;  %v4965_v53 = vld [vmem:[%s9452_s3 + $0x20] sm:$0xff] }
 0x2cd   :  { %v3097_v10 = vadd.f32 %v3096_v61, %v9853_v2  ;;  %9856 = vst [vmem:[#allocation83_spill] sm:$0xff] %v8385_v23  ;;  %v3454_v38 = vadd.f32 %v3453_v54, %v8349_v15  ;;  %v3568_v27 = vmul.f32 %v8385_v23, %v8385_v23  ;;  %v9864_v54 = vld [vmem:[#allocation41_spill] sm:$0xff] }
 0x2ce   :  { %v3131_v12 = vpop.f32.mrf.mxu2  ;;  %v8377_v26 = vadd.f32 %v8351_v45, %v3056_v48  ;;  %v9862_v48 = vld [vmem:[#allocation49_spill] sm:$0xff] }
 0x2cf   :  { %v3132_v31 = vadd.f32 %v3131_v12, %v9851_v1  ;;  %v9859_v12 = vld [vmem:[#allocation44_spill] sm:$0xff]  ;;  %v8407_v55 = vadd.f32 %v8351_v45, %v3097_v10  ;;  %v9866_v10 = vld [vmem:[#allocation50_spill] sm:$0xff] }
 0x2d0   :  { %v3172_v50 = vpop.f32.mrf.mxu3  ;;  %4808 = vmatmul.msk.f32.gmra.mxu2 %vm3004_vm8, %v9835_v17  ;;  %v3589_v16 = vmul.f32 %v8377_v26, %v8377_v26  ;;  %v3455_v30 = vadd.f32 %v3454_v38, %v8377_v26 }
 0x2d1   :  { %4794 = vmatmul.msk.f32.gmra.mxu0 %vm3004_vm8, %v9843_v8  ;;  %v3173_v6 = vadd.f32 %v3172_v50, %v9855_v42  ;;  %v8395_v39 = vadd.f32 %v8313_v46, %v3132_v31  ;;  %v8399_v50 = vpop.permute.xlu2 %3374  ;;  %v3590_v41 = vmul.f32 %v8407_v55, %v8407_v55  ;;  %v9867_v42 = vld [vmem:[#allocation51_spill] sm:$0xff] }
 0x2d2   :  { %9860 = vst [vmem:[#allocation81_spill] sm:$0xff] %v8399_v50 }
 0x2d3   :  { %v3058_v9 = vpop.f32.mrf.mxu0  ;;  %4816 = vmatmul.msk.f32.gmra.mxu3 %vm3004_vm8, %v9835_v17  ;;  %v8410_v63 = vadd.f32 %v8313_v46, %v3173_v6 }
 0x2d4   :  { %4802 = vmatmul.msk.f32.gmra.mxu1 %vm3004_vm8, %v9843_v8  ;;  %v3099_v34 = vpop.f32.mrf.mxu1  ;;  %v3059_v17 = vadd.f32 %v3058_v9, %v9857_v22  ;;  %v3630_v8 = vadd.f32 %v3629_v29, %v3581_v35  ;;  %v3467_v9 = vadd.f32 %v3466_v21, %v8357_v13 }
 0x2d5   :  { %v3100_v61 = vadd.f32 %v3099_v34, %v9859_v12  ;;  %v3575_v34 = vmul.f32 %v8395_v39, %v8395_v39  ;;  %v3576_v1 = vmul.f32 %v8410_v63, %v8410_v63  ;;  %v3492_v22 = vadd.f32 %v8410_v63, %v8385_v23  ;;  %v9870_v12 = vld [vmem:[#allocation52_spill] sm:$0xff] }
 0x2d6   :  { %v3134_v40 = vpop.f32.mrf.mxu2  ;;  %v8417_v52 = vadd.f32 %v8399_v50, %v3059_v17  ;;  %v3631_v60 = vadd.f32 %v3630_v8, %v3589_v16  ;;  %v3468_v2 = vadd.f32 %v3467_v9, %v8407_v55 }
 0x2d7   :  { %v3135_v59 = vadd.f32 %v3134_v40, %v9858_v51  ;;  %v3479_v40 = vadd.f32 %v8395_v39, %v8369_v14  ;;  %v8428_v20 = vadd.f32 %v8399_v50, %v3100_v61  ;;  %v3655_v21 = vadd.f32 %v3575_v34, %v3567_v11 }
 0x2d8   :  { %v3175_v5 = vpop.f32.mrf.mxu3  ;;  %4809 = vmatmul.msk.f32.gmra.mxu2 %vm3004_vm8, %v9836_v37  ;;  %v3597_v29 = vmul.f32 %v8417_v52, %v8417_v52  ;;  %v3668_v38 = vadd.f32 %v3576_v1, %v3568_v27 }
 0x2d9   :  { %4795 = vmatmul.msk.f32.gmra.mxu0 %vm3004_vm8, %v9854_v24  ;;  %v3176_v33 = vadd.f32 %v3175_v5, %v9861_v49  ;;  %v8425_v47 = vadd.f32 %v8330_v62, %v3135_v59 }
 0x2da   :  { %v3632_v9 = vadd.f32 %v3631_v60, %v3597_v29 }
 0x2db   :  { %v3061_v0 = vpop.f32.mrf.mxu0  ;;  %4817 = vmatmul.msk.f32.gmra.mxu3 %vm3004_vm8, %v9836_v37  ;;  %v3642_v37 = vadd.f32 %v3574_v18, %v3566_v32  ;;  %v8442_v31 = vadd.f32 %v8330_v62, %v3176_v33  ;;  %v8445_v18 = vpop.permute.xlu0 %3378  ;;  %v3583_v17 = vmul.f32 %v8425_v47, %v8425_v47  ;;  %v3456_v33 = vadd.f32 %v3455_v30, %v8417_v52  ;;  %v4966_v30 = vld [vmem:[%s9452_s3 + $0x28] sm:$0xff] }
 0x2dc   :  { %4803 = vmatmul.msk.f32.gmra.mxu1 %vm3004_vm8, %v9854_v24  ;;  %v3102_v28 = vpop.f32.mrf.mxu1  ;;  %v3062_v5 = vadd.f32 %v3061_v0, %v9862_v48  ;;  %9865 = vst [vmem:[#allocation82_spill] sm:$0xff] %v8445_v18  ;;  %v3480_v8 = vadd.f32 %v3479_v40, %v8425_v47  ;;  %v8493_v40 = vld [vmem:[%s9452_s3 + $0x38] sm:$0xff] }
 0x2dd   :  { %v3643_v3 = vadd.f32 %v3642_v37, %v3582_v4  ;;  %v3103_v24 = vadd.f32 %v3102_v28, %v9866_v10  ;;  %v3598_v28 = vmul.f32 %v8428_v20, %v8428_v20  ;;  %v9869_v4 = vld [vmem:[#allocation42_spill] sm:$0xff]  ;;  %v3584_v16 = vmul.f32 %v8442_v31, %v8442_v31 }
 0x2de   :  { %v3137_v56 = vpop.f32.mrf.mxu2  ;;  %v8466_v37 = vadd.f32 %v8445_v18, %v3062_v5  ;;  %v3493_v27 = vadd.f32 %v3492_v22, %v8442_v31 }
 0x2df   :  { %v3138_v32 = vadd.f32 %v3137_v56, %v9864_v54  ;;  %v8459_v56 = vpop.permute.xlu1 %3382  ;;  %v3644_v11 = vadd.f32 %v3643_v3, %v3590_v41  ;;  %v8479_v34 = vadd.f32 %v8445_v18, %v3103_v24  ;;  %v3469_v3 = vadd.f32 %v3468_v2, %v8428_v20  ;;  %v8503_v54 = vpop.permute.xlu2 %3386 }
 0x2e0   :  { %v3178_v43 = vpop.f32.mrf.mxu3  ;;  %4810 = vmatmul.msk.f32.gmra.mxu2 %vm3004_vm8, %v4965_v53  ;;  %9868 = vst [vmem:[#allocation75_spill] sm:$0xff] %v8459_v56  ;;  %v3669_v41 = vadd.f32 %v3668_v38, %v3584_v16  ;;  %v3457_v10 = vadd.f32 %v3456_v33, %v8466_v37  ;;  %v9875_v33 = vld [vmem:[#allocation48_spill] sm:$0xff] }
 0x2e1   :  { %4796 = vmatmul.msk.f32.gmra.mxu0 %vm3004_vm8, %v9863_v58  ;;  %v3179_v51 = vadd.f32 %v3178_v43, %v9869_v4  ;;  %v8471_v49 = vadd.f32 %v8351_v45, %v3138_v32  ;;  %v3645_v48 = vadd.f32 %v3644_v11, %v3598_v28  ;;  %9871 = vst [vmem:[#allocation76_spill] sm:$0xff] %v8503_v54  ;;  %v9872_v32 = vld [vmem:[#allocation56_spill] sm:$0xff]  ;;  %v9874_v4 = vld [vmem:[#allocation57_spill] sm:$0xff] }
 0x2e2   :  { %v3606_v29 = vmul.f32 %v8479_v34, %v8479_v34  ;;  %v3470_v38 = vadd.f32 %v3469_v3, %v8479_v34 }
 0x2e3   :  { %v3064_v7 = vpop.f32.mrf.mxu0  ;;  %4818 = vmatmul.msk.f32.gmra.mxu3 %vm3004_vm8, %v4965_v53  ;;  %v3656_v53 = vadd.f32 %v3655_v21, %v3583_v17  ;;  %v8484_v5 = vadd.f32 %v8351_v45, %v3179_v51  ;;  %v3481_v1 = vadd.f32 %v3480_v8, %v8471_v49  ;;  %v3591_v24 = vmul.f32 %v8471_v49, %v8471_v49  ;;  %v9873_v21 = vld [vmem:[#allocation47_spill] sm:$0xff] }
 0x2e4   :  { %4804 = vmatmul.msk.f32.gmra.mxu1 %vm3004_vm8, %v9863_v58  ;;  %v3065_v6 = vadd.f32 %v3064_v7, %v9867_v42  ;;  %v3105_v35 = vpop.f32.mrf.mxu1  ;;  %v3605_v7 = vmul.f32 %v8466_v37, %v8466_v37 }
 0x2e5   :  { %v3106_v61 = vadd.f32 %v3105_v35, %v9870_v12  ;;  %v3592_v12 = vmul.f32 %v8484_v5, %v8484_v5  ;;  %v3657_v3 = vadd.f32 %v3656_v53, %v3591_v24  ;;  %v3494_v53 = vadd.f32 %v3493_v27, %v8484_v5 }
 0x2e6   :  { %v3140_v0 = vpop.f32.mrf.mxu2  ;;  %v8476_v43 = vadd.f32 %v8459_v56, %v3065_v6  ;;  %v3633_v11 = vadd.f32 %v3632_v9, %v3605_v7  ;;  %v3646_v7 = vadd.f32 %v3645_v48, %v3606_v29 }
 0x2e7   :  { %v8500_v60 = vadd.f32 %v8459_v56, %v3106_v61  ;;  %v3141_v22 = vadd.f32 %v3140_v0, %v9873_v21  ;;  %v9876_v0 = vld [vmem:[#allocation11_spill] sm:$0xff]  ;;  %v9877_v21 = vld [vmem:[#allocation6_spill] sm:$0xff] }
 0x2e8   :  { %v3181_v59 = vpop.f32.mrf.mxu3  ;;  %4811 = vmatmul.msk.f32.gmra.mxu2 %vm3004_vm8, %v4966_v30  ;;  %v3613_v6 = vmul.f32 %v8476_v43, %v8476_v43  ;;  %v3458_v28 = vadd.f32 %v3457_v10, %v8476_v43 }
 0x2e9   :  { %4797 = vmatmul.msk.f32.gmra.mxu0 %vm3004_vm8, %v8493_v40  ;;  %v3614_v16 = vmul.f32 %v8500_v60, %v8500_v60  ;;  %v3182_v8 = vadd.f32 %v3181_v59, %v9875_v33  ;;  %v3471_v9 = vadd.f32 %v3470_v38, %v8500_v60 }
 0x2eb   :  { %v3067_v58 = vpop.f32.mrf.mxu0  ;;  %4819 = vmatmul.msk.f32.gmra.mxu3 %vm3004_vm8, %v4966_v30  ;;  %v3647_v48 = vadd.f32 %v3646_v7, %v3614_v16  ;;  %v8549_v24 = vadd.f32 %v8399_v50, %v3182_v8 }
 0x2ec   :  { %v3068_v2 = vadd.f32 %v3067_v58, %v9872_v32  ;;  %4805 = vmatmul.msk.f32.gmra.mxu1 %vm3004_vm8, %v8493_v40  ;;  %v3108_v35 = vpop.f32.mrf.mxu1 }
 0x2ed   :  { %v3109_v51 = vadd.f32 %v3108_v35, %v9874_v4  ;;  %v8537_v35 = vadd.f32 %v8399_v50, %v3141_v22 }
 0x2ee   :  { %v3143_v42 = vpop.f32.mrf.mxu2  ;;  %v8518_v17 = vadd.f32 %v8503_v54, %v3068_v2  ;;  %v3634_v2 = vadd.f32 %v3633_v11, %v3613_v6  ;;  %v3670_v11 = vadd.f32 %v3669_v41, %v3592_v12 }
 0x2ef   :  { %v3144_v30 = vadd.f32 %v3143_v42, %v9876_v0  ;;  %v8533_v10 = vadd.f32 %v8503_v54, %v3109_v51  ;;  %v4968_v42 = vld [vmem:[%s9452_s3 + $0x30] sm:$0xff]  ;;  %v3599_v16 = vmul.f32 %v8537_v35, %v8537_v35 }
 0x2f0   :  { %v3184_v61 = vpop.f32.mrf.mxu3  ;;  %v3459_v58 = vadd.f32 %v3458_v28, %v8518_v17  ;;  %v3621_v32 = vmul.f32 %v8518_v17, %v8518_v17  ;;  %4812 = vmatmul.msk.f32.gmra.mxu2 %vm3004_vm8, %v4968_v42 }
 0x2f1   :  { %v3185_v59 = vadd.f32 %v3184_v61, %v9877_v21  ;;  %v3472_v28 = vadd.f32 %v3471_v9, %v8533_v10  ;;  %v3622_v51 = vmul.f32 %v8533_v10, %v8533_v10  ;;  %v8552_v29 = vadd.f32 %v8445_v18, %v3144_v30  ;;  %v8554_v61 = vpop.permute.xlu1 %3998 }
 0x2f2   :  { %v3460_v4 = vrot.slane %v3459_v58, 4  ;;  %v3635_v6 = vadd.f32 %v3634_v2, %v3621_v32  ;;  %v9878_v2 = vld [vmem:[#allocation54_spill] sm:$0xff]  ;;  %v3600_v21 = vmul.f32 %v8549_v24, %v8549_v24 }
 0x2f3   :  { %4820 = vmatmul.msk.f32.gmra.mxu3 %vm3004_vm8, %v4968_v42  ;;  %v3473_v33 = vrot.slane %v3472_v28, 4  ;;  %v3648_v0 = vadd.f32 %v3647_v48, %v3622_v51  ;;  %v8560_v27 = vadd.f32 %v8445_v18, %v3185_v59  ;;  %v9879_v51 = vld [vmem:[#allocation55_spill] sm:$0xff] }
 0x2f4   :  { %v3461_v22 = vadd.f32 %v3460_v4, %v3459_v58  ;;  %v3636_v38 = vrot.slane %v3635_v6, 4  ;;  %v3482_v58 = vadd.f32 %v3481_v1, %v8537_v35  ;;  %v3607_v4 = vmul.f32 %v8552_v29, %v8552_v29 }
 0x2f5   :  { %v3474_v7 = vadd.f32 %v3473_v33, %v3472_v28  ;;  %v3649_v41 = vrot.slane %v3648_v0, 4  ;;  %v3658_v1 = vadd.f32 %v3657_v3, %v3599_v16  ;;  %v3608_v28 = vmul.f32 %v8560_v27, %v8560_v27 }
 0x2f6   :  { %v3146_v32 = vpop.f32.mrf.mxu2  ;;  %v3462_v8 = vrot.slane %v3461_v22, 2  ;;  %v3637_v9 = vadd.f32 %v3636_v38, %v3635_v6  ;;  %v3495_v6 = vadd.f32 %v3494_v53, %v8549_v24  ;;  %v3483_v3 = vadd.f32 %v3482_v58, %v8552_v29 }
 0x2f7   :  { %v3147_v30 = vadd.f32 %v3146_v32, %v9878_v2  ;;  %v3475_v18 = vrot.slane %v3474_v7, 2  ;;  %v3650_v50 = vadd.f32 %v3649_v41, %v3648_v0  ;;  %v8580_v0 = vpop.permute.xlu2 %4098  ;;  %v3659_v16 = vadd.f32 %v3658_v1, %v3607_v4 }
 0x2f8   :  { %v3187_v12 = vpop.f32.mrf.mxu3  ;;  %v3463_v42 = vadd.f32 %v3462_v8, %v3461_v22  ;;  %v3638_v59 = vrot.slane %v3637_v9, 2  ;;  %4813 = vmatmul.msk.f32.gmra.mxu2 %vm3004_vm8, %v8493_v40  ;;  %v3671_v8 = vadd.f32 %v3670_v11, %v3600_v21  ;;  %v9881_v11 = vld [vmem:[#allocation59_spill] sm:$0xff] }
 0x2f9   :  { %v3188_v48 = vadd.f32 %v3187_v12, %v9879_v51  ;;  %v8570_v32 = vadd.f32 %v8459_v56, %v3147_v30  ;;  %v3476_v2 = vadd.f32 %v3475_v18, %v3474_v7  ;;  %v3651_v45 = vrot.slane %v3650_v50, 2  ;;  %v8592_v21 = vpop.permute.xlu1 %3994 }
 0x2fa   :  { %v3464_v38 = vrot.slane %v3463_v42, 1  ;;  %v3639_v33 = vadd.f32 %v3638_v59, %v3637_v9  ;;  %v3496_v7 = vadd.f32 %v3495_v6, %v8560_v27  ;;  %v3672_v51 = vadd.f32 %v3671_v8, %v3608_v28 }
 0x2fb   :  { %v8576_v22 = vadd.f32 %v8459_v56, %v3188_v48  ;;  %v3477_v41 = vrot.slane %v3476_v2, 1  ;;  %v3652_v12 = vadd.f32 %v3651_v45, %v3650_v50  ;;  %v3615_v18 = vmul.f32 %v8570_v32, %v8570_v32  ;;  %4821 = vmatmul.msk.f32.gmra.mxu3 %vm3004_vm8, %v8493_v40  ;;  %v9880_v48 = vld [vmem:[#allocation18_spill] sm:$0xff] }
 0x2fc   :  { %v3465_v53 = vadd.f32 %v3464_v38, %v3463_v42  ;;  %v3640_v30 = vrot.slane %v3639_v33, 1  ;;  %v3484_v6 = vadd.f32 %v3483_v3, %v8570_v32  ;;  %v9882_v38 = vld [vmem:[#allocation60_spill] sm:$0xff] }
 0x2fd   :  { %v3478_v42 = vadd.f32 %v3477_v41, %v3476_v2  ;;  %v3653_v45 = vrot.slane %v3652_v12, 1  ;;  %v3616_v50 = vmul.f32 %v8576_v22, %v8576_v22  ;;  %v3497_v41 = vadd.f32 %v3496_v7, %v8576_v22 }
 0x2fe   :  { %v3149_v9 = vpop.f32.mrf.mxu2  ;;  %v8589_v59 = vmul.f32 %v3465_v53, %v9880_v48  ;;  %v3641_v4 = vadd.f32 %v3640_v30, %v3639_v33  ;;  %v3660_v30 = vadd.f32 %v3659_v16, %v3615_v18 }
 0x2ff   :  { %v3150_v58 = vadd.f32 %v3149_v9, %v9881_v11  ;;  %v8605_v33 = vmul.f32 %v3478_v42, %v9880_v48  ;;  %v3654_v2 = vadd.f32 %v3653_v45, %v3652_v12  ;;  %v3673_v42 = vadd.f32 %v3672_v51, %v3616_v50 }
 0x300   :  { %v3190_v1 = vpop.f32.mrf.mxu3  ;;  %v3741_v40 = vmul.f32 %v8589_v59, %v8589_v59  ;;  %v3733_v53 = vmul.f32 %v3641_v4, %v9880_v48 }
 0x301   :  { %v8600_v28 = vadd.f32 %v8503_v54, %v3150_v58  ;;  %v3191_v8 = vadd.f32 %v3190_v1, %v9882_v38  ;;  %v3734_v1 = vmul.f32 %v3654_v2, %v9880_v48  ;;  %v3742_v4 = vmul.f32 %v8605_v33, %v8605_v33  ;;  %v8629_v56 = vpop.permute.xlu1 %4090 }
 0x302   :  { %v3749_v58 = vsub.f32 %v3733_v53, %v3741_v40 }
 0x303   :  { %v3485_v9 = vadd.f32 %v3484_v6, %v8600_v28  ;;  %v3623_v11 = vmul.f32 %v8600_v28, %v8600_v28  ;;  %v8612_v3 = vadd.f32 %v8503_v54, %v3191_v8  ;;  %v3750_v45 = vsub.f32 %v3734_v1, %v3742_v4  ;;  %v8622_v6 = vpop.permute.xlu2 %4094 }
 0x304   :  { %v8620_v7 = vadd.f32 1e-05, %v3749_v58 }
 0x305   :  { %v3486_v38 = vrot.slane %v3485_v9, 4  ;;  %v3661_v12 = vadd.f32 %v3660_v30, %v3623_v11  ;;  %v3498_v16 = vadd.f32 %v3497_v41, %v8612_v3  ;;  %v3624_v18 = vmul.f32 %v8612_v3, %v8612_v3  ;;  %v8627_v11 = vpop.permute.xlu0 %4086 }
 0x306   :  { %4917 = vrsqrt.f32 %v8620_v7  ;;  %v8625_v54 = vadd.f32 1e-05, %v3750_v45  ;;  %vm3835_vm7 = vweird.f32 %v8620_v7 }
 0x307   :  { %v3487_v8 = vadd.f32 %v3486_v38, %v3485_v9  ;;  %v3662_v40 = vrot.slane %v3661_v12, 4  ;;  %v3499_v53 = vrot.slane %v3498_v16, 4  ;;  %v3674_v2 = vadd.f32 %v3673_v42, %v3624_v18 }
 0x308   :  { %4919 = vrsqrt.f32 %v8625_v54  ;;  %v3813_v42 = vsub.f32 %v8518_v17, %v8589_v59  ;;  %vm3845_vm8 = vweird.f32 %v8625_v54 }
 0x309   :  { %v3488_v51 = vrot.slane %v3487_v8, 2  ;;  %v3663_v50 = vadd.f32 %v3662_v40, %v3661_v12  ;;  %v3500_v30 = vadd.f32 %v3499_v53, %v3498_v16  ;;  %v3675_v41 = vrot.slane %v3674_v2, 4  ;;  %v8667_v23 = vpop.permute.xlu1 %3982 }
 0x30a   :  { %9883 = vst [vmem:[#allocation77_spill] sm:$0xff] %v8667_v23 }
 0x30b   :  { %v3489_v58 = vadd.f32 %v3488_v51, %v3487_v8  ;;  %v3664_v1 = vrot.slane %v3663_v50, 2  ;;  %v3501_v9 = vrot.slane %v3500_v30, 2  ;;  %v3676_v4 = vadd.f32 %v3675_v41, %v3674_v2  ;;  %v8648_v38 = vpop.permute.xlu2 %3986 }
 0x30c   :  { %v4918_v40 = vpop.eup %4917  ;;  %v3797_v2 = vsub.f32 %v8466_v37, %v8589_v59  ;;  %v3789_v41 = vsub.f32 %v8417_v52, %v8589_v59 }
 0x30d   :  { %v3490_v18 = vrot.slane %v3489_v58, 1  ;;  %v3665_v12 = vadd.f32 %v3664_v1, %v3663_v50  ;;  %v3502_v16 = vadd.f32 %v3501_v9, %v3500_v30  ;;  %v3677_v45 = vrot.slane %v3676_v4, 2  ;;  %v8665_v17 = vpop.permute.xlu0 %4002 }
 0x30e   :  { %v3830_v51 = vmul.f32 %v4918_v40, %v8620_v7  ;;  %v4920_v1 = vpop.eup %4919  ;;  %vm3836_vm9 = vweird.f32 %v4918_v40 }
 0x30f   :  { %v3491_v50 = vadd.f32 %v3490_v18, %v3489_v58  ;;  %v3666_v30 = vrot.slane %v3665_v12, 1  ;;  %v3503_v9 = vrot.slane %v3502_v16, 1  ;;  %v3678_v53 = vadd.f32 %v3677_v45, %v3676_v4  ;;  %vm3837_vm11 = vmor %vm3835_vm7, %vm3836_vm9 }
 0x310   :  { %v3831_v8 = vmul.f32 %v4918_v40, %v3830_v51  ;;  %v3840_v62 = vmul.f32 %v4920_v1, %v8625_v54  ;;  %vm3846_vm10 = vweird.f32 %v4920_v1 }
 0x311   :  { %v8657_v58 = vmul.f32 %v3491_v50, %v9880_v48  ;;  %v3667_v4 = vadd.f32 %v3666_v30, %v3665_v12  ;;  %v3504_v18 = vadd.f32 %v3503_v9, %v3502_v16  ;;  %v3679_v45 = vrot.slane %v3678_v53, 1  ;;  %vm3847_vm12 = vmor %vm3845_vm8, %vm3846_vm10 }
 0x312   :  { %v3832_v19 = vmul.f32 0.5, %v3831_v8  ;;  %v3841_v46 = vmul.f32 %v4920_v1, %v3840_v62 }
 0x313   :  { %v3743_v51 = vmul.f32 %v8657_v58, %v8657_v58  ;;  %v3735_v52 = vmul.f32 %v3667_v4, %v9880_v48  ;;  %v8673_v12 = vmul.f32 %v3504_v18, %v9880_v48  ;;  %v3680_v16 = vadd.f32 %v3679_v45, %v3678_v53 }
 0x314   :  { %v3833_v62 = vsub.f32 1.5, %v3832_v19  ;;  %v3842_v30 = vmul.f32 0.5, %v3841_v46  ;;  %v9885_v19 = vsub.f32 %v8533_v10, %v8605_v33 }
 0x315   :  { %v3751_v37 = vsub.f32 %v3735_v52, %v3743_v51  ;;  %v3736_v14 = vmul.f32 %v3680_v16, %v9880_v48  ;;  %v3744_v50 = vmul.f32 %v8673_v12, %v8673_v12 }
 0x316   :  { %v3834_v18 = vmul.f32 %v4918_v40, %v3833_v62  ;;  %v3843_v53 = vsub.f32 1.5, %v3842_v30 }
 0x317   :  { %v8690_v52 = vadd.f32 1e-05, %v3751_v37  ;;  %v3752_v45 = vsub.f32 %v3736_v14, %v3744_v50 }
 0x318   :  { %v8694_v16 = vsel %vm3837_vm11, %v4918_v40, %v3834_v18  ;;  %v3844_v62 = vmul.f32 %v4920_v1, %v3843_v53  ;;  %v8708_v40 = vpop.permute.xlu2 %4082  ;;  %v9884_v18 = vsub.f32 %v8476_v43, %v8589_v59  ;;  %v8728_v43 = vpop.permute.xlu1 %3978 }
 0x319   :  { %v3965_v7 = vmul.f32 %v8694_v16, %v3813_v42  ;;  %4921 = vrsqrt.f32 %v8690_v52  ;;  %v8706_v37 = vadd.f32 1e-05, %v3752_v45  ;;  %v3949_v42 = vmul.f32 %v8694_v16, %v3797_v2  ;;  %9886 = vst [vmem:[#allocation26_spill] sm:$0xff] %v8728_v43 }
 0x31a   :  { %v8710_v50 = vsel %vm3847_vm12, %v4920_v1, %v3844_v62  ;;  %v3957_v53 = vmul.f32 %v8694_v16, %v9884_v18  ;;  %v3941_v54 = vmul.f32 %v8694_v16, %v3789_v41  ;;  %v8726_v62 = vpop.permute.xlu0 %3990  ;;  %v9887_v41 = vsub.f32 %v8500_v60, %v8605_v33 }
 0x31b   :  { %v3966_v14 = vmul.f32 %v8710_v50, %v9885_v19  ;;  %4923 = vrsqrt.f32 %v8706_v37  ;;  %v4061_v45 = vmul.f32 %v8665_v17, %v3965_v7  ;;  %v4045_v19 = vmul.f32 %v8592_v21, %v3949_v42 }
 0x31c   :  { %v4053_v2 = vmul.f32 %v8554_v61, %v3957_v53  ;;  %v3958_v10 = vmul.f32 %v8710_v50, %v9887_v41  ;;  %v9888_v18 = vsub.f32 %v8479_v34, %v8605_v33  ;;  %v4037_v51 = vmul.f32 %v8726_v62, %v3941_v54 }
 0x31d   :  { %v4157_v1 = vadd.f32 %v8580_v0, %v4061_v45  ;;  %v4062_v30 = vmul.f32 %v8665_v17, %v3966_v14  ;;  %v9889_v53 = vsub.f32 %v8428_v20, %v8605_v33  ;;  %v4141_v4 = vadd.f32 %v8629_v56, %v4045_v19 }
 0x31e   :  { %v3950_v7 = vmul.f32 %v8710_v50, %v9888_v18  ;;  %v4149_v41 = vadd.f32 %v8622_v6, %v4053_v2  ;;  %v4054_v42 = vmul.f32 %v8554_v61, %v3958_v10  ;;  %v4133_v14 = vadd.f32 %v8627_v11, %v4037_v51 }
 0x31f   :  { %v3942_v60 = vmul.f32 %v8710_v50, %v9889_v53  ;;  %v4922_v18 = vpop.eup %4921  ;;  %v4221_v46 = vmax.f32 %v4157_v1, 0.0  ;;  %v4158_v45 = vadd.f32 %v8580_v0, %v4062_v30  ;;  %vm3855_vm13 = vweird.f32 %v8690_v52 }
 0x320   :  { %v4046_v34 = vmul.f32 %v8592_v21, %v3950_v7  ;;  %v3850_v20 = vmul.f32 %v4922_v18, %v8690_v52  ;;  %vm3856_vm15 = vweird.f32 %v4922_v18  ;;  %v4150_v2 = vadd.f32 %v8622_v6, %v4054_v42 }
 0x321   :  { %v4038_v54 = vmul.f32 %v8726_v62, %v3942_v60  ;;  %v4924_v10 = vpop.eup %4923  ;;  %4247 = vmatpush.msra.mxu0 %v4221_v46  ;;  %v4222_v19 = vmax.f32 %v4158_v45, 0.0  ;;  %v4213_v53 = vmax.f32 %v4149_v41, 0.0  ;;  %v4205_v7 = vmax.f32 %v4141_v4, 0.0  ;;  %v8759_v60 = vpop.permute.xlu2 %4078  ;;  %vm3857_vm1 = vmor %vm3855_vm13, %vm3856_vm15 }
 0x322   :  { %v4142_v1 = vadd.f32 %v8629_v56, %v4046_v34  ;;  %v3851_v9 = vmul.f32 %v4922_v18, %v3850_v20  ;;  %v3860_v30 = vmul.f32 %v4924_v10, %v8706_v37  ;;  %vm3866_vm0 = vweird.f32 %v4924_v10  ;;  %9890 = vst [vmem:[#allocation20_spill] sm:$0xff] %v8759_v60 }
 0x323   :  { %v4197_v51 = vmax.f32 %v4133_v14, 0.0  ;;  %4267 = vmatpush.msra.mxu1 %v4222_v19  ;;  %4248 = vmatpush.msra.mxu0 %v4213_v53  ;;  %v4214_v8 = vmax.f32 %v4150_v2, 0.0  ;;  %v4134_v48 = vadd.f32 %v8627_v11, %v4038_v54  ;;  %v9891_v46 = vsub.f32 %v8377_v26, %v8589_v59 }
 0x324   :  { %v9892_v4 = vsub.f32 %v8407_v55, %v8605_v33  ;;  %v3852_v34 = vmul.f32 0.5, %v3851_v9  ;;  %v3861_v45 = vmul.f32 %v4924_v10, %v3860_v30  ;;  %v9893_v14 = vsub.f32 %v8349_v15, %v8589_v59 }
 0x325   :  { %v3933_v41 = vmul.f32 %v8694_v16, %v9891_v46  ;;  %v9894_v54 = vsub.f32 %v8357_v13, %v8605_v33  ;;  %4268 = vmatpush.msra.mxu1 %v4214_v8  ;;  %4249 = vmatpush.msra.mxu0 %v4205_v7  ;;  %v4206_v26 = vmax.f32 %v4142_v1, 0.0  ;;  %v9895_v9 = vsub.f32 %v8327_v36, %v8589_v59  ;;  %v8784_v46 = vpop.permute.xlu1 %4074 }
 0x326   :  { %v3934_v42 = vmul.f32 %v8710_v50, %v9892_v4  ;;  %v3925_v20 = vmul.f32 %v8694_v16, %v9893_v14  ;;  %v3853_v15 = vsub.f32 1.5, %v3852_v34  ;;  %v3862_v30 = vmul.f32 0.5, %v3861_v45  ;;  %9896 = vst [vmem:[#allocation21_spill] sm:$0xff] %v8784_v46 }
 0x327   :  { %v3926_v2 = vmul.f32 %v8710_v50, %v9894_v54  ;;  %v4029_v19 = vmul.f32 %v8648_v38, %v3933_v41  ;;  %v3917_v53 = vmul.f32 %v8694_v16, %v9895_v9  ;;  %4269 = vmatpush.msra.mxu1 %v4206_v26  ;;  %4250 = vmatpush.msra.mxu0 %v4197_v51  ;;  %v4198_v8 = vmax.f32 %v4134_v48, 0.0  ;;  %v8809_v9 = vpop.permute.xlu0 %3974 }
 0x328   :  { %v4030_v55 = vmul.f32 %v8648_v38, %v3934_v42  ;;  %v4021_v13 = vmul.f32 %v8667_v23, %v3925_v20  ;;  %v3854_v36 = vmul.f32 %v4922_v18, %v3853_v15  ;;  %v3863_v42 = vsub.f32 1.5, %v3862_v30  ;;  %9899 = vst [vmem:[#allocation27_spill] sm:$0xff] %v8809_v9 }
 0x329   :  { %v4022_v4 = vmul.f32 %v8667_v23, %v3926_v2  ;;  %v4125_v7 = vadd.f32 %v8708_v40, %v4029_v19  ;;  %v4013_v41 = vmul.f32 %v8728_v43, %v3917_v53  ;;  %4270 = vmatpush.msra.mxu1 %v4198_v8  ;;  %v9897_v20 = vsub.f32 %v8344_v57, %v8605_v33 }
 0x32a   :  { %v4126_v1 = vadd.f32 %v8708_v40, %v4030_v55  ;;  %v4117_v34 = vadd.f32 %v8759_v60, %v4021_v13  ;;  %v8801_v2 = vsel %vm3857_vm1, %v4922_v18, %v3854_v36  ;;  %v3864_v26 = vmul.f32 %v4924_v10, %v3863_v42 }
 0x32b   :  { %v4118_v45 = vadd.f32 %v8759_v60, %v4022_v4  ;;  %v4189_v14 = vmax.f32 %v4125_v7, 0.0  ;;  %v4109_v48 = vadd.f32 %v8784_v46, %v4013_v41  ;;  %v3918_v54 = vmul.f32 %v8710_v50, %v9897_v20 }
 0x32c   :  { %v4190_v51 = vmax.f32 %v4126_v1, 0.0  ;;  %vm3865_vm2 = vweird.f32 %v8706_v37  ;;  %v4181_v19 = vmax.f32 %v4117_v34, 0.0  ;;  %v9898_v52 = vsub.f32 %v8600_v28, %v8657_v58 }
 0x32d   :  { %vm3867_vm3 = vmor %vm3865_vm2, %vm3866_vm0  ;;  %4251 = vmatpush.msra.mxu0 %v4189_v14  ;;  %v4182_v57 = vmax.f32 %v4118_v45, 0.0  ;;  %v4014_v53 = vmul.f32 %v8728_v43, %v3918_v54  ;;  %v9900_v18 = vsub.f32 %v8333_v25, %v8589_v59  ;;  %v9901_v28 = vsub.f32 %v8341_v44, %v8605_v33 }
 0x32e   :  { %v3967_v55 = vmul.f32 %v8801_v2, %v9898_v52  ;;  %4271 = vmatpush.msra.mxu1 %v4190_v51  ;;  %v8816_v15 = vsel %vm3867_vm3, %v4924_v10, %v3864_v26  ;;  %v9902_v13 = vsub.f32 %v8570_v32, %v8657_v58  ;;  %v9903_v8 = vsub.f32 %v8552_v29, %v8657_v58  ;;  %v8848_v45 = vpop.f32.mrf.mxu0 }
 0x32f   :  { %v3909_v37 = vmul.f32 %v8694_v16, %v9900_v18  ;;  %v3910_v30 = vmul.f32 %v8710_v50, %v9901_v28  ;;  %v9904_v25 = vsub.f32 %v8612_v3, %v8673_v12  ;;  %v8834_v16 = vpop.permute.xlu2 %4070  ;;  %4252 = vmatpush.msra.mxu0 %v4181_v19  ;;  %v4173_v44 = vmax.f32 %v4109_v48, 0.0 }
 0x330   :  { %v3959_v4 = vmul.f32 %v8801_v2, %v9902_v13  ;;  %v3951_v7 = vmul.f32 %v8801_v2, %v9903_v8  ;;  %9905 = vst [vmem:[#allocation78_spill] sm:$0xff] %v8834_v16  ;;  %4272 = vmatpush.msra.mxu1 %v4182_v57  ;;  %v4110_v33 = vadd.f32 %v8784_v46, %v4014_v53  ;;  %vm4422_vm1 = vcmask 1040384  }
 0x331   :  { %v3968_v59 = vmul.f32 %v8816_v15, %v9904_v25  ;;  %v4063_v32 = vmul.f32 %v8665_v17, %v3967_v55  ;;  %v4005_v50 = vmul.f32 %v8809_v9, %v3909_v37  ;;  %v4006_v29 = vmul.f32 %v8809_v9, %v3910_v30  ;;  %4253 = vmatpush.msra.mxu0 %v4173_v44  ;;  %v8858_v52 = vpop.f32.mrf.mxu1 }
 0x332   :  { %v4055_v10 = vmul.f32 %v8554_v61, %v3959_v4  ;;  %v9906_v3 = vsub.f32 %v8576_v22, %v8673_v12  ;;  %v4174_v41 = vmax.f32 %v4110_v33, 0.0  ;;  %v4047_v34 = vmul.f32 %v8592_v21, %v3951_v7 }
 0x333   :  { %v4159_v36 = vadd.f32 %v8580_v0, %v4063_v32  ;;  %v4064_v42 = vmul.f32 %v8665_v17, %v3968_v59  ;;  %v4101_v14 = vadd.f32 %v8834_v16, %v4005_v50  ;;  %v4102_v51 = vadd.f32 %v8834_v16, %v4006_v29 }
 0x334   :  { %v3960_v1 = vmul.f32 %v8816_v15, %v9906_v3  ;;  %v4151_v48 = vadd.f32 %v8622_v6, %v4055_v10  ;;  %4273 = vmatpush.msra.mxu1 %v4174_v41  ;;  %v4143_v26 = vadd.f32 %v8629_v56, %v4047_v34  ;;  %v3800_v19 = vsub.f32 %v8560_v27, %v8673_v12 }
 0x335   :  { %v4223_v20 = vmax.f32 %v4159_v36, 0.0  ;;  %v4160_v54 = vadd.f32 %v8580_v0, %v4064_v42  ;;  %v4165_v55 = vmax.f32 %v4101_v14, 0.0  ;;  %v4166_v57 = vmax.f32 %v4102_v51, 0.0 }
 0x336   :  { %v4056_v22 = vmul.f32 %v8554_v61, %v3960_v1  ;;  %v3792_v18 = vsub.f32 %v8549_v24, %v8673_v12  ;;  %v4215_v28 = vmax.f32 %v4151_v48, 0.0  ;;  %v3783_v30 = vsub.f32 %v8471_v49, %v8657_v58  ;;  %v3213_v10 = vpop.f32.mrf.mxu0 }
 0x337   :  { %4287 = vmatpush.msra.mxu2 %v4223_v20  ;;  %v4224_v37 = vmax.f32 %v4160_v54, 0.0  ;;  %v3784_v13 = vsub.f32 %v8484_v5, %v8673_v12  ;;  %4254 = vmatpush.msra.mxu0 %v4165_v55  ;;  %v3952_v27 = vmul.f32 %v8816_v15, %v3800_v19  ;;  %v9907_v4 = vsub.f32 %v8537_v35, %v8657_v58 }
 0x338   :  { %v4152_v53 = vadd.f32 %v8622_v6, %v4056_v22  ;;  %4274 = vmatpush.msra.mxu1 %v4166_v57  ;;  %v3944_v24 = vmul.f32 %v8816_v15, %v3792_v18  ;;  %v4207_v25 = vmax.f32 %v4143_v26, 0.0  ;;  %v3935_v49 = vmul.f32 %v8801_v2, %v3783_v30 }
 0x339   :  { %v3943_v8 = vmul.f32 %v8801_v2, %v9907_v4  ;;  %4307 = vmatpush.msra.mxu3 %v4224_v37  ;;  %4288 = vmatpush.msra.mxu2 %v4215_v28  ;;  %v3775_v5 = vsub.f32 %v8425_v47, %v8657_v58  ;;  %v4048_v59 = vmul.f32 %v8592_v21, %v3952_v27  ;;  %v8888_v34 = vpop.f32.mrf.mxu1  ;;  %v9908_v28 = vld [vmem:[#allocation12_spill] sm:$0xff]  ;;  %vm4424_vm2 = vcmask 1042434  }
 0x33a   :  { %v4216_v7 = vmax.f32 %v4152_v53, 0.0  ;;  %v4040_v33 = vmul.f32 %v8726_v62, %v3944_v24  ;;  %v3936_v35 = vmul.f32 %v8816_v15, %v3784_v13  ;;  %v4031_v32 = vmul.f32 %v8648_v38, %v3935_v49 }
 0x33b   :  { %v4039_v44 = vmul.f32 %v8726_v62, %v3943_v8  ;;  %4289 = vmatpush.msra.mxu2 %v4207_v25  ;;  %v3927_v50 = vmul.f32 %v8801_v2, %v3775_v5  ;;  %v4144_v29 = vadd.f32 %v8629_v56, %v4048_v59  ;;  %v3776_v48 = vsub.f32 %v8442_v31, %v8673_v12  ;;  %v9909_v8 = vld [vmem:[#allocation83_spill] sm:$0xff] }
 0x33c   :  { %4308 = vmatpush.msra.mxu3 %v4216_v7  ;;  %v4136_v47 = vadd.f32 %v8627_v11, %v4040_v33  ;;  %v4032_v1 = vmul.f32 %v8648_v38, %v3936_v35  ;;  %v4127_v41 = vadd.f32 %v8708_v40, %v4031_v32  ;;  %v3767_v19 = vsub.f32 %v8395_v39, %v8657_v58 }
 0x33d   :  { %v4135_v3 = vadd.f32 %v8627_v11, %v4039_v44  ;;  %v4023_v36 = vmul.f32 %v8667_v23, %v3927_v50  ;;  %v4208_v42 = vmax.f32 %v4144_v29, 0.0  ;;  %v3928_v26 = vmul.f32 %v8816_v15, %v3776_v48 }
 0x33e   :  { %v4128_v51 = vadd.f32 %v8708_v40, %v4032_v1  ;;  %v4200_v22 = vmax.f32 %v4136_v47, 0.0  ;;  %v4191_v54 = vmax.f32 %v4127_v41, 0.0  ;;  %v3768_v55 = vsub.f32 %v8410_v63, %v8673_v12  ;;  %v3216_v27 = vpop.f32.mrf.mxu0 }
 0x33f   :  { %v4199_v14 = vmax.f32 %v4135_v3, 0.0  ;;  %v4119_v20 = vadd.f32 %v8759_v60, %v4023_v36  ;;  %4309 = vmatpush.msra.mxu3 %v4208_v42  ;;  %v4024_v31 = vmul.f32 %v8667_v23, %v3928_v26  ;;  %v3919_v18 = vmul.f32 %v8801_v2, %v3767_v19  ;;  %v9910_v42 = vld [vmem:[#allocation16_spill] sm:$0xff] }
 0x340   :  { %v4192_v57 = vmax.f32 %v4128_v51, 0.0  ;;  %v3920_v37 = vmul.f32 %v8816_v15, %v3768_v55  ;;  %v3759_v30 = vsub.f32 %v9908_v28, %v8657_v58  ;;  %v3760_v24 = vsub.f32 %v9909_v8, %v8673_v12 }
 0x341   :  { %4290 = vmatpush.msra.mxu2 %v4199_v14  ;;  %4310 = vmatpush.msra.mxu3 %v4200_v22  ;;  %v4183_v53 = vmax.f32 %v4119_v20, 0.0  ;;  %v4120_v39 = vadd.f32 %v8759_v60, %v4024_v31  ;;  %v4015_v13 = vmul.f32 %v8728_v43, %v3919_v18  ;;  %v3257_v33 = vpop.f32.mrf.mxu1  ;;  %v3214_v14 = vadd.f32 %v3213_v10, %v9910_v42  ;;  %v9911_v22 = vld [vmem:[#allocation8_spill] sm:$0xff]  ;;  %v9917_v10 = vld [vmem:[#allocation74_spill] sm:$0xff]  ;;  %v9926_v42 = vld [vmem:[#allocation65_spill] sm:$0xff] }
 0x342   :  { %v4016_v63 = vmul.f32 %v8728_v43, %v3920_v37  ;;  %v3911_v4 = vmul.f32 %v8801_v2, %v3759_v30  ;;  %v3912_v5 = vmul.f32 %v8816_v15, %v3760_v24  ;;  %v3211_v20 = vadd.f32 %v8848_v45, %v9911_v22  ;;  %v9914_v31 = vld [vmem:[#allocation68_spill] sm:$0xff]  ;;  %v9915_v37 = vld [vmem:[#allocation58_spill] sm:$0xff]  ;;  %v9919_v45 = vld [vmem:[#allocation9_spill] sm:$0xff] }
 0x343   :  { %4291 = vmatpush.msra.mxu2 %v4191_v54  ;;  %4311 = vmatpush.msra.mxu3 %v4192_v57  ;;  %v4184_v7 = vmax.f32 %v4120_v39, 0.0  ;;  %v4111_v25 = vadd.f32 %v8784_v46, %v4015_v13  ;;  %v3292_v32 = vpop.f32.mrf.mxu2  ;;  %v9912_v54 = vld [vmem:[#allocation64_spill] sm:$0xff]  ;;  %v9913_v57 = vld [vmem:[#allocation53_spill] sm:$0xff]  ;;  %vm4430_vm3 = vcmask 1046534  }
 0x344   :  { %v4112_v49 = vadd.f32 %v8784_v46, %v4016_v63  ;;  %v4007_v58 = vmul.f32 %v8809_v9, %v3911_v4  ;;  %v4008_v2 = vmul.f32 %v8809_v9, %v3912_v5  ;;  %v3217_v26 = vadd.f32 %v3216_v27, %v9912_v54  ;;  %v9918_v39 = vld [vmem:[#allocation72_spill] sm:$0xff]  ;;  %v9920_v4 = vld [vmem:[#allocation7_spill] sm:$0xff]  ;;  %v9922_v5 = vld [vmem:[#allocation17_spill] sm:$0xff] }
 0x345   :  { %4292 = vmatpush.msra.mxu2 %v4183_v53  ;;  %4312 = vmatpush.msra.mxu3 %v4184_v7  ;;  %v4175_v59 = vmax.f32 %v4111_v25, 0.0  ;;  %v8926_v53 = vadd.f32 %v9913_v57, %v3214_v14  ;;  %v8930_v28 = vadd.f32 %v9915_v37, %v3211_v20  ;;  %v3252_v63 = vadd.f32 %v8858_v52, %v9919_v45  ;;  %v9921_v24 = vld [vmem:[#allocation40_spill] sm:$0xff] }
 0x346   :  { %v4176_v44 = vmax.f32 %v4112_v49, 0.0  ;;  %v4103_v35 = vadd.f32 %v8834_v16, %v4007_v58  ;;  %v4104_v50 = vadd.f32 %v8834_v16, %v4008_v2  ;;  %v3333_v29 = vpop.f32.mrf.mxu3  ;;  %v3219_v3 = vpop.f32.mrf.mxu0  ;;  %v8933_v30 = vadd.f32 %v9917_v10, %v3217_v26 }
 0x347   :  { %4293 = vmatpush.msra.mxu2 %v4175_v59  ;;  %v3220_v18 = vadd.f32 %v3219_v3, %v9914_v31  ;;  %9916 = vst [vmem:[#allocation31_spill] sm:$0xff] %v8930_v28  ;;  %v3577_v27 = vmul.f32 %v8926_v53, %v8926_v53  ;;  %v3569_v49 = vmul.f32 %v8930_v28, %v8930_v28 }
 0x348   :  { %4313 = vmatpush.msra.mxu3 %v4176_v44  ;;  %v4167_v12 = vmax.f32 %v4103_v35, 0.0  ;;  %v4168_v47 = vmax.f32 %v4104_v50, 0.0  ;;  %v3505_v58 = vadd.f32 %v8926_v53, %v8930_v28  ;;  %v3255_v59 = vadd.f32 %v8888_v34, %v9922_v5  ;;  %v9923_v44 = vld [vmem:[#allocation81_spill] sm:$0xff] }
 0x349   :  { %v3260_v15 = vpop.f32.mrf.mxu1  ;;  %v8941_v8 = vadd.f32 %v9920_v4, %v3220_v18  ;;  %v3585_v52 = vmul.f32 %v8933_v30, %v8933_v30  ;;  %v8957_v3 = vadd.f32 %v9915_v37, %v3252_v63  ;;  %v3258_v14 = vadd.f32 %v3257_v33, %v9926_v42  ;;  %v9928_v33 = vld [vmem:[#allocation75_spill] sm:$0xff]  ;;  %v9929_v63 = vld [vmem:[#allocation69_spill] sm:$0xff]  ;;  %v9933_v42 = vld [vmem:[#allocation34_spill] sm:$0xff] }
 0x34a   :  { %4294 = vmatpush.msra.mxu2 %v4167_v12  ;;  %4314 = vmatpush.msra.mxu3 %v4168_v47  ;;  %v9924_v12 = vld [vmem:[#allocation46_spill] sm:$0xff]  ;;  %v3506_v47 = vadd.f32 %v3505_v58, %v8933_v30  ;;  %v8972_v31 = vadd.f32 %v9913_v57, %v3255_v59 }
 0x34b   :  { %v3295_v41 = vpop.f32.mrf.mxu2  ;;  %9925 = vst [vmem:[#allocation32_spill] sm:$0xff] %v8957_v3  ;;  %v3593_v34 = vmul.f32 %v8941_v8, %v8941_v8  ;;  %v3570_v45 = vmul.f32 %v8957_v3, %v8957_v3 }
 0x34c   :  { %v3507_v20 = vadd.f32 %v3506_v47, %v8941_v8 }
 0x34e   :  { %v3222_v1 = vpop.f32.mrf.mxu0  ;;  %v3336_v36 = vpop.f32.mrf.mxu3 }
 0x34f   :  { %v3223_v13 = vadd.f32 %v3222_v1, %v9918_v39  ;;  %v3681_v1 = vadd.f32 %v3577_v27, %v3569_v49  ;;  %v3261_v27 = vadd.f32 %v3260_v15, %v9929_v63  ;;  %v9930_v49 = vld [vmem:[#allocation62_spill] sm:$0xff]  ;;  %v9934_v63 = vld [vmem:[#allocation73_spill] sm:$0xff] }
 0x350   :  { %v3296_v58 = vadd.f32 %v3295_v41, %v9930_v49 }
 0x351   :  { %v3263_v51 = vpop.f32.mrf.mxu1  ;;  %v8953_v35 = vadd.f32 %v9923_v44, %v3223_v13  ;;  %v3682_v18 = vadd.f32 %v3681_v1, %v3585_v52  ;;  %v9931_v52 = vld [vmem:[#allocation15_spill] sm:$0xff] }
 0x353   :  { %v8921_v19 = vpop.f32.mrf.mxu2  ;;  %v3601_v39 = vmul.f32 %v8953_v35, %v8953_v35 }
 0x356   :  { %v3225_v48 = vpop.f32.mrf.mxu0  ;;  %v8923_v55 = vpop.f32.mrf.mxu3 }
 0x357   :  { %v3226_v7 = vadd.f32 %v3225_v48, %v9921_v24  ;;  %v9927_v48 = vld [vmem:[#allocation82_spill] sm:$0xff]  ;;  %v3508_v24 = vadd.f32 %v3507_v20, %v8953_v35  ;;  %v3578_v20 = vmul.f32 %v8972_v31, %v8972_v31 }
 0x359   :  { %v3266_v2 = vpop.f32.mrf.mxu1  ;;  %v8964_v22 = vadd.f32 %v9927_v48, %v3226_v7  ;;  %v8984_v7 = vadd.f32 %v9917_v10, %v3258_v14  ;;  %v3694_v16 = vadd.f32 %v3578_v20, %v3570_v45 }
 0x35b   :  { %v8967_v54 = vpop.f32.mrf.mxu2  ;;  %v3609_v5 = vmul.f32 %v8964_v22, %v8964_v22  ;;  %v3509_v1 = vadd.f32 %v3508_v24, %v8964_v22  ;;  %v9935_v24 = vld [vmem:[#allocation76_spill] sm:$0xff] }
 0x35e   :  { %v3228_v25 = vpop.f32.mrf.mxu0  ;;  %v8969_v26 = vpop.f32.mrf.mxu3 }
 0x35f   :  { %v3229_v50 = vadd.f32 %v3228_v25, %v9924_v12  ;;  %v3683_v25 = vadd.f32 %v3682_v18, %v3593_v34  ;;  %v3293_v12 = vadd.f32 %v3292_v32, %v9931_v52  ;;  %v3264_v34 = vadd.f32 %v3263_v51, %v9934_v63  ;;  %v9937_v51 = vld [vmem:[#allocation63_spill] sm:$0xff] }
 0x360   :  { %v3518_v18 = vadd.f32 %v8972_v31, %v8957_v3  ;;  %v9001_v32 = vadd.f32 %v9920_v4, %v3261_v27 }
 0x361   :  { %v8977_v13 = vadd.f32 %v9928_v33, %v3229_v50  ;;  %v9932_v50 = vld [vmem:[#allocation13_spill] sm:$0xff]  ;;  %v3684_v14 = vadd.f32 %v3683_v25, %v3601_v39  ;;  %v9010_v39 = vadd.f32 %v9913_v57, %v3296_v58  ;;  %v3337_v25 = vadd.f32 %v3336_v36, %v9937_v51 }
 0x362   :  { %v3334_v47 = vadd.f32 %v3333_v29, %v9932_v50  ;;  %v3269_v50 = vpop.f32.mrf.mxu1  ;;  %v9022_v9 = vadd.f32 %v9923_v44, %v3264_v34 }
 0x363   :  { %v3617_v41 = vmul.f32 %v8977_v13, %v8977_v13  ;;  %v3510_v29 = vadd.f32 %v3509_v1, %v8977_v13  ;;  %9936 = vst [vmem:[#allocation24_spill] sm:$0xff] %v9010_v39  ;;  %v3685_v52 = vadd.f32 %v3684_v14, %v3609_v5  ;;  %v9940_v1 = vld [vmem:[#allocation23_spill] sm:$0xff]  ;;  %v3519_v5 = vadd.f32 %v3518_v18, %v8984_v7  ;;  %v9941_v14 = vld [vmem:[#allocation61_spill] sm:$0xff] }
 0x364   :  { %v9017_v27 = vadd.f32 %v9915_v37, %v3334_v47  ;;  %v3267_v63 = vadd.f32 %v3266_v2, %v9940_v1  ;;  %v3304_v47 = vpop.f32.mrf.mxu2  ;;  %v3579_v45 = vmul.f32 %v9010_v39, %v9010_v39  ;;  %v9033_v20 = vadd.f32 %v9913_v57, %v3337_v25 }
 0x365   :  { %v3686_v58 = vadd.f32 %v3685_v52, %v3617_v41 }
 0x366   :  { %v3231_v59 = vpop.f32.mrf.mxu0  ;;  %9939 = vst [vmem:[#allocation25_spill] sm:$0xff] %v9017_v27  ;;  %v3345_v51 = vpop.f32.mrf.mxu3  ;;  %v3572_v18 = vmul.f32 %v9017_v27, %v9017_v27 }
 0x367   :  { %v3232_v15 = vadd.f32 %v3231_v59, %v9933_v42  ;;  %v3586_v59 = vmul.f32 %v8984_v7, %v8984_v7  ;;  %v9014_v42 = vadd.f32 %v9915_v37, %v3293_v12  ;;  %v3594_v12 = vmul.f32 %v9001_v32, %v9001_v32  ;;  %9942 = vst [vmem:[#allocation29_spill] sm:$0xff] %v9033_v20 }
 0x368   :  { %v3270_v37 = vadd.f32 %v3269_v50, %v9941_v14  ;;  %v9944_v14 = vld [vmem:[#allocation67_spill] sm:$0xff] }
 0x369   :  { %v9005_v49 = vadd.f32 %v9935_v24, %v3232_v15  ;;  %9938 = vst [vmem:[#allocation37_spill] sm:$0xff] %v9014_v42  ;;  %v3695_v1 = vadd.f32 %v3694_v16, %v3586_v59  ;;  %v3571_v41 = vmul.f32 %v9014_v42, %v9014_v42  ;;  %v3602_v16 = vmul.f32 %v9022_v9, %v9022_v9  ;;  %v9943_v59 = vld [vmem:[#allocation66_spill] sm:$0xff] }
 0x36a   :  { %v3299_v50 = vadd.f32 %v8921_v19, %v9943_v59  ;;  %v3340_v57 = vadd.f32 %v8923_v55, %v9944_v14  ;;  %v9050_v3 = vadd.f32 %v9928_v33, %v3270_v37  ;;  %v3544_v19 = vadd.f32 %v9033_v20, %v9017_v27 }
 0x36b   :  { %v3511_v15 = vadd.f32 %v3510_v29, %v9005_v49  ;;  %v3625_v36 = vmul.f32 %v9005_v49, %v9005_v49  ;;  %v9040_v29 = vadd.f32 %v9927_v48, %v3267_v63  ;;  %v3531_v63 = vadd.f32 %v9010_v39, %v9014_v42 }
 0x36c   :  { %v9065_v59 = vadd.f32 %v9917_v10, %v3340_v57  ;;  %v3618_v14 = vmul.f32 %v9050_v3, %v9050_v3  ;;  %v3307_v39 = vpop.f32.mrf.mxu2 }
 0x36d   :  { %v3512_v2 = vrot.slane %v3511_v15, 4  ;;  %v3687_v34 = vadd.f32 %v3686_v58, %v3625_v36  ;;  %v3520_v58 = vadd.f32 %v3519_v5, %v9001_v32  ;;  %v3696_v36 = vadd.f32 %v3695_v1, %v3594_v12 }
 0x36e   :  { %v3610_v5 = vmul.f32 %v9040_v29, %v9040_v29  ;;  %v9062_v1 = vadd.f32 %v9917_v10, %v3299_v50  ;;  %v3348_v28 = vpop.f32.mrf.mxu3 }
 0x36f   :  { %v3513_v52 = vadd.f32 %v3512_v2, %v3511_v15  ;;  %v3688_v25 = vrot.slane %v3687_v34, 4  ;;  %v3707_v15 = vadd.f32 %v3579_v45, %v3571_v41  ;;  %v3580_v2 = vmul.f32 %v9033_v20, %v9033_v20  ;;  %v3272_v41 = vpop.f32.mrf.mxu1  ;;  %v9946_v20 = vld [vmem:[#allocation70_spill] sm:$0xff] }
 0x370   :  { %v3521_v55 = vadd.f32 %v3520_v58, %v9022_v9  ;;  %v3697_v37 = vadd.f32 %v3696_v36, %v3602_v16  ;;  %v9945_v58 = vld [vmem:[#allocation45_spill] sm:$0xff] }
 0x371   :  { %v3514_v46 = vrot.slane %v3513_v52, 2  ;;  %v3689_v43 = vadd.f32 %v3688_v25, %v3687_v34  ;;  %v3273_v27 = vadd.f32 %v3272_v41, %v9945_v58  ;;  %v3720_v42 = vadd.f32 %v3580_v2, %v3572_v18 }
 0x372   :  { %v3522_v34 = vadd.f32 %v3521_v55, %v9040_v29  ;;  %v3698_v10 = vadd.f32 %v3697_v37, %v3610_v5  ;;  %v3587_v41 = vmul.f32 %v9062_v1, %v9062_v1  ;;  %v3588_v18 = vmul.f32 %v9065_v59, %v9065_v59 }
 0x373   :  { %v3515_v12 = vadd.f32 %v3514_v46, %v3513_v52  ;;  %v3690_v45 = vrot.slane %v3689_v43, 2  ;;  %v3302_v46 = vadd.f32 %v8967_v54, %v9946_v20  ;;  %v9947_v52 = vld [vmem:[#allocation71_spill] sm:$0xff]  ;;  %v9077_v55 = vadd.f32 %v9935_v24, %v3273_v27  ;;  %v9948_v54 = vld [vmem:[#allocation10_spill] sm:$0xff] }
 0x374   :  { %v3343_v16 = vadd.f32 %v8969_v26, %v9947_v52  ;;  %v3523_v57 = vadd.f32 %v3522_v34, %v9050_v3  ;;  %v3305_v20 = vadd.f32 %v3304_v47, %v9948_v54  ;;  %v3699_v26 = vadd.f32 %v3698_v10, %v3618_v14  ;;  %v9950_v34 = vld [vmem:[#allocation19_spill] sm:$0xff]  ;;  %v9951_v10 = vld [vmem:[#allocation22_spill] sm:$0xff] }
 0x375   :  { %v3516_v25 = vrot.slane %v3515_v12, 1  ;;  %v3691_v50 = vadd.f32 %v3690_v45, %v3689_v43  ;;  %v9949_v43 = vld [vmem:[#allocation18_spill] sm:$0xff]  ;;  %v3626_v27 = vmul.f32 %v9077_v55, %v9077_v55  ;;  %v9091_v37 = vadd.f32 %v9920_v4, %v3302_v46  ;;  %v9952_v46 = vld [vmem:[#allocation28_spill] sm:$0xff] }
 0x376   :  { %v9094_v45 = vadd.f32 %v9920_v4, %v3343_v16  ;;  %v3708_v54 = vadd.f32 %v3707_v15, %v3587_v41  ;;  %v3349_v23 = vadd.f32 %v3348_v28, %v9952_v46  ;;  %v3545_v4 = vadd.f32 %v3544_v19, %v9065_v59 }
 0x377   :  { %v3517_v36 = vadd.f32 %v3516_v25, %v3515_v12  ;;  %v3692_v2 = vrot.slane %v3691_v50, 1  ;;  %v3524_v12 = vadd.f32 %v3523_v57, %v9077_v55  ;;  %v3346_v25 = vadd.f32 %v3345_v51, %v9950_v34 }
 0x378   :  { %v3700_v52 = vadd.f32 %v3699_v26, %v3626_v27  ;;  %v3532_v57 = vadd.f32 %v3531_v63, %v9062_v1  ;;  %v9105_v16 = vadd.f32 %v9923_v44, %v3305_v20  ;;  %v3595_v26 = vmul.f32 %v9091_v37, %v9091_v37  ;;  %v3310_v20 = vpop.f32.mrf.mxu2  ;;  %v3351_v27 = vpop.f32.mrf.mxu3 }
 0x379   :  { %v9085_v5 = vmul.f32 %v3517_v36, %v9949_v43  ;;  %v3693_v58 = vadd.f32 %v3692_v2, %v3691_v50  ;;  %v3525_v14 = vrot.slane %v3524_v12, 4  ;;  %v3308_v36 = vadd.f32 %v3307_v39, %v9951_v10 }
 0x37a   :  { %v3701_v50 = vrot.slane %v3700_v52, 4  ;;  %v3721_v2 = vadd.f32 %v3720_v42, %v3588_v18  ;;  %v9110_v39 = vadd.f32 %v9923_v44, %v3346_v25  ;;  %v3596_v15 = vmul.f32 %v9094_v45, %v9094_v45  ;;  %v9953_v18 = vld [vmem:[#allocation33_spill] sm:$0xff]  ;;  %v9954_v44 = vld [vmem:[#allocation39_spill] sm:$0xff] }
 0x37b   :  { %v3745_v47 = vmul.f32 %v9085_v5, %v9085_v5  ;;  %v3737_v60 = vmul.f32 %v3693_v58, %v9949_v43  ;;  %v3526_v51 = vadd.f32 %v3525_v14, %v3524_v12  ;;  %v9115_v19 = vadd.f32 %v9927_v48, %v3308_v36 }
 0x37c   :  { %v3702_v28 = vadd.f32 %v3701_v50, %v3700_v52  ;;  %v9120_v42 = vadd.f32 %v9927_v48, %v3349_v23  ;;  %v3311_v34 = vadd.f32 %v3310_v20, %v9953_v18  ;;  %v3352_v25 = vadd.f32 %v3351_v27, %v9954_v44 }
 0x37d   :  { %v3753_v63 = vsub.f32 %v3737_v60, %v3745_v47  ;;  %v3527_v41 = vrot.slane %v3526_v51, 2  ;;  %v3533_v60 = vadd.f32 %v3532_v57, %v9091_v37  ;;  %v3603_v58 = vmul.f32 %v9105_v16, %v9105_v16 }
 0x37e   :  { %v3703_v14 = vrot.slane %v3702_v28, 2  ;;  %v3709_v52 = vadd.f32 %v3708_v54, %v3595_v26  ;;  %v3604_v10 = vmul.f32 %v9110_v39, %v9110_v39  ;;  %v9131_v23 = vadd.f32 %v9928_v33, %v3311_v34 }
 0x37f   :  { %v9117_v12 = vadd.f32 1e-05, %v3753_v63  ;;  %v3528_v47 = vadd.f32 %v3527_v41, %v3526_v51  ;;  %v3546_v48 = vadd.f32 %v3545_v4, %v9094_v45  ;;  %v9135_v57 = vadd.f32 %v9928_v33, %v3352_v25 }
 0x380   :  { %v3704_v46 = vadd.f32 %v3703_v14, %v3702_v28  ;;  %v3722_v50 = vadd.f32 %v3721_v2, %v3596_v15  ;;  %v3534_v51 = vadd.f32 %v3533_v60, %v9105_v16  ;;  %v3611_v54 = vmul.f32 %v9115_v19, %v9115_v19  ;;  %v3313_v25 = vpop.f32.mrf.mxu2  ;;  %v3354_v60 = vpop.f32.mrf.mxu3 }
 0x381   :  { %4925 = vrsqrt.f32 %v9117_v12  ;;  %v3529_v36 = vrot.slane %v3528_v47, 1  ;;  %v3612_v26 = vmul.f32 %v9120_v42, %v9120_v42  ;;  %v3710_v63 = vadd.f32 %v3709_v52, %v3603_v58 }
 0x382   :  { %v3547_v41 = vadd.f32 %v3546_v48, %v9110_v39  ;;  %v3705_v27 = vrot.slane %v3704_v46, 1  ;;  %v3723_v4 = vadd.f32 %v3722_v50, %v3604_v10  ;;  %v3817_v28 = vsub.f32 %v9005_v49, %v9085_v5  ;;  %v9955_v49 = vld [vmem:[#allocation5_spill] sm:$0xff]  ;;  %v9956_v10 = vld [vmem:[#allocation14_spill] sm:$0xff] }
 0x383   :  { %v3530_v20 = vadd.f32 %v3529_v36, %v3528_v47  ;;  %v3535_v33 = vadd.f32 %v3534_v51, %v9115_v19  ;;  %v3619_v2 = vmul.f32 %v9131_v23, %v9131_v23  ;;  %v3620_v44 = vmul.f32 %v9135_v57, %v9135_v57 }
 0x384   :  { %v3706_v18 = vadd.f32 %v3705_v27, %v3704_v46  ;;  %v3548_v34 = vadd.f32 %v3547_v41, %v9120_v42  ;;  %v3711_v47 = vadd.f32 %v3710_v63, %v3611_v54  ;;  %v3724_v14 = vadd.f32 %v3723_v4, %v3612_v26 }
 0x385   :  { %v9149_v15 = vmul.f32 %v3530_v20, %v9949_v43  ;;  %v3314_v52 = vadd.f32 %v3313_v25, %v9955_v49  ;;  %v3355_v48 = vadd.f32 %v3354_v60, %v9956_v10  ;;  %vm3875_vm4 = vweird.f32 %v9117_v12 }
 0x386   :  { %v3738_v46 = vmul.f32 %v3706_v18, %v9949_v43  ;;  %v3536_v51 = vadd.f32 %v3535_v33, %v9131_v23  ;;  %v3712_v41 = vadd.f32 %v3711_v47, %v3619_v2  ;;  %v3549_v20 = vadd.f32 %v3548_v34, %v9135_v57 }
 0x387   :  { %v4926_v58 = vpop.eup %4925  ;;  %v3746_v50 = vmul.f32 %v9149_v15, %v9149_v15  ;;  %v9164_v54 = vadd.f32 %v9935_v24, %v3314_v52  ;;  %v9167_v26 = vadd.f32 %v9935_v24, %v3355_v48  ;;  %v3725_v4 = vadd.f32 %v3724_v14, %v3620_v44 }
 0x388   :  { %v3870_v36 = vmul.f32 %v4926_v58, %v9117_v12  ;;  %vm3876_vm5 = vweird.f32 %v4926_v58  ;;  %v3818_v60 = vsub.f32 %v9077_v55, %v9149_v15  ;;  %v3809_v47 = vsub.f32 %v8977_v13, %v9085_v5 }
 0x389   :  { %v3754_v27 = vsub.f32 %v3738_v46, %v3746_v50  ;;  %v3537_v18 = vadd.f32 %v3536_v51, %v9164_v54  ;;  %v3627_v25 = vmul.f32 %v9164_v54, %v9164_v54  ;;  %v3550_v33 = vadd.f32 %v3549_v20, %v9167_v26  ;;  %vm3877_vm6 = vmor %vm3875_vm4, %vm3876_vm5 }
 0x38a   :  { %v3871_v63 = vmul.f32 %v4926_v58, %v3870_v36  ;;  %v3628_v2 = vmul.f32 %v9167_v26, %v9167_v26  ;;  %v3801_v36 = vsub.f32 %v8964_v22, %v9085_v5  ;;  %vm4426_vm4 = vcmask 1041408  }
 0x38b   :  { %v9177_v24 = vadd.f32 1e-05, %v3754_v27  ;;  %v3538_v44 = vrot.slane %v3537_v18, 4  ;;  %v3713_v14 = vadd.f32 %v3712_v41, %v3627_v25  ;;  %v3551_v49 = vrot.slane %v3550_v33, 4 }
 0x38c   :  { %v3872_v34 = vmul.f32 0.5, %v3871_v63  ;;  %v3726_v52 = vadd.f32 %v3725_v4, %v3628_v2  ;;  %v3793_v41 = vsub.f32 %v8953_v35, %v9085_v5  ;;  %v3785_v2 = vsub.f32 %v8941_v8, %v9085_v5 }
 0x38d   :  { %4927 = vrsqrt.f32 %v9177_v24  ;;  %v3539_v46 = vadd.f32 %v3538_v44, %v3537_v18  ;;  %v3714_v50 = vrot.slane %v3713_v14, 4  ;;  %v3552_v51 = vadd.f32 %v3551_v49, %v3550_v33 }
 0x38e   :  { %v3873_v10 = vsub.f32 1.5, %v3872_v34  ;;  %v3727_v20 = vrot.slane %v3726_v52, 4  ;;  %v3777_v35 = vsub.f32 %v8933_v30, %v9085_v5  ;;  %vm3885_vm7 = vweird.f32 %v9177_v24 }
 0x38f   :  { %v3540_v4 = vrot.slane %v3539_v46, 2  ;;  %v3715_v22 = vadd.f32 %v3714_v50, %v3713_v14  ;;  %v3553_v18 = vrot.slane %v3552_v51, 2  ;;  %vm4432_vm5 = vcmask 1045508  }
 0x390   :  { %v3874_v63 = vmul.f32 %v4926_v58, %v3873_v10  ;;  %v3728_v25 = vadd.f32 %v3727_v20, %v3726_v52 }
 0x391   :  { %v3541_v49 = vadd.f32 %v3540_v4, %v3539_v46  ;;  %v3716_v12 = vrot.slane %v3715_v22, 2  ;;  %v3554_v10 = vadd.f32 %v3553_v18, %v3552_v51 }
 0x392   :  { %v9195_v33 = vsel %vm3877_vm6, %v4926_v58, %v3874_v63  ;;  %v3729_v14 = vrot.slane %v3728_v25, 2  ;;  %vm4434_vm6 = vcmask 1043456  }
 0x393   :  { %v3969_v44 = vmul.f32 %v9195_v33, %v3817_v28  ;;  %v4928_v27 = vpop.eup %4927  ;;  %v3961_v52 = vmul.f32 %v9195_v33, %v3809_v47  ;;  %v3953_v58 = vmul.f32 %v9195_v33, %v3801_v36  ;;  %v3542_v20 = vrot.slane %v3541_v49, 1 }
 0x394   :  { %v3880_v50 = vmul.f32 %v4928_v27, %v9177_v24  ;;  %v3717_v30 = vadd.f32 %v3716_v12, %v3715_v22  ;;  %v3769_v28 = vsub.f32 %v8926_v53, %v9085_v5  ;;  %v3555_v46 = vrot.slane %v3554_v10, 1 }
 0x395   :  { %v3730_v51 = vadd.f32 %v3729_v14, %v3728_v25  ;;  %v4065_v63 = vmul.f32 %v8665_v17, %v3969_v44  ;;  %v4057_v47 = vmul.f32 %v8554_v61, %v3961_v52  ;;  %v3543_v36 = vadd.f32 %v3542_v20, %v3541_v49 }
 0x396   :  { %v3881_v4 = vmul.f32 %v4928_v27, %v3880_v50  ;;  %v3718_v18 = vrot.slane %v3717_v30, 1  ;;  %v4049_v8 = vmul.f32 %v8592_v21, %v3953_v58  ;;  %v3556_v34 = vadd.f32 %v3555_v46, %v3554_v10 }
 0x397   :  { %v3731_v13 = vrot.slane %v3730_v51, 1  ;;  %v4161_v48 = vadd.f32 %v8580_v0, %v4065_v63  ;;  %v4153_v22 = vadd.f32 %v8622_v6, %v4057_v47  ;;  %v9218_v53 = vmul.f32 %v3543_v36, %v9949_v43 }
 0x398   :  { %v3882_v12 = vmul.f32 0.5, %v3881_v4  ;;  %v3719_v25 = vadd.f32 %v3718_v18, %v3717_v30  ;;  %v3945_v44 = vmul.f32 %v9195_v33, %v3793_v41  ;;  %v9222_v14 = vmul.f32 %v3556_v34, %v9949_v43 }
 0x399   :  { %v3732_v49 = vadd.f32 %v3731_v13, %v3730_v51  ;;  %v4225_v52 = vmax.f32 %v4161_v48, 0.0  ;;  %v4145_v58 = vadd.f32 %v8629_v56, %v4049_v8  ;;  %vm3886_vm8 = vweird.f32 %v4928_v27 }
 0x39a   :  { %v3883_v10 = vsub.f32 1.5, %v3882_v12  ;;  %v3739_v50 = vmul.f32 %v3719_v25, %v9949_v43  ;;  %v3747_v20 = vmul.f32 %v9218_v53, %v9218_v53  ;;  %v3748_v30 = vmul.f32 %v9222_v14, %v9222_v14  ;;  %vm3887_vm9 = vmor %vm3885_vm7, %vm3886_vm8 }
 0x39b   :  { %v3740_v46 = vmul.f32 %v3732_v49, %v9949_v43  ;;  %4327 = vmatpush.msrb.mxu0 %v4225_v52  ;;  %v4217_v41 = vmax.f32 %v4153_v22, 0.0  ;;  %v3770_v13 = vsub.f32 %v8972_v31, %v9149_v15  ;;  %v4041_v8 = vmul.f32 %v8726_v62, %v3945_v44 }
 0x39c   :  { %v3884_v48 = vmul.f32 %v4928_v27, %v3883_v10  ;;  %v3755_v34 = vsub.f32 %v3739_v50, %v3747_v20  ;;  %v3937_v51 = vmul.f32 %v9195_v33, %v3785_v2  ;;  %v3819_v43 = vsub.f32 %v9164_v54, %v9218_v53 }
 0x39d   :  { %v3756_v63 = vsub.f32 %v3740_v46, %v3748_v30  ;;  %4328 = vmatpush.msrb.mxu0 %v4217_v41  ;;  %v4209_v47 = vmax.f32 %v4145_v58, 0.0  ;;  %v3929_v4 = vmul.f32 %v9195_v33, %v3777_v35  ;;  %v4137_v22 = vadd.f32 %v8627_v11, %v4041_v8 }
 0x39e   :  { %v9240_v36 = vsel %vm3887_vm9, %v4928_v27, %v3884_v48  ;;  %v9242_v18 = vadd.f32 1e-05, %v3755_v34  ;;  %v4033_v12 = vmul.f32 %v8648_v38, %v3937_v51  ;;  %v9957_v25 = vsub.f32 %v9050_v3, %v9149_v15  ;;  %v9961_v48 = vld [vmem:[#allocation77_spill] sm:$0xff] }
 0x39f   :  { %v3970_v24 = vmul.f32 %v9240_v36, %v3818_v60  ;;  %v9250_v2 = vadd.f32 1e-05, %v3756_v63  ;;  %4329 = vmatpush.msrb.mxu0 %v4209_v47  ;;  %v9958_v27 = vsub.f32 %v9040_v29, %v9149_v15  ;;  %v3820_v55 = vsub.f32 %v9167_v26, %v9222_v14  ;;  %v4230_v26 = vld [vmem:[%s9454_s5] sm:$0x1]  ;;  %s5007_s5 = smov [#allocation2]  }
 0x3a0   :  { %v3962_v35 = vmul.f32 %v9240_v36, %v9957_v25  ;;  %4929 = vrsqrt.f32 %v9242_v18  ;;  %v4201_v49 = vmax.f32 %v4137_v22, 0.0  ;;  %v9959_v60 = vsub.f32 %v9022_v9, %v9149_v15  ;;  %s4443_s1 = sshll.u32 %s5007_s5, 4  ;;  %s4444_s1 = int_to_ptr.vmem [resolvable:$true] %s4443_s1 }
 0x3a1   :  { %v3954_v44 = vmul.f32 %v9240_v36, %v9958_v27  ;;  %4931 = vrsqrt.f32 %v9250_v2  ;;  %v4066_v3 = vmul.f32 %v8665_v17, %v3970_v24  ;;  %v3921_v29 = vmul.f32 %v9195_v33, %v3769_v28 }
 0x3a2   :  { %v3946_v52 = vmul.f32 %v9240_v36, %v9959_v60  ;;  %v4058_v58 = vmul.f32 %v8554_v61, %v3962_v35  ;;  %4330 = vmatpush.msrb.mxu0 %v4201_v49  ;;  %v4129_v20 = vadd.f32 %v8708_v40, %v4033_v12  ;;  %v9960_v9 = vsub.f32 %v9001_v32, %v9149_v15  ;;  %v9963_v12 = vld [vmem:[#allocation20_spill] sm:$0xff]  ;;  %v9964_v35 = vld [vmem:[#allocation31_spill] sm:$0xff]  ;;  %v9965_v60 = vld [vmem:[#allocation26_spill] sm:$0xff] }
 0x3a3   :  { %v4050_v10 = vmul.f32 %v8592_v21, %v3954_v44  ;;  %v4162_v30 = vadd.f32 %v8580_v0, %v4066_v3  ;;  %v4025_v34 = vmul.f32 %v9961_v48, %v3929_v4  ;;  %v9962_v28 = vsub.f32 %v8984_v7, %v9149_v15 }
 0x3a4   :  { %v4042_v50 = vmul.f32 %v8726_v62, %v3946_v52  ;;  %v3938_v46 = vmul.f32 %v9240_v36, %v9960_v9  ;;  %v4154_v41 = vadd.f32 %v8622_v6, %v4058_v58  ;;  %v4193_v47 = vmax.f32 %v4129_v20, 0.0 }
 0x3a5   :  { %v3930_v8 = vmul.f32 %v9240_v36, %v9962_v28  ;;  %v4146_v51 = vadd.f32 %v8629_v56, %v4050_v10  ;;  %v4226_v22 = vmax.f32 %v4162_v30, 0.0  ;;  %v4121_v24 = vadd.f32 %v9963_v12, %v4025_v34  ;;  %v9317_v28 = vld [vmem:[%s9453_s4] sm:$0x1] }
 0x3a6   :  { %v4138_v63 = vadd.f32 %v8627_v11, %v4042_v50  ;;  %v4034_v32 = vmul.f32 %v8648_v38, %v3938_v46  ;;  %v3761_v4 = vsub.f32 %v9964_v35, %v9085_v5  ;;  %v9292_v27 = vpop.eup %4929  ;;  %v4218_v7 = vmax.f32 %v4154_v41, 0.0  ;;  %4331 = vmatpush.msrb.mxu0 %v4193_v47  ;;  %v9967_v47 = vld [vmem:[#allocation32_spill] sm:$0xff]  ;;  %4824 = vmatmul.msk.f32.vlgmr.msra.gmra.mxu2 %vm2058_vm14, %v9317_v28 }
 0x3a7   :  { %v4026_v25 = vmul.f32 %v9961_v48, %v3930_v8  ;;  %v4210_v44 = vmax.f32 %v4146_v51, 0.0  ;;  %v4017_v52 = vmul.f32 %v9965_v60, %v3921_v29  ;;  %v9296_v3 = vpop.eup %4931  ;;  %v3890_v58 = vmul.f32 %v9292_v27, %v9242_v18  ;;  %4347 = vmatpush.msrb.mxu1 %v4226_v22  ;;  %v9966_v29 = vld [vmem:[#allocation21_spill] sm:$0xff]  ;;  %4825 = vmatmul.msk.f32.vlgmr.msra.gmra.mxu3 %vm2058_vm14, %v9317_v28 }
 0x3a8   :  { %v4130_v49 = vadd.f32 %v8708_v40, %v4034_v32  ;;  %vm3895_vm10 = vweird.f32 %v9242_v18  ;;  %v4202_v10 = vmax.f32 %v4138_v63, 0.0  ;;  %v4185_v50 = vmax.f32 %v4121_v24, 0.0  ;;  %4822 = vmatmul.msk.f32.vlgmr.msra.gmra.mxu0 %vm2058_vm14, %v9317_v28  ;;  %4823 = vmatmul.msk.f32.vlgmr.msra.gmra.mxu1 %vm2058_vm14, %v9317_v28  ;;  %v9970_v18 = vld [vmem:[#allocation24_spill] sm:$0xff] }
 0x3a9   :  { %v4122_v5 = vadd.f32 %v9963_v12, %v4026_v25  ;;  %vm3896_vm11 = vweird.f32 %v9292_v27  ;;  %v3900_v20 = vmul.f32 %v9296_v3, %v9250_v2  ;;  %vm3905_vm12 = vweird.f32 %v9250_v2  ;;  %4348 = vmatpush.msrb.mxu1 %v4218_v7 }
 0x3aa   :  { %vm3906_vm13 = vweird.f32 %v9296_v3  ;;  %v4113_v9 = vadd.f32 %v9966_v29, %v4017_v52  ;;  %v3891_v46 = vmul.f32 %v9292_v27, %v3890_v58  ;;  %v4194_v30 = vmax.f32 %v4130_v49, 0.0  ;;  %4332 = vmatpush.msrb.mxu0 %v4185_v50  ;;  %vm3897_vm15 = vmor %vm3895_vm10, %vm3896_vm11 }
 0x3ab   :  { %v3922_v41 = vmul.f32 %v9240_v36, %v3770_v13  ;;  %v3913_v34 = vmul.f32 %v9195_v33, %v3761_v4  ;;  %v3901_v8 = vmul.f32 %v9296_v3, %v3900_v20  ;;  %v4186_v51 = vmax.f32 %v4122_v5, 0.0  ;;  %4349 = vmatpush.msrb.mxu1 %v4210_v44  ;;  %v9968_v13 = vld [vmem:[#allocation27_spill] sm:$0xff]  ;;  %v9969_v44 = vld [vmem:[#allocation78_spill] sm:$0xff]  ;;  %vm3907_vm0 = vmor %vm3905_vm12, %vm3906_vm13 }
 0x3ac   :  { %v4177_v63 = vmax.f32 %v4113_v9, 0.0  ;;  %v3762_v32 = vsub.f32 %v9967_v47, %v9149_v15  ;;  %v3892_v31 = vmul.f32 0.5, %v3891_v46  ;;  %v3811_v24 = vsub.f32 %v9131_v23, %v9218_v53 }
 0x3ad   :  { %v4018_v33 = vmul.f32 %v9965_v60, %v3922_v41  ;;  %v4009_v22 = vmul.f32 %v9968_v13, %v3913_v34  ;;  %v3902_v25 = vmul.f32 0.5, %v3901_v8  ;;  %v3812_v35 = vsub.f32 %v9135_v57, %v9222_v14  ;;  %4350 = vmatpush.msrb.mxu1 %v4202_v10 }
 0x3ae   :  { %4333 = vmatpush.msrb.mxu0 %v4177_v63  ;;  %v3914_v15 = vmul.f32 %v9240_v36, %v3762_v32  ;;  %v3803_v4 = vsub.f32 %v9115_v19, %v9218_v53  ;;  %v3893_v7 = vsub.f32 1.5, %v3892_v31  ;;  %v3804_v52 = vsub.f32 %v9120_v42, %v9222_v14 }
 0x3af   :  { %v4114_v23 = vadd.f32 %v9966_v29, %v4018_v33  ;;  %v4105_v49 = vadd.f32 %v9969_v44, %v4009_v22  ;;  %v3903_v58 = vsub.f32 1.5, %v3902_v25  ;;  %v3795_v57 = vsub.f32 %v9105_v16, %v9218_v53  ;;  %4351 = vmatpush.msrb.mxu1 %v4194_v30 }
 0x3b0   :  { %v4010_v36 = vmul.f32 %v9968_v13, %v3914_v15  ;;  %v3796_v19 = vsub.f32 %v9110_v39, %v9222_v14  ;;  %v3894_v50 = vmul.f32 %v9292_v27, %v3893_v7  ;;  %v3787_v20 = vsub.f32 %v9091_v37, %v9218_v53 }
 0x3b1   :  { %v4178_v10 = vmax.f32 %v4114_v23, 0.0  ;;  %v4169_v5 = vmax.f32 %v4105_v49, 0.0  ;;  %v3904_v42 = vmul.f32 %v9296_v3, %v3903_v58  ;;  %v3788_v39 = vsub.f32 %v9094_v45, %v9222_v14  ;;  %4352 = vmatpush.msrb.mxu1 %v4186_v51  ;;  %v9971_v23 = vld [vmem:[#allocation29_spill] sm:$0xff] }
 0x3b2   :  { %v4106_v16 = vadd.f32 %v9969_v44, %v4010_v36  ;;  %v3779_v9 = vsub.f32 %v9062_v1, %v9218_v53  ;;  %v9362_v46 = vsel %vm3897_vm15, %v9292_v27, %v3894_v50  ;;  %v3780_v37 = vsub.f32 %v9065_v59, %v9222_v14 }
 0x3b3   :  { %4334 = vmatpush.msrb.mxu0 %v4169_v5  ;;  %v3771_v30 = vsub.f32 %v9970_v18, %v9218_v53  ;;  %v3971_v1 = vmul.f32 %v9362_v46, %v3819_v43  ;;  %v9377_v45 = vsel %vm3907_vm0, %v9296_v3, %v3904_v42  ;;  %v3963_v2 = vmul.f32 %v9362_v46, %v3811_v24 }
 0x3b4   :  { %v4170_v27 = vmax.f32 %v4106_v16, 0.0  ;;  %v5006_v41 = vmov 9   ;;  %v3972_v59 = vmul.f32 %v9377_v45, %v3820_v55  ;;  %4353 = vmatpush.msrb.mxu1 %v4178_v10  ;;  %v3964_v34 = vmul.f32 %v9377_v45, %v3812_v35  ;;  %4826 = vmatmul.msk.f32.vlgmr.msrb.gmra.mxu0 %vm2058_vm14, %v9317_v28  ;;  %v9972_v16 = vld [vmem:[#allocation37_spill] sm:$0xff] }
 0x3b5   :  { %4879 = vset.pattern.permute.xlu1 %v5006_v41  ;;  %4880 = vset.pattern.permute.xlu0 %v5006_v41  ;;  %v3955_v54 = vmul.f32 %v9362_v46, %v3803_v4  ;;  %v3956_v43 = vmul.f32 %v9377_v45, %v3804_v52  ;;  %v4067_v3 = vmul.f32 %v8665_v17, %v3971_v1 }
 0x3b6   :  { %v4059_v8 = vmul.f32 %v8554_v61, %v3963_v2  ;;  %v3947_v51 = vmul.f32 %v9362_v46, %v3795_v57  ;;  %v3948_v63 = vmul.f32 %v9377_v45, %v3796_v19  ;;  %4354 = vmatpush.msrb.mxu1 %v4170_v27  ;;  %v4068_v55 = vmul.f32 %v8665_v17, %v3972_v59 }
 0x3b7   :  { %v4060_v47 = vmul.f32 %v8554_v61, %v3964_v34  ;;  %v4051_v32 = vmul.f32 %v8592_v21, %v3955_v54  ;;  %v4052_v31 = vmul.f32 %v8592_v21, %v3956_v43  ;;  %v4163_v33 = vadd.f32 %v8580_v0, %v4067_v3  ;;  %4827 = vmatmul.msk.f32.vlgmr.msrb.gmra.mxu1 %vm2058_vm14, %v9317_v28 }
 0x3b8   :  { %v4155_v22 = vadd.f32 %v8622_v6, %v4059_v8  ;;  %v4043_v24 = vmul.f32 %v8726_v62, %v3947_v51  ;;  %v4044_v25 = vmul.f32 %v8726_v62, %v3948_v63  ;;  %v4164_v15 = vadd.f32 %v8580_v0, %v4068_v55  ;;  %4233 = vperm.xlu1 %4879, %v4230_v26  }
 0x3b9   :  { %v4156_v17 = vadd.f32 %v8622_v6, %v4060_v47  ;;  %v4147_v61 = vadd.f32 %v8629_v56, %v4051_v32  ;;  %v4148_v35 = vadd.f32 %v8629_v56, %v4052_v31  ;;  %v4227_v21 = vmax.f32 %v4163_v33, 0.0 }
 0x3ba   :  { %v4219_v4 = vmax.f32 %v4155_v22, 0.0  ;;  %v4139_v7 = vadd.f32 %v8627_v11, %v4043_v24  ;;  %v3772_v49 = vsub.f32 %v9971_v23, %v9222_v14  ;;  %v4228_v62 = vmax.f32 %v4164_v15, 0.0 }
 0x3bb   :  { %v4220_v52 = vmax.f32 %v4156_v17, 0.0  ;;  %v4211_v58 = vmax.f32 %v4147_v61, 0.0  ;;  %v4140_v36 = vadd.f32 %v8627_v11, %v4044_v25  ;;  %4367 = vmatpush.msrb.mxu2 %v4227_v21  ;;  %v4212_v0 = vmax.f32 %v4148_v35, 0.0 }
 0x3bc   :  { %v4203_v6 = vmax.f32 %v4139_v7, 0.0  ;;  %v3939_v57 = vmul.f32 %v9362_v46, %v3787_v20  ;;  %v3940_v56 = vmul.f32 %v9377_v45, %v3788_v39  ;;  %4387 = vmatpush.msrb.mxu3 %v4228_v62  ;;  %v3931_v19 = vmul.f32 %v9362_v46, %v3779_v9  ;;  %v9973_v20 = vld [vmem:[#allocation25_spill] sm:$0xff] }
 0x3bd   :  { %v3932_v50 = vmul.f32 %v9377_v45, %v3780_v37  ;;  %v3923_v10 = vmul.f32 %v9362_v46, %v3771_v30  ;;  %v3924_v5 = vmul.f32 %v9377_v45, %v3772_v49  ;;  %4368 = vmatpush.msrb.mxu2 %v4219_v4  ;;  %v3763_v18 = vsub.f32 %v9972_v16, %v9218_v53 }
 0x3be   :  { %v4035_v42 = vmul.f32 %v8648_v38, %v3939_v57  ;;  %v4036_v11 = vmul.f32 %v8648_v38, %v3940_v56  ;;  %v3764_v39 = vsub.f32 %v9973_v20, %v9222_v14  ;;  %4388 = vmatpush.msrb.mxu3 %v4220_v52  ;;  %v4027_v9 = vmul.f32 %v9961_v48, %v3931_v19 }
 0x3bf   :  { %v4028_v37 = vmul.f32 %v9961_v48, %v3932_v50  ;;  %v4019_v30 = vmul.f32 %v9965_v60, %v3923_v10  ;;  %v4020_v1 = vmul.f32 %v9965_v60, %v3924_v5  ;;  %4369 = vmatpush.msrb.mxu2 %v4211_v58  ;;  %v3915_v2 = vmul.f32 %v9362_v46, %v3763_v18 }
 0x3c0   :  { %v4131_v27 = vadd.f32 %v8708_v40, %v4035_v42  ;;  %v4132_v38 = vadd.f32 %v8708_v40, %v4036_v11  ;;  %v3916_v53 = vmul.f32 %v9377_v45, %v3764_v39  ;;  %4389 = vmatpush.msrb.mxu3 %v4212_v0  ;;  %v4204_v14 = vmax.f32 %v4140_v36, 0.0 }
 0x3c1   :  { %v4123_v41 = vadd.f32 %v9963_v12, %v4027_v9  ;;  %v4124_v59 = vadd.f32 %v9963_v12, %v4028_v37  ;;  %4370 = vmatpush.msrb.mxu2 %v4203_v6  ;;  %v4115_v34 = vadd.f32 %v9966_v29, %v4019_v30  ;;  %v4011_v60 = vmul.f32 %v9968_v13, %v3915_v2 }
 0x3c2   :  { %v4195_v48 = vmax.f32 %v4131_v27, 0.0  ;;  %v4012_v54 = vmul.f32 %v9968_v13, %v3916_v53  ;;  %4390 = vmatpush.msrb.mxu3 %v4204_v14  ;;  %v4196_v40 = vmax.f32 %v4132_v38, 0.0  ;;  %v4116_v46 = vadd.f32 %v9966_v29, %v4020_v1 }
 0x3c3   :  { %v4187_v45 = vmax.f32 %v4123_v41, 0.0  ;;  %v4107_v43 = vadd.f32 %v9969_v44, %v4011_v60  ;;  %v4188_v3 = vmax.f32 %v4124_v59, 0.0  ;;  %v4179_v8 = vmax.f32 %v4115_v34, 0.0 }
 0x3c4   :  { %4371 = vmatpush.msrb.mxu2 %v4195_v48  ;;  %4391 = vmatpush.msrb.mxu3 %v4196_v40  ;;  %v4108_v12 = vadd.f32 %v9969_v44, %v4012_v54  ;;  %v4180_v51 = vmax.f32 %v4116_v46, 0.0 }
 0x3c5   :  { %v4171_v63 = vmax.f32 %v4107_v43, 0.0 }
 0x3c6   :  { %4372 = vmatpush.msrb.mxu2 %v4187_v45  ;;  %4392 = vmatpush.msrb.mxu3 %v4188_v3  ;;  %v4172_v13 = vmax.f32 %v4108_v12, 0.0 }
 0x3c8   :  { %4373 = vmatpush.msrb.mxu2 %v4179_v8  ;;  %4393 = vmatpush.msrb.mxu3 %v4180_v51 }
 0x3ca   :  { %4374 = vmatpush.msrb.mxu2 %v4171_v63  ;;  %4394 = vmatpush.msrb.mxu3 %v4172_v13 }
 0x3cb   :  { %4828 = vmatmul.msk.f32.vlgmr.msrb.gmra.mxu2 %vm2058_vm14, %v9317_v28  ;;  %4829 = vmatmul.msk.f32.vlgmr.msrb.gmra.mxu3 %vm2058_vm14, %v9317_v28  ;;  %vm4428_vm14 = vcmask 1044484  }
 0x425   :  { %v4256_v29 = vpop.f32.mrf.mxu0  ;;  %v4276_v26 = vpop.f32.mrf.mxu1 }
 0x429   :  { %v4296_v32 = vpop.f32.mrf.mxu2 }
 0x42a   :  { %v4234_v47 = vpop.permute.xlu1 %4233  ;;  %v4316_v33 = vpop.f32.mrf.mxu3 }
 0x42b   :  { %v4277_v24 = vadd.f32 %v4276_v26, %v4234_v47  ;;  %v4297_v25 = vadd.f32 %v4296_v32, %v4234_v47  ;;  %v4317_v15 = vadd.f32 %v4316_v33, %v4234_v47  ;;  %v4257_v17 = vadd.f32 %v4256_v29, %v4234_v47 }
 0x431   :  { %v4336_v55 = vpop.f32.mrf.mxu0 }
 0x432   :  { %v4337_v31 = vadd.f32 %v4336_v55, %v4234_v47 }
 0x434   :  { %v4356_v44 = vpop.f32.mrf.mxu1  ;;  %4933 = vtanh.f32 %v4337_v31 }
 0x435   :  { %v4357_v22 = vadd.f32 %v4356_v44, %v4234_v47 }
 0x437   :  { %4935 = vtanh.f32 %v4357_v22 }
 0x438   :  { %4937 = vtanh.f32 %v4277_v24 }
 0x439   :  { %4939 = vtanh.f32 %v4297_v25 }
 0x43a   :  { %4941 = vtanh.f32 %v4317_v15  ;;  %v4934_v61 = vpop.eup %4933 }
 0x43b   :  { %4943 = vtanh.f32 %v4257_v17  ;;  %v4418_v52 = vrot.slane %v4934_v61, 4 }
 0x43d   :  { %v4936_v35 = vpop.eup %4935 }
 0x43e   :  { %v4938_v7 = vpop.eup %4937  ;;  %v4419_v58 = vrot.slane %v4936_v35, 3 }
 0x43f   :  { %v4940_v49 = vpop.eup %4939  ;;  %v4415_v36 = vrot.slane %v4938_v7, 7 }
 0x440   :  { %v4942_v62 = vpop.eup %4941  ;;  %v4416_v0 = vrot.slane %v4940_v49, 6  ;;  %v4429_v10 = vsel %vm4428_vm14, %v4418_v52, %v4419_v58 }
 0x441   :  { %v4417_v6 = vrot.slane %v4942_v62, 5  ;;  %v4944_v57 = vpop.eup %4943 }
 0x442   :  { %v4423_v42 = vsel %vm4422_vm1, %v4944_v57, %v4415_v36 }
 0x443   :  { %v4425_v11 = vsel %vm4424_vm2, %v4416_v0, %v4417_v6 }
 0x444   :  { %v4427_v18 = vsel %vm4426_vm4, %v4423_v42, %v4425_v11 }
 0x44e   :  { %v4376_v28 = vpop.f32.mrf.mxu2  ;;  %v4396_v4 = vpop.f32.mrf.mxu3 }
 0x44f   :  { %v4377_v21 = vadd.f32 %v4376_v28, %v4234_v47  ;;  %v4397_v23 = vadd.f32 %v4396_v4, %v4234_v47 }
 0x451   :  { %4945 = vtanh.f32 %v4377_v21 }
 0x452   :  { %4947 = vtanh.f32 %v4397_v23 }
 0x457   :  { %v4946_v56 = vpop.eup %4945 }
 0x458   :  { %v4948_v19 = vpop.eup %4947  ;;  %v4420_v50 = vrot.slane %v4946_v56, 2 }
 0x459   :  { %v4421_v5 = vrot.slane %v4948_v19, 1 }
 0x45b   :  { %v4431_v16 = vsel %vm4430_vm3, %v4420_v50, %v4421_v5 }
 0x45c   :  { %v4433_v20 = vsel %vm4432_vm5, %v4429_v10, %v4431_v16 }
 0x45d   :  { %v4435_v39 = vsel %vm4434_vm6, %v4427_v18, %v4433_v20 }
 0x45e   :  { %4437 = vst [vmem:[#allocation2] sm:$0xff] %v4435_v39 }
 0x45f   :  { %4448 = dma.vmem_to_hbm [thread:$0]  %s4444_s1, 128, %s4446_s16, [#allocation3]  }
 0x460   :  { %4993 = dma.done.wait [#allocation3], 128  }
 0x461   :  { %4994 = vsyncadd [#allocation3], 4294967168 }
 0x462   :  { %4453 = vsyncpa [#allocation3], 1 }

</bundles_post_ra>
